<compile_context>
chip_gen: v7x
topology: tpu7x:2x2x1
jax: 0.10.0
libtpu: 0.0.40
codegen_flags: <defaults>
</compile_context>

<pallas_src>
import functools

import jax
import jax.numpy as jnp
from jax.experimental import pallas as pl
from jax.experimental.pallas import tpu as pltpu

_PAD = 2  # halo width of the staging buffers (max over 3x3 / 5x5)


# ----------------------------- Fused Pallas kernel ---------------------------

def _normal_cell_kernel(x_ref, w1_ref, b1_ref,
                        tap3_ref, shift3_ref, pw3_ref,
                        tap5_ref, shift5_ref, pw5_ref,
                        o_ref, pad_cur, pad_prev, *, H, W, C):
    WC = W * C
    PC = _PAD * C
    f32 = jnp.float32

    # Zero only the 2-wide halo ring; the interior is fully overwritten below.
    def zero_halo(ref):
        rows, cols = ref.shape
        ref[0:_PAD, :] = jnp.zeros((_PAD, cols), f32)
        ref[_PAD + H:rows, :] = jnp.zeros((rows - _PAD - H, cols), f32)
        ref[_PAD:_PAD + H, 0:PC] = jnp.zeros((H, PC), f32)
        ref[_PAD:_PAD + H, PC + WC:cols] = jnp.zeros((H, cols - PC - WC), f32)

    zero_halo(pad_cur)
    zero_halo(pad_prev)

    # Stem: bn_in folded into the 1x1 conv; cur and prev stacked along rows;
    # the 1x1 conv is a block-diagonal kron(I_W, W1) lane-dense matmul.
    x = x_ref[0]                                             # (2H, W*Cin)
    y = jnp.dot(x, w1_ref[...], preferred_element_type=f32)  # (2H, W*C)
    y = jnp.maximum(y + b1_ref[...], 0.0)
    cur1 = y[0:H, :]
    prev1 = y[H:2 * H, :]

    # Stage each stem output exactly once; the halo stays zero.
    pad_cur[_PAD:_PAD + H, PC:PC + WC] = cur1
    pad_prev[_PAD:_PAD + H, PC:PC + WC] = prev1

    tap3 = tap3_ref[...]                                     # (9,  W*C), BN scale folded
    tap5 = tap5_ref[...]                                     # (25, W*C), BN scale folded

    # 3x3 pass: every window load feeds both the avg-pool and the depthwise.
    def pass3(ref):
        avg = jnp.zeros((H, WC), f32)
        dw = jnp.zeros((H, WC), f32)
        off = _PAD - 1
        for i in range(3):
            for j in range(3):
                win = ref[off + i:off + i + H,
                          (off + j) * C:(off + j) * C + WC]
                avg = avg + win
                dw = dw + win * tap3[i * 3 + j:i * 3 + j + 1, :]
        return avg * (1.0 / 9.0), dw

    avg_c, dw3_c = pass3(pad_cur)
    avg_p, dw3_p = pass3(pad_prev)

    # 5x5 depthwise (prev only).
    dw5_p = jnp.zeros((H, WC), f32)
    for i in range(5):
        for j in range(5):
            win = pad_prev[i:i + H, j * C:j * C + WC]
            dw5_p = dw5_p + win * tap5[i * 5 + j:i * 5 + j + 1, :]

    # Per-pixel BN-shift correction (precomputed beta * valid-tap-sum map).
    d3c = dw3_c + shift3_ref[...]
    d3p = dw3_p + shift3_ref[...]
    d5p = dw5_p + shift5_ref[...]

    # Pointwise 1x1 convs as block-diagonal matmuls; the shared SepConv3x3
    # pointwise runs once on the stacked cur/prev depthwise outputs.
    d3 = jnp.concatenate([d3c, d3p], axis=0)                 # (2H, W*C)
    s3 = jnp.maximum(jnp.dot(d3, pw3_ref[...], preferred_element_type=f32), 0.0)
    s3c = s3[0:H, :]
    s3p = s3[H:2 * H, :]
    s5p = jnp.maximum(jnp.dot(d5p, pw5_ref[...], preferred_element_type=f32), 0.0)

    # Branch stores: lane-dense (H, 128) tiles.  b4 == b1 is added by the wrapper.
    def emit(k, val):
        o_ref[:, k:k + 1, :, :] = val.reshape(1, 1, H, WC)

    emit(0, prev1)               # prev
    emit(1, s3c + cur1)          # b0
    emit(2, s3p + s5p)           # b1 (== b4)
    emit(3, avg_c + prev1)       # b2
    emit(4, 2.0 * avg_p)         # b3 = avg(prev) + avg(prev)


# ---------------------------------- Wrapper ----------------------------------

def _full_spec(shape):
    nd = len(shape)
    return pl.BlockSpec(shape, lambda n, _nd=nd: (0,) * _nd)


def normal_cell_forward(cur_nchw, prev_nchw, kp):
    N, Cin, H, W = cur_nchw.shape
    Cout = kp["pw3_blk"].shape[1] // W

    # NCHW pair -> (N, 2*H, W*Cin): one small one-off XLA relayout.
    xs = jnp.stack([cur_nchw, prev_nchw], axis=1)            # (N, 2, Cin, H, W)
    xs = jnp.transpose(xs, (0, 1, 3, 4, 2)).reshape(N, 2 * H, W * Cin)

    weights = (kp["w1_blk"], kp["b1_t"],
               kp["tap3"], kp["shift3"], kp["pw3_blk"],
               kp["tap5"], kp["shift5"], kp["pw5_blk"])

    kernel = functools.partial(_normal_cell_kernel, H=H, W=W, C=Cout)
    out = pl.pallas_call(
        kernel,
        out_shape=jax.ShapeDtypeStruct((N, 5, H, W * Cout), jnp.float32),
        grid=(N,),
        in_specs=[pl.BlockSpec((1, 2 * H, W * Cin), lambda n: (n, 0, 0))]
                 + [_full_spec(w.shape) for w in weights],
        out_specs=pl.BlockSpec((1, 5, H, W * Cout), lambda n: (n, 0, 0, 0)),
        scratch_shapes=[
            pltpu.VMEM((H + 2 * _PAD, (W + 2 * _PAD) * Cout), jnp.float32),
            pltpu.VMEM((H + 2 * _PAD, (W + 2 * _PAD) * Cout), jnp.float32)],
        compiler_params=pltpu.CompilerParams(
            dimension_semantics=("parallel",)),
    )(xs, *weights)

    # (N, 5, H, W*Cout) -> NCHW (N, 6*Cout, H, W); b4 == b1 duplicated here;
    # channel order matches torch.cat([prev, b0, b1, b2, b3, b4], dim=1).
    out = out.reshape(N, 5, H, W, Cout)
    out = jnp.concatenate([out, out[:, 2:3]], axis=1)        # append b4 == b1
    return jnp.transpose(out, (0, 1, 4, 2, 3)).reshape(N, 6 * Cout, H, W)


# ---------------------------- Parameter creation -----------------------------

def _bn_fold(gamma, beta, rm, rv, eps=1e-3):
    scale = gamma / jnp.sqrt(rv + eps)
    shift = beta - rm * scale
    return scale, shift


def make_params(key, cin, cout, H, W):
    ks = jax.random.split(key, 24)
    i = iter(range(24))

    def nrm(shape, s=0.1):
        return s * jax.random.normal(ks[next(i)], shape, jnp.float32)

    def pos(shape):
        return jax.random.uniform(ks[next(i)], shape, jnp.float32, 0.5, 1.5)

    raw = dict(
        bn_in=(pos((cin,)), nrm((cin,)), nrm((cin,)), pos((cin,))),   # g, b, rm, rv
        w1_t=nrm((cout, cin, 1, 1)), b1_t=nrm((cout,)),               # prev1X1
        bn3=(pos((cout,)), nrm((cout,)), nrm((cout,)), pos((cout,))),
        dw3_t=nrm((cout, 1, 3, 3)), pw3_t=nrm((cout, cout, 1, 1)),
        bn5=(pos((cout,)), nrm((cout,)), nrm((cout,)), pos((cout,))),
        dw5_t=nrm((cout, 1, 5, 5)), pw5_t=nrm((cout, cout, 1, 1)),
    )

    eye_w = jnp.eye(W, dtype=jnp.float32)

    def lane_tile(v):                     # (C,) -> (1, W*C); [0, w*C + c] = v[c]
        return jnp.tile(v, W).reshape(1, W * v.shape[0])

    kp = {}
    # Stem: fold bn_in into the 1x1 conv, expand to block-diagonal over W.
    in_s, in_b = _bn_fold(*raw["bn_in"])
    w1 = raw["w1_t"][:, :, 0, 0]                              # (Cout, Cin)
    w1_eff = (w1 * in_s[None, :]).T                           # (Cin, Cout)
    b1_eff = raw["b1_t"] + w1 @ in_b                          # (Cout,)
    kp["w1_blk"] = jnp.kron(eye_w, w1_eff)                    # (W*Cin, W*Cout)
    kp["b1_t"] = lane_tile(b1_eff)

    def sep_fold(bn, dw_t, pw_t, k, p):
        s, b = _bn_fold(*bn)
        dw = jnp.transpose(dw_t[:, 0], (1, 2, 0)).reshape(k * k, cout)  # (k*k, C)
        taps = dw * s[None, :]                                          # fold BN scale
        taps = jnp.tile(taps[:, None, :], (1, W, 1)).reshape(k * k, W * cout)
        # Per-pixel BN-shift map: beta[c] * (sum of depthwise taps valid there).
        vsum = jax.lax.conv_general_dilated(
            jnp.ones((1, cout, H, W), jnp.float32), dw_t, (1, 1),
            [(p, p), (p, p)], dimension_numbers=("NCHW", "OIHW", "NCHW"),
            feature_group_count=cout)[0]                                 # (C, H, W)
        shift_map = jnp.transpose(b[:, None, None] * vsum,
                                  (1, 2, 0)).reshape(H, W * cout)
        pw_blk = jnp.kron(eye_w, pw_t[:, :, 0, 0].T)                     # (W*C, W*C)
        return taps, shift_map, pw_blk

    kp["tap3"], kp["shift3"], kp["pw3_blk"] = sep_fold(
        raw["bn3"], raw["dw3_t"], raw["pw3_t"], 3, 1)
    kp["tap5"], kp["shift5"], kp["pw5_blk"] = sep_fold(
        raw["bn5"], raw["dw5_t"], raw["pw5_t"], 5, 2)
    return raw, kp


# -------------------------- Pure-JAX reference (check) -----------------------

def ref_normal_cell(cur, prev, raw, eps=1e-3):
    def bn(x, p):
        g, b, rm, rv = p
        return (x - rm[None, :, None, None]) / jnp.sqrt(rv[None, :, None, None] + eps) \
            * g[None, :, None, None] + b[None, :, None, None]

    def conv(x, w, b=None, pad=0, groups=1):
        y = jax.lax.conv_general_dilated(
            x, w, (1, 1), [(pad, pad), (pad, pad)],
            dimension_numbers=("NCHW", "OIHW", "NCHW"), feature_group_count=groups)
        if b is not None:
            y = y + b[None, :, None, None]
        return y

    def sep(x, bn_p, dw, pw, pad):
        x = bn(x, bn_p)
        x = conv(x, dw, pad=pad, groups=x.shape[1])
        x = conv(x, pw)
        return jnp.maximum(x, 0.0)

    def avg(x):
        s = jax.lax.reduce_window(x, 0.0, jax.lax.add, (1, 1, 3, 3), (1, 1, 1, 1),
                                  [(0, 0), (0, 0), (1, 1), (1, 1)])
        return s / 9.0

    cur = jnp.maximum(conv(bn(cur, raw["bn_in"]), raw["w1_t"], raw["b1_t"]), 0.0)
    prev = jnp.maximum(conv(bn(prev, raw["bn_in"]), raw["w1_t"], raw["b1_t"]), 0.0)
    s3c = sep(cur, raw["bn3"], raw["dw3_t"], raw["pw3_t"], 1)
    s3p = sep(prev, raw["bn3"], raw["dw3_t"], raw["pw3_t"], 1)
    s5p = sep(prev, raw["bn5"], raw["dw5_t"], raw["pw5_t"], 2)
    b0 = s3c + cur
    b1 = s3p + s5p
    b2 = avg(cur) + prev
    b3 = avg(prev) + avg(prev)
    b4 = s5p + s3p
    return jnp.concatenate([prev, b0, b1, b2, b3, b4], axis=1)


# ------------------------------------ Main ------------------------------------

if __name__ == "__main__":
    N, Cin, Cout, H, W = 2, 4, 8, 16, 16
    key = jax.random.PRNGKey(0)
    k_cur, k_prev, k_par = jax.random.split(key, 3)

    cur = jax.random.normal(k_cur, (N, Cin, H, W), jnp.float32)
    prev = jax.random.normal(k_prev, (N, Cin, H, W), jnp.float32)
    raw, kp = make_params(k_par, Cin, Cout, H, W)

    out = jax.block_until_ready(normal_cell_forward(cur, prev, kp))
    assert out.shape == (N, 6 * Cout, H, W), out.shape

    ref = jax.block_until_ready(ref_normal_cell(cur, prev, raw))
    assert jnp.allclose(out, ref, rtol=1e-4, atol=1e-4), \
        float(jnp.max(jnp.abs(out - ref)))

    print("KERNEL_OK")
</pallas_src>

<mosaic_0001>
module attributes {stable_mosaic.version = 11 : i64} {
  func.func @_normal_cell_kernel(%arg0: i32, %arg1: memref<1x32x64xf32, #tpu.memory_space<vmem>>, %arg2: memref<64x128xf32, #tpu.memory_space<vmem>>, %arg3: memref<1x128xf32, #tpu.memory_space<vmem>>, %arg4: memref<9x128xf32, #tpu.memory_space<vmem>>, %arg5: memref<16x128xf32, #tpu.memory_space<vmem>>, %arg6: memref<128x128xf32, #tpu.memory_space<vmem>>, %arg7: memref<25x128xf32, #tpu.memory_space<vmem>>, %arg8: memref<16x128xf32, #tpu.memory_space<vmem>>, %arg9: memref<128x128xf32, #tpu.memory_space<vmem>>, %arg10: memref<1x5x16x128xf32, #tpu.memory_space<vmem>>, %arg11: memref<20x160xf32, #tpu.memory_space<vmem>>, %arg12: memref<20x160xf32, #tpu.memory_space<vmem>>) attributes {dimension_semantics = [#tpu.dimension_semantics<parallel>], iteration_bounds = array<i64: 2>, scalar_prefetch = 0 : i64, scratch_operands = 2 : i64, tpu.core_type = #tpu.core_type<tc>, window_params = [{transform_indices = @transform_0, window_bounds = array<i64: 1, 32, 64>}, {pipeline_mode = #tpu.pipeline_mode<synchronous>, transform_indices = @transform_1, window_bounds = array<i64: 64, 128>}, {pipeline_mode = #tpu.pipeline_mode<synchronous>, transform_indices = @transform_2, window_bounds = array<i64: 1, 128>}, {pipeline_mode = #tpu.pipeline_mode<synchronous>, transform_indices = @transform_3, window_bounds = array<i64: 9, 128>}, {pipeline_mode = #tpu.pipeline_mode<synchronous>, transform_indices = @transform_4, window_bounds = array<i64: 16, 128>}, {pipeline_mode = #tpu.pipeline_mode<synchronous>, transform_indices = @transform_5, window_bounds = array<i64: 128, 128>}, {pipeline_mode = #tpu.pipeline_mode<synchronous>, transform_indices = @transform_6, window_bounds = array<i64: 25, 128>}, {pipeline_mode = #tpu.pipeline_mode<synchronous>, transform_indices = @transform_7, window_bounds = array<i64: 16, 128>}, {pipeline_mode = #tpu.pipeline_mode<synchronous>, transform_indices = @transform_8, window_bounds = array<i64: 128, 128>}, {transform_indices = @transform_9, window_bounds = array<i64: 1, 5, 16, 128>}]} {
    %cst = arith.constant 0.000000e+00 : f32
    %0 = vector.broadcast %cst : f32 to vector<2x160xf32>
    %c0 = arith.constant 0 : index
    %c0_0 = arith.constant 0 : index
    %1 = vector.load %arg11[%c0, %c0_0] : memref<20x160xf32, #tpu.memory_space<vmem>>, vector<2x160xf32>
    tpu.vector_store %arg11[%c0, %c0_0], %0 {strides = array<i32>} : memref<20x160xf32, #tpu.memory_space<vmem>>, vector<2x160xf32>,
    %cst_1 = arith.constant 0.000000e+00 : f32
    %2 = vector.broadcast %cst_1 : f32 to vector<2x160xf32>
    %c18 = arith.constant 18 : index
    %c0_2 = arith.constant 0 : index
    %3 = vector.load %arg11[%c18, %c0_2] : memref<20x160xf32, #tpu.memory_space<vmem>>, vector<2x160xf32>
    tpu.vector_store %arg11[%c18, %c0_2], %2 {strides = array<i32>} : memref<20x160xf32, #tpu.memory_space<vmem>>, vector<2x160xf32>,
    %cst_3 = arith.constant 0.000000e+00 : f32
    %4 = vector.broadcast %cst_3 : f32 to vector<16x16xf32>
    %c2 = arith.constant 2 : index
    %c0_4 = arith.constant 0 : index
    %5 = vector.load %arg11[%c2, %c0_4] : memref<20x160xf32, #tpu.memory_space<vmem>>, vector<16x16xf32>
    tpu.vector_store %arg11[%c2, %c0_4], %4 {strides = array<i32>} : memref<20x160xf32, #tpu.memory_space<vmem>>, vector<16x16xf32>,
    %cst_5 = arith.constant 0.000000e+00 : f32
    %6 = vector.broadcast %cst_5 : f32 to vector<16x16xf32>
    %c2_6 = arith.constant 2 : index
    %c144 = arith.constant 144 : index
    %7 = vector.load %arg11[%c2_6, %c144] : memref<20x160xf32, #tpu.memory_space<vmem>>, vector<16x16xf32>
    tpu.vector_store %arg11[%c2_6, %c144], %6 {strides = array<i32>} : memref<20x160xf32, #tpu.memory_space<vmem>>, vector<16x16xf32>,
    %cst_7 = arith.constant 0.000000e+00 : f32
    %8 = vector.broadcast %cst_7 : f32 to vector<2x160xf32>
    %c0_8 = arith.constant 0 : index
    %c0_9 = arith.constant 0 : index
    %9 = vector.load %arg12[%c0_8, %c0_9] : memref<20x160xf32, #tpu.memory_space<vmem>>, vector<2x160xf32>
    tpu.vector_store %arg12[%c0_8, %c0_9], %8 {strides = array<i32>} : memref<20x160xf32, #tpu.memory_space<vmem>>, vector<2x160xf32>,
    %cst_10 = arith.constant 0.000000e+00 : f32
    %10 = vector.broadcast %cst_10 : f32 to vector<2x160xf32>
    %c18_11 = arith.constant 18 : index
    %c0_12 = arith.constant 0 : index
    %11 = vector.load %arg12[%c18_11, %c0_12] : memref<20x160xf32, #tpu.memory_space<vmem>>, vector<2x160xf32>
    tpu.vector_store %arg12[%c18_11, %c0_12], %10 {strides = array<i32>} : memref<20x160xf32, #tpu.memory_space<vmem>>, vector<2x160xf32>,
    %cst_13 = arith.constant 0.000000e+00 : f32
    %12 = vector.broadcast %cst_13 : f32 to vector<16x16xf32>
    %c2_14 = arith.constant 2 : index
    %c0_15 = arith.constant 0 : index
    %13 = vector.load %arg12[%c2_14, %c0_15] : memref<20x160xf32, #tpu.memory_space<vmem>>, vector<16x16xf32>
    tpu.vector_store %arg12[%c2_14, %c0_15], %12 {strides = array<i32>} : memref<20x160xf32, #tpu.memory_space<vmem>>, vector<16x16xf32>,
    %cst_16 = arith.constant 0.000000e+00 : f32
    %14 = vector.broadcast %cst_16 : f32 to vector<16x16xf32>
    %c2_17 = arith.constant 2 : index
    %c144_18 = arith.constant 144 : index
    %15 = vector.load %arg12[%c2_17, %c144_18] : memref<20x160xf32, #tpu.memory_space<vmem>>, vector<16x16xf32>
    tpu.vector_store %arg12[%c2_17, %c144_18], %14 {strides = array<i32>} : memref<20x160xf32, #tpu.memory_space<vmem>>, vector<16x16xf32>,
    %c0_19 = arith.constant 0 : index
    %c0_20 = arith.constant 0 : index
    %c0_21 = arith.constant 0 : index
    %16 = vector.load %arg1[%c0_19, %c0_20, %c0_21] : memref<1x32x64xf32, #tpu.memory_space<vmem>>, vector<1x32x64xf32>
    %17 = vector.shape_cast %16 : vector<1x32x64xf32> to vector<32x64xf32>
    %c0_22 = arith.constant 0 : index
    %c0_23 = arith.constant 0 : index
    %18 = vector.load %arg2[%c0_22, %c0_23] : memref<64x128xf32, #tpu.memory_space<vmem>>, vector<64x128xf32>
    %cst_24 = arith.constant dense<0.000000e+00> : vector<32x128xf32>
    %19 = tpu.matmul %17, %18, %cst_24 {dimension_numbers = #tpu.dot_dimension_numbers<[1], [0], [0], [1], [0, 0, 1, 1], [], []>} : vector<32x64xf32>, vector<64x128xf32>, vector<32x128xf32> -> vector<32x128xf32>
    %c0_25 = arith.constant 0 : index
    %c0_26 = arith.constant 0 : index
    %20 = vector.load %arg3[%c0_25, %c0_26] : memref<1x128xf32, #tpu.memory_space<vmem>>, vector<1x128xf32>
    %21 = vector.broadcast %20 : vector<1x128xf32> to vector<32x128xf32>
    %22 = arith.addf %19, %21 : vector<32x128xf32>
    %cst_27 = arith.constant 0.000000e+00 : f32
    %23 = vector.broadcast %cst_27 : f32 to vector<32x128xf32>
    %24 = arith.maximumf %22, %23 : vector<32x128xf32>
    %25 = vector.extract_strided_slice %24 {offsets = [0, 0], sizes = [16, 128], strides = [1, 1]} : vector<32x128xf32> to vector<16x128xf32>
    %26 = vector.extract_strided_slice %24 {offsets = [16, 0], sizes = [16, 128], strides = [1, 1]} : vector<32x128xf32> to vector<16x128xf32>
    %c2_28 = arith.constant 2 : index
    %c16 = arith.constant 16 : index
    %27 = vector.load %arg11[%c2_28, %c16] : memref<20x160xf32, #tpu.memory_space<vmem>>, vector<16x128xf32>
    tpu.vector_store %arg11[%c2_28, %c16], %25 {strides = array<i32>} : memref<20x160xf32, #tpu.memory_space<vmem>>, vector<16x128xf32>,
    %c2_29 = arith.constant 2 : index
    %c16_30 = arith.constant 16 : index
    %28 = vector.load %arg12[%c2_29, %c16_30] : memref<20x160xf32, #tpu.memory_space<vmem>>, vector<16x128xf32>
    tpu.vector_store %arg12[%c2_29, %c16_30], %26 {strides = array<i32>} : memref<20x160xf32, #tpu.memory_space<vmem>>, vector<16x128xf32>,
    %c0_31 = arith.constant 0 : index
    %c0_32 = arith.constant 0 : index
    %29 = vector.load %arg4[%c0_31, %c0_32] : memref<9x128xf32, #tpu.memory_space<vmem>>, vector<9x128xf32>
    %c0_33 = arith.constant 0 : index
    %c0_34 = arith.constant 0 : index
    %30 = vector.load %arg7[%c0_33, %c0_34] : memref<25x128xf32, #tpu.memory_space<vmem>>, vector<25x128xf32>
    %cst_35 = arith.constant 0.000000e+00 : f32
    %31 = vector.broadcast %cst_35 : f32 to vector<16x128xf32>
    %cst_36 = arith.constant 0.000000e+00 : f32
    %32 = vector.broadcast %cst_36 : f32 to vector<16x128xf32>
    %c1 = arith.constant 1 : index
    %c8 = arith.constant 8 : index
    %33 = vector.load %arg11[%c1, %c8] : memref<20x160xf32, #tpu.memory_space<vmem>>, vector<16x128xf32>
    %34 = arith.addf %31, %33 : vector<16x128xf32>
    %35 = vector.extract_strided_slice %29 {offsets = [0, 0], sizes = [1, 128], strides = [1, 1]} : vector<9x128xf32> to vector<1x128xf32>
    %36 = vector.broadcast %35 : vector<1x128xf32> to vector<16x128xf32>
    %37 = arith.mulf %33, %36 : vector<16x128xf32>
    %38 = arith.addf %32, %37 : vector<16x128xf32>
    %c1_37 = arith.constant 1 : index
    %c16_38 = arith.constant 16 : index
    %39 = vector.load %arg11[%c1_37, %c16_38] : memref<20x160xf32, #tpu.memory_space<vmem>>, vector<16x128xf32>
    %40 = arith.addf %34, %39 : vector<16x128xf32>
    %41 = vector.extract_strided_slice %29 {offsets = [1, 0], sizes = [1, 128], strides = [1, 1]} : vector<9x128xf32> to vector<1x128xf32>
    %42 = vector.broadcast %41 : vector<1x128xf32> to vector<16x128xf32>
    %43 = arith.mulf %39, %42 : vector<16x128xf32>
    %44 = arith.addf %38, %43 : vector<16x128xf32>
    %c1_39 = arith.constant 1 : index
    %c24 = arith.constant 24 : index
    %45 = vector.load %arg11[%c1_39, %c24] : memref<20x160xf32, #tpu.memory_space<vmem>>, vector<16x128xf32>
    %46 = arith.addf %40, %45 : vector<16x128xf32>
    %47 = vector.extract_strided_slice %29 {offsets = [2, 0], sizes = [1, 128], strides = [1, 1]} : vector<9x128xf32> to vector<1x128xf32>
    %48 = vector.broadcast %47 : vector<1x128xf32> to vector<16x128xf32>
    %49 = arith.mulf %45, %48 : vector<16x128xf32>
    %50 = arith.addf %44, %49 : vector<16x128xf32>
    %c2_40 = arith.constant 2 : index
    %c8_41 = arith.constant 8 : index
    %51 = vector.load %arg11[%c2_40, %c8_41] : memref<20x160xf32, #tpu.memory_space<vmem>>, vector<16x128xf32>
    %52 = arith.addf %46, %51 : vector<16x128xf32>
    %53 = vector.extract_strided_slice %29 {offsets = [3, 0], sizes = [1, 128], strides = [1, 1]} : vector<9x128xf32> to vector<1x128xf32>
    %54 = vector.broadcast %53 : vector<1x128xf32> to vector<16x128xf32>
    %55 = arith.mulf %51, %54 : vector<16x128xf32>
    %56 = arith.addf %50, %55 : vector<16x128xf32>
    %c2_42 = arith.constant 2 : index
    %c16_43 = arith.constant 16 : index
    %57 = vector.load %arg11[%c2_42, %c16_43] : memref<20x160xf32, #tpu.memory_space<vmem>>, vector<16x128xf32>
    %58 = arith.addf %52, %57 : vector<16x128xf32>
    %59 = vector.extract_strided_slice %29 {offsets = [4, 0], sizes = [1, 128], strides = [1, 1]} : vector<9x128xf32> to vector<1x128xf32>
    %60 = vector.broadcast %59 : vector<1x128xf32> to vector<16x128xf32>
    %61 = arith.mulf %57, %60 : vector<16x128xf32>
    %62 = arith.addf %56, %61 : vector<16x128xf32>
    %c2_44 = arith.constant 2 : index
    %c24_45 = arith.constant 24 : index
    %63 = vector.load %arg11[%c2_44, %c24_45] : memref<20x160xf32, #tpu.memory_space<vmem>>, vector<16x128xf32>
    %64 = arith.addf %58, %63 : vector<16x128xf32>
    %65 = vector.extract_strided_slice %29 {offsets = [5, 0], sizes = [1, 128], strides = [1, 1]} : vector<9x128xf32> to vector<1x128xf32>
    %66 = vector.broadcast %65 : vector<1x128xf32> to vector<16x128xf32>
    %67 = arith.mulf %63, %66 : vector<16x128xf32>
    %68 = arith.addf %62, %67 : vector<16x128xf32>
    %c3 = arith.constant 3 : index
    %c8_46 = arith.constant 8 : index
    %69 = vector.load %arg11[%c3, %c8_46] : memref<20x160xf32, #tpu.memory_space<vmem>>, vector<16x128xf32>
    %70 = arith.addf %64, %69 : vector<16x128xf32>
    %71 = vector.extract_strided_slice %29 {offsets = [6, 0], sizes = [1, 128], strides = [1, 1]} : vector<9x128xf32> to vector<1x128xf32>
    %72 = vector.broadcast %71 : vector<1x128xf32> to vector<16x128xf32>
    %73 = arith.mulf %69, %72 : vector<16x128xf32>
    %74 = arith.addf %68, %73 : vector<16x128xf32>
    %c3_47 = arith.constant 3 : index
    %c16_48 = arith.constant 16 : index
    %75 = vector.load %arg11[%c3_47, %c16_48] : memref<20x160xf32, #tpu.memory_space<vmem>>, vector<16x128xf32>
    %76 = arith.addf %70, %75 : vector<16x128xf32>
    %77 = vector.extract_strided_slice %29 {offsets = [7, 0], sizes = [1, 128], strides = [1, 1]} : vector<9x128xf32> to vector<1x128xf32>
    %78 = vector.broadcast %77 : vector<1x128xf32> to vector<16x128xf32>
    %79 = arith.mulf %75, %78 : vector<16x128xf32>
    %80 = arith.addf %74, %79 : vector<16x128xf32>
    %c3_49 = arith.constant 3 : index
    %c24_50 = arith.constant 24 : index
    %81 = vector.load %arg11[%c3_49, %c24_50] : memref<20x160xf32, #tpu.memory_space<vmem>>, vector<16x128xf32>
    %82 = arith.addf %76, %81 : vector<16x128xf32>
    %83 = vector.extract_strided_slice %29 {offsets = [8, 0], sizes = [1, 128], strides = [1, 1]} : vector<9x128xf32> to vector<1x128xf32>
    %84 = vector.broadcast %83 : vector<1x128xf32> to vector<16x128xf32>
    %85 = arith.mulf %81, %84 : vector<16x128xf32>
    %86 = arith.addf %80, %85 : vector<16x128xf32>
    %cst_51 = arith.constant 0.111111112 : f32
    %87 = vector.broadcast %cst_51 : f32 to vector<16x128xf32>
    %88 = arith.mulf %82, %87 : vector<16x128xf32>
    %cst_52 = arith.constant 0.000000e+00 : f32
    %89 = vector.broadcast %cst_52 : f32 to vector<16x128xf32>
    %cst_53 = arith.constant 0.000000e+00 : f32
    %90 = vector.broadcast %cst_53 : f32 to vector<16x128xf32>
    %c1_54 = arith.constant 1 : index
    %c8_55 = arith.constant 8 : index
    %91 = vector.load %arg12[%c1_54, %c8_55] : memref<20x160xf32, #tpu.memory_space<vmem>>, vector<16x128xf32>
    %92 = arith.addf %89, %91 : vector<16x128xf32>
    %93 = vector.extract_strided_slice %29 {offsets = [0, 0], sizes = [1, 128], strides = [1, 1]} : vector<9x128xf32> to vector<1x128xf32>
    %94 = vector.broadcast %93 : vector<1x128xf32> to vector<16x128xf32>
    %95 = arith.mulf %91, %94 : vector<16x128xf32>
    %96 = arith.addf %90, %95 : vector<16x128xf32>
    %c1_56 = arith.constant 1 : index
    %c16_57 = arith.constant 16 : index
    %97 = vector.load %arg12[%c1_56, %c16_57] : memref<20x160xf32, #tpu.memory_space<vmem>>, vector<16x128xf32>
    %98 = arith.addf %92, %97 : vector<16x128xf32>
    %99 = vector.extract_strided_slice %29 {offsets = [1, 0], sizes = [1, 128], strides = [1, 1]} : vector<9x128xf32> to vector<1x128xf32>
    %100 = vector.broadcast %99 : vector<1x128xf32> to vector<16x128xf32>
    %101 = arith.mulf %97, %100 : vector<16x128xf32>
    %102 = arith.addf %96, %101 : vector<16x128xf32>
    %c1_58 = arith.constant 1 : index
    %c24_59 = arith.constant 24 : index
    %103 = vector.load %arg12[%c1_58, %c24_59] : memref<20x160xf32, #tpu.memory_space<vmem>>, vector<16x128xf32>
    %104 = arith.addf %98, %103 : vector<16x128xf32>
    %105 = vector.extract_strided_slice %29 {offsets = [2, 0], sizes = [1, 128], strides = [1, 1]} : vector<9x128xf32> to vector<1x128xf32>
    %106 = vector.broadcast %105 : vector<1x128xf32> to vector<16x128xf32>
    %107 = arith.mulf %103, %106 : vector<16x128xf32>
    %108 = arith.addf %102, %107 : vector<16x128xf32>
    %c2_60 = arith.constant 2 : index
    %c8_61 = arith.constant 8 : index
    %109 = vector.load %arg12[%c2_60, %c8_61] : memref<20x160xf32, #tpu.memory_space<vmem>>, vector<16x128xf32>
    %110 = arith.addf %104, %109 : vector<16x128xf32>
    %111 = vector.extract_strided_slice %29 {offsets = [3, 0], sizes = [1, 128], strides = [1, 1]} : vector<9x128xf32> to vector<1x128xf32>
    %112 = vector.broadcast %111 : vector<1x128xf32> to vector<16x128xf32>
    %113 = arith.mulf %109, %112 : vector<16x128xf32>
    %114 = arith.addf %108, %113 : vector<16x128xf32>
    %c2_62 = arith.constant 2 : index
    %c16_63 = arith.constant 16 : index
    %115 = vector.load %arg12[%c2_62, %c16_63] : memref<20x160xf32, #tpu.memory_space<vmem>>, vector<16x128xf32>
    %116 = arith.addf %110, %115 : vector<16x128xf32>
    %117 = vector.extract_strided_slice %29 {offsets = [4, 0], sizes = [1, 128], strides = [1, 1]} : vector<9x128xf32> to vector<1x128xf32>
    %118 = vector.broadcast %117 : vector<1x128xf32> to vector<16x128xf32>
    %119 = arith.mulf %115, %118 : vector<16x128xf32>
    %120 = arith.addf %114, %119 : vector<16x128xf32>
    %c2_64 = arith.constant 2 : index
    %c24_65 = arith.constant 24 : index
    %121 = vector.load %arg12[%c2_64, %c24_65] : memref<20x160xf32, #tpu.memory_space<vmem>>, vector<16x128xf32>
    %122 = arith.addf %116, %121 : vector<16x128xf32>
    %123 = vector.extract_strided_slice %29 {offsets = [5, 0], sizes = [1, 128], strides = [1, 1]} : vector<9x128xf32> to vector<1x128xf32>
    %124 = vector.broadcast %123 : vector<1x128xf32> to vector<16x128xf32>
    %125 = arith.mulf %121, %124 : vector<16x128xf32>
    %126 = arith.addf %120, %125 : vector<16x128xf32>
    %c3_66 = arith.constant 3 : index
    %c8_67 = arith.constant 8 : index
    %127 = vector.load %arg12[%c3_66, %c8_67] : memref<20x160xf32, #tpu.memory_space<vmem>>, vector<16x128xf32>
    %128 = arith.addf %122, %127 : vector<16x128xf32>
    %129 = vector.extract_strided_slice %29 {offsets = [6, 0], sizes = [1, 128], strides = [1, 1]} : vector<9x128xf32> to vector<1x128xf32>
    %130 = vector.broadcast %129 : vector<1x128xf32> to vector<16x128xf32>
    %131 = arith.mulf %127, %130 : vector<16x128xf32>
    %132 = arith.addf %126, %131 : vector<16x128xf32>
    %c3_68 = arith.constant 3 : index
    %c16_69 = arith.constant 16 : index
    %133 = vector.load %arg12[%c3_68, %c16_69] : memref<20x160xf32, #tpu.memory_space<vmem>>, vector<16x128xf32>
    %134 = arith.addf %128, %133 : vector<16x128xf32>
    %135 = vector.extract_strided_slice %29 {offsets = [7, 0], sizes = [1, 128], strides = [1, 1]} : vector<9x128xf32> to vector<1x128xf32>
    %136 = vector.broadcast %135 : vector<1x128xf32> to vector<16x128xf32>
    %137 = arith.mulf %133, %136 : vector<16x128xf32>
    %138 = arith.addf %132, %137 : vector<16x128xf32>
    %c3_70 = arith.constant 3 : index
    %c24_71 = arith.constant 24 : index
    %139 = vector.load %arg12[%c3_70, %c24_71] : memref<20x160xf32, #tpu.memory_space<vmem>>, vector<16x128xf32>
    %140 = arith.addf %134, %139 : vector<16x128xf32>
    %141 = vector.extract_strided_slice %29 {offsets = [8, 0], sizes = [1, 128], strides = [1, 1]} : vector<9x128xf32> to vector<1x128xf32>
    %142 = vector.broadcast %141 : vector<1x128xf32> to vector<16x128xf32>
    %143 = arith.mulf %139, %142 : vector<16x128xf32>
    %144 = arith.addf %138, %143 : vector<16x128xf32>
    %cst_72 = arith.constant 0.111111112 : f32
    %145 = vector.broadcast %cst_72 : f32 to vector<16x128xf32>
    %146 = arith.mulf %140, %145 : vector<16x128xf32>
    %cst_73 = arith.constant 0.000000e+00 : f32
    %147 = vector.broadcast %cst_73 : f32 to vector<16x128xf32>
    %c0_74 = arith.constant 0 : index
    %c0_75 = arith.constant 0 : index
    %148 = vector.load %arg12[%c0_74, %c0_75] : memref<20x160xf32, #tpu.memory_space<vmem>>, vector<16x128xf32>
    %149 = vector.extract_strided_slice %30 {offsets = [0, 0], sizes = [1, 128], strides = [1, 1]} : vector<25x128xf32> to vector<1x128xf32>
    %150 = vector.broadcast %149 : vector<1x128xf32> to vector<16x128xf32>
    %151 = arith.mulf %148, %150 : vector<16x128xf32>
    %152 = arith.addf %147, %151 : vector<16x128xf32>
    %c0_76 = arith.constant 0 : index
    %c8_77 = arith.constant 8 : index
    %153 = vector.load %arg12[%c0_76, %c8_77] : memref<20x160xf32, #tpu.memory_space<vmem>>, vector<16x128xf32>
    %154 = vector.extract_strided_slice %30 {offsets = [1, 0], sizes = [1, 128], strides = [1, 1]} : vector<25x128xf32> to vector<1x128xf32>
    %155 = vector.broadcast %154 : vector<1x128xf32> to vector<16x128xf32>
    %156 = arith.mulf %153, %155 : vector<16x128xf32>
    %157 = arith.addf %152, %156 : vector<16x128xf32>
    %c0_78 = arith.constant 0 : index
    %c16_79 = arith.constant 16 : index
    %158 = vector.load %arg12[%c0_78, %c16_79] : memref<20x160xf32, #tpu.memory_space<vmem>>, vector<16x128xf32>
    %159 = vector.extract_strided_slice %30 {offsets = [2, 0], sizes = [1, 128], strides = [1, 1]} : vector<25x128xf32> to vector<1x128xf32>
    %160 = vector.broadcast %159 : vector<1x128xf32> to vector<16x128xf32>
    %161 = arith.mulf %158, %160 : vector<16x128xf32>
    %162 = arith.addf %157, %161 : vector<16x128xf32>
    %c0_80 = arith.constant 0 : index
    %c24_81 = arith.constant 24 : index
    %163 = vector.load %arg12[%c0_80, %c24_81] : memref<20x160xf32, #tpu.memory_space<vmem>>, vector<16x128xf32>
    %164 = vector.extract_strided_slice %30 {offsets = [3, 0], sizes = [1, 128], strides = [1, 1]} : vector<25x128xf32> to vector<1x128xf32>
    %165 = vector.broadcast %164 : vector<1x128xf32> to vector<16x128xf32>
    %166 = arith.mulf %163, %165 : vector<16x128xf32>
    %167 = arith.addf %162, %166 : vector<16x128xf32>
    %c0_82 = arith.constant 0 : index
    %c32 = arith.constant 32 : index
    %168 = vector.load %arg12[%c0_82, %c32] : memref<20x160xf32, #tpu.memory_space<vmem>>, vector<16x128xf32>
    %169 = vector.extract_strided_slice %30 {offsets = [4, 0], sizes = [1, 128], strides = [1, 1]} : vector<25x128xf32> to vector<1x128xf32>
    %170 = vector.broadcast %169 : vector<1x128xf32> to vector<16x128xf32>
    %171 = arith.mulf %168, %170 : vector<16x128xf32>
    %172 = arith.addf %167, %171 : vector<16x128xf32>
    %c1_83 = arith.constant 1 : index
    %c0_84 = arith.constant 0 : index
    %173 = vector.load %arg12[%c1_83, %c0_84] : memref<20x160xf32, #tpu.memory_space<vmem>>, vector<16x128xf32>
    %174 = vector.extract_strided_slice %30 {offsets = [5, 0], sizes = [1, 128], strides = [1, 1]} : vector<25x128xf32> to vector<1x128xf32>
    %175 = vector.broadcast %174 : vector<1x128xf32> to vector<16x128xf32>
    %176 = arith.mulf %173, %175 : vector<16x128xf32>
    %177 = arith.addf %172, %176 : vector<16x128xf32>
    %c1_85 = arith.constant 1 : index
    %c8_86 = arith.constant 8 : index
    %178 = vector.load %arg12[%c1_85, %c8_86] : memref<20x160xf32, #tpu.memory_space<vmem>>, vector<16x128xf32>
    %179 = vector.extract_strided_slice %30 {offsets = [6, 0], sizes = [1, 128], strides = [1, 1]} : vector<25x128xf32> to vector<1x128xf32>
    %180 = vector.broadcast %179 : vector<1x128xf32> to vector<16x128xf32>
    %181 = arith.mulf %178, %180 : vector<16x128xf32>
    %182 = arith.addf %177, %181 : vector<16x128xf32>
    %c1_87 = arith.constant 1 : index
    %c16_88 = arith.constant 16 : index
    %183 = vector.load %arg12[%c1_87, %c16_88] : memref<20x160xf32, #tpu.memory_space<vmem>>, vector<16x128xf32>
    %184 = vector.extract_strided_slice %30 {offsets = [7, 0], sizes = [1, 128], strides = [1, 1]} : vector<25x128xf32> to vector<1x128xf32>
    %185 = vector.broadcast %184 : vector<1x128xf32> to vector<16x128xf32>
    %186 = arith.mulf %183, %185 : vector<16x128xf32>
    %187 = arith.addf %182, %186 : vector<16x128xf32>
    %c1_89 = arith.constant 1 : index
    %c24_90 = arith.constant 24 : index
    %188 = vector.load %arg12[%c1_89, %c24_90] : memref<20x160xf32, #tpu.memory_space<vmem>>, vector<16x128xf32>
    %189 = vector.extract_strided_slice %30 {offsets = [8, 0], sizes = [1, 128], strides = [1, 1]} : vector<25x128xf32> to vector<1x128xf32>
    %190 = vector.broadcast %189 : vector<1x128xf32> to vector<16x128xf32>
    %191 = arith.mulf %188, %190 : vector<16x128xf32>
    %192 = arith.addf %187, %191 : vector<16x128xf32>
    %c1_91 = arith.constant 1 : index
    %c32_92 = arith.constant 32 : index
    %193 = vector.load %arg12[%c1_91, %c32_92] : memref<20x160xf32, #tpu.memory_space<vmem>>, vector<16x128xf32>
    %194 = vector.extract_strided_slice %30 {offsets = [9, 0], sizes = [1, 128], strides = [1, 1]} : vector<25x128xf32> to vector<1x128xf32>
    %195 = vector.broadcast %194 : vector<1x128xf32> to vector<16x128xf32>
    %196 = arith.mulf %193, %195 : vector<16x128xf32>
    %197 = arith.addf %192, %196 : vector<16x128xf32>
    %c2_93 = arith.constant 2 : index
    %c0_94 = arith.constant 0 : index
    %198 = vector.load %arg12[%c2_93, %c0_94] : memref<20x160xf32, #tpu.memory_space<vmem>>, vector<16x128xf32>
    %199 = vector.extract_strided_slice %30 {offsets = [10, 0], sizes = [1, 128], strides = [1, 1]} : vector<25x128xf32> to vector<1x128xf32>
    %200 = vector.broadcast %199 : vector<1x128xf32> to vector<16x128xf32>
    %201 = arith.mulf %198, %200 : vector<16x128xf32>
    %202 = arith.addf %197, %201 : vector<16x128xf32>
    %c2_95 = arith.constant 2 : index
    %c8_96 = arith.constant 8 : index
    %203 = vector.load %arg12[%c2_95, %c8_96] : memref<20x160xf32, #tpu.memory_space<vmem>>, vector<16x128xf32>
    %204 = vector.extract_strided_slice %30 {offsets = [11, 0], sizes = [1, 128], strides = [1, 1]} : vector<25x128xf32> to vector<1x128xf32>
    %205 = vector.broadcast %204 : vector<1x128xf32> to vector<16x128xf32>
    %206 = arith.mulf %203, %205 : vector<16x128xf32>
    %207 = arith.addf %202, %206 : vector<16x128xf32>
    %c2_97 = arith.constant 2 : index
    %c16_98 = arith.constant 16 : index
    %208 = vector.load %arg12[%c2_97, %c16_98] : memref<20x160xf32, #tpu.memory_space<vmem>>, vector<16x128xf32>
    %209 = vector.extract_strided_slice %30 {offsets = [12, 0], sizes = [1, 128], strides = [1, 1]} : vector<25x128xf32> to vector<1x128xf32>
    %210 = vector.broadcast %209 : vector<1x128xf32> to vector<16x128xf32>
    %211 = arith.mulf %208, %210 : vector<16x128xf32>
    %212 = arith.addf %207, %211 : vector<16x128xf32>
    %c2_99 = arith.constant 2 : index
    %c24_100 = arith.constant 24 : index
    %213 = vector.load %arg12[%c2_99, %c24_100] : memref<20x160xf32, #tpu.memory_space<vmem>>, vector<16x128xf32>
    %214 = vector.extract_strided_slice %30 {offsets = [13, 0], sizes = [1, 128], strides = [1, 1]} : vector<25x128xf32> to vector<1x128xf32>
    %215 = vector.broadcast %214 : vector<1x128xf32> to vector<16x128xf32>
    %216 = arith.mulf %213, %215 : vector<16x128xf32>
    %217 = arith.addf %212, %216 : vector<16x128xf32>
    %c2_101 = arith.constant 2 : index
    %c32_102 = arith.constant 32 : index
    %218 = vector.load %arg12[%c2_101, %c32_102] : memref<20x160xf32, #tpu.memory_space<vmem>>, vector<16x128xf32>
    %219 = vector.extract_strided_slice %30 {offsets = [14, 0], sizes = [1, 128], strides = [1, 1]} : vector<25x128xf32> to vector<1x128xf32>
    %220 = vector.broadcast %219 : vector<1x128xf32> to vector<16x128xf32>
    %221 = arith.mulf %218, %220 : vector<16x128xf32>
    %222 = arith.addf %217, %221 : vector<16x128xf32>
    %c3_103 = arith.constant 3 : index
    %c0_104 = arith.constant 0 : index
    %223 = vector.load %arg12[%c3_103, %c0_104] : memref<20x160xf32, #tpu.memory_space<vmem>>, vector<16x128xf32>
    %224 = vector.extract_strided_slice %30 {offsets = [15, 0], sizes = [1, 128], strides = [1, 1]} : vector<25x128xf32> to vector<1x128xf32>
    %225 = vector.broadcast %224 : vector<1x128xf32> to vector<16x128xf32>
    %226 = arith.mulf %223, %225 : vector<16x128xf32>
    %227 = arith.addf %222, %226 : vector<16x128xf32>
    %c3_105 = arith.constant 3 : index
    %c8_106 = arith.constant 8 : index
    %228 = vector.load %arg12[%c3_105, %c8_106] : memref<20x160xf32, #tpu.memory_space<vmem>>, vector<16x128xf32>
    %229 = vector.extract_strided_slice %30 {offsets = [16, 0], sizes = [1, 128], strides = [1, 1]} : vector<25x128xf32> to vector<1x128xf32>
    %230 = vector.broadcast %229 : vector<1x128xf32> to vector<16x128xf32>
    %231 = arith.mulf %228, %230 : vector<16x128xf32>
    %232 = arith.addf %227, %231 : vector<16x128xf32>
    %c3_107 = arith.constant 3 : index
    %c16_108 = arith.constant 16 : index
    %233 = vector.load %arg12[%c3_107, %c16_108] : memref<20x160xf32, #tpu.memory_space<vmem>>, vector<16x128xf32>
    %234 = vector.extract_strided_slice %30 {offsets = [17, 0], sizes = [1, 128], strides = [1, 1]} : vector<25x128xf32> to vector<1x128xf32>
    %235 = vector.broadcast %234 : vector<1x128xf32> to vector<16x128xf32>
    %236 = arith.mulf %233, %235 : vector<16x128xf32>
    %237 = arith.addf %232, %236 : vector<16x128xf32>
    %c3_109 = arith.constant 3 : index
    %c24_110 = arith.constant 24 : index
    %238 = vector.load %arg12[%c3_109, %c24_110] : memref<20x160xf32, #tpu.memory_space<vmem>>, vector<16x128xf32>
    %239 = vector.extract_strided_slice %30 {offsets = [18, 0], sizes = [1, 128], strides = [1, 1]} : vector<25x128xf32> to vector<1x128xf32>
    %240 = vector.broadcast %239 : vector<1x128xf32> to vector<16x128xf32>
    %241 = arith.mulf %238, %240 : vector<16x128xf32>
    %242 = arith.addf %237, %241 : vector<16x128xf32>
    %c3_111 = arith.constant 3 : index
    %c32_112 = arith.constant 32 : index
    %243 = vector.load %arg12[%c3_111, %c32_112] : memref<20x160xf32, #tpu.memory_space<vmem>>, vector<16x128xf32>
    %244 = vector.extract_strided_slice %30 {offsets = [19, 0], sizes = [1, 128], strides = [1, 1]} : vector<25x128xf32> to vector<1x128xf32>
    %245 = vector.broadcast %244 : vector<1x128xf32> to vector<16x128xf32>
    %246 = arith.mulf %243, %245 : vector<16x128xf32>
    %247 = arith.addf %242, %246 : vector<16x128xf32>
    %c4 = arith.constant 4 : index
    %c0_113 = arith.constant 0 : index
    %248 = vector.load %arg12[%c4, %c0_113] : memref<20x160xf32, #tpu.memory_space<vmem>>, vector<16x128xf32>
    %249 = vector.extract_strided_slice %30 {offsets = [20, 0], sizes = [1, 128], strides = [1, 1]} : vector<25x128xf32> to vector<1x128xf32>
    %250 = vector.broadcast %249 : vector<1x128xf32> to vector<16x128xf32>
    %251 = arith.mulf %248, %250 : vector<16x128xf32>
    %252 = arith.addf %247, %251 : vector<16x128xf32>
    %c4_114 = arith.constant 4 : index
    %c8_115 = arith.constant 8 : index
    %253 = vector.load %arg12[%c4_114, %c8_115] : memref<20x160xf32, #tpu.memory_space<vmem>>, vector<16x128xf32>
    %254 = vector.extract_strided_slice %30 {offsets = [21, 0], sizes = [1, 128], strides = [1, 1]} : vector<25x128xf32> to vector<1x128xf32>
    %255 = vector.broadcast %254 : vector<1x128xf32> to vector<16x128xf32>
    %256 = arith.mulf %253, %255 : vector<16x128xf32>
    %257 = arith.addf %252, %256 : vector<16x128xf32>
    %c4_116 = arith.constant 4 : index
    %c16_117 = arith.constant 16 : index
    %258 = vector.load %arg12[%c4_116, %c16_117] : memref<20x160xf32, #tpu.memory_space<vmem>>, vector<16x128xf32>
    %259 = vector.extract_strided_slice %30 {offsets = [22, 0], sizes = [1, 128], strides = [1, 1]} : vector<25x128xf32> to vector<1x128xf32>
    %260 = vector.broadcast %259 : vector<1x128xf32> to vector<16x128xf32>
    %261 = arith.mulf %258, %260 : vector<16x128xf32>
    %262 = arith.addf %257, %261 : vector<16x128xf32>
    %c4_118 = arith.constant 4 : index
    %c24_119 = arith.constant 24 : index
    %263 = vector.load %arg12[%c4_118, %c24_119] : memref<20x160xf32, #tpu.memory_space<vmem>>, vector<16x128xf32>
    %264 = vector.extract_strided_slice %30 {offsets = [23, 0], sizes = [1, 128], strides = [1, 1]} : vector<25x128xf32> to vector<1x128xf32>
    %265 = vector.broadcast %264 : vector<1x128xf32> to vector<16x128xf32>
    %266 = arith.mulf %263, %265 : vector<16x128xf32>
    %267 = arith.addf %262, %266 : vector<16x128xf32>
    %c4_120 = arith.constant 4 : index
    %c32_121 = arith.constant 32 : index
    %268 = vector.load %arg12[%c4_120, %c32_121] : memref<20x160xf32, #tpu.memory_space<vmem>>, vector<16x128xf32>
    %269 = vector.extract_strided_slice %30 {offsets = [24, 0], sizes = [1, 128], strides = [1, 1]} : vector<25x128xf32> to vector<1x128xf32>
    %270 = vector.broadcast %269 : vector<1x128xf32> to vector<16x128xf32>
    %271 = arith.mulf %268, %270 : vector<16x128xf32>
    %272 = arith.addf %267, %271 : vector<16x128xf32>
    %c0_122 = arith.constant 0 : index
    %c0_123 = arith.constant 0 : index
    %273 = vector.load %arg5[%c0_122, %c0_123] : memref<16x128xf32, #tpu.memory_space<vmem>>, vector<16x128xf32>
    %274 = arith.addf %86, %273 : vector<16x128xf32>
    %c0_124 = arith.constant 0 : index
    %c0_125 = arith.constant 0 : index
    %275 = vector.load %arg5[%c0_124, %c0_125] : memref<16x128xf32, #tpu.memory_space<vmem>>, vector<16x128xf32>
    %276 = arith.addf %144, %275 : vector<16x128xf32>
    %c0_126 = arith.constant 0 : index
    %c0_127 = arith.constant 0 : index
    %277 = vector.load %arg8[%c0_126, %c0_127] : memref<16x128xf32, #tpu.memory_space<vmem>>, vector<16x128xf32>
    %278 = arith.addf %272, %277 : vector<16x128xf32>
    %279 = tpu.concatenate %274, %276 in 0 : vector<16x128xf32>, vector<16x128xf32> -> vector<32x128xf32>
    %c0_128 = arith.constant 0 : index
    %c0_129 = arith.constant 0 : index
    %280 = vector.load %arg6[%c0_128, %c0_129] : memref<128x128xf32, #tpu.memory_space<vmem>>, vector<128x128xf32>
    %cst_130 = arith.constant dense<0.000000e+00> : vector<32x128xf32>
    %281 = tpu.matmul %279, %280, %cst_130 {dimension_numbers = #tpu.dot_dimension_numbers<[1], [0], [0], [1], [0, 0, 1, 1], [], []>} : vector<32x128xf32>, vector<128x128xf32>, vector<32x128xf32> -> vector<32x128xf32>
    %cst_131 = arith.constant 0.000000e+00 : f32
    %282 = vector.broadcast %cst_131 : f32 to vector<32x128xf32>
    %283 = arith.maximumf %281, %282 : vector<32x128xf32>
    %284 = vector.extract_strided_slice %283 {offsets = [0, 0], sizes = [16, 128], strides = [1, 1]} : vector<32x128xf32> to vector<16x128xf32>
    %285 = vector.extract_strided_slice %283 {offsets = [16, 0], sizes = [16, 128], strides = [1, 1]} : vector<32x128xf32> to vector<16x128xf32>
    %c0_132 = arith.constant 0 : index
    %c0_133 = arith.constant 0 : index
    %286 = vector.load %arg9[%c0_132, %c0_133] : memref<128x128xf32, #tpu.memory_space<vmem>>, vector<128x128xf32>
    %cst_134 = arith.constant dense<0.000000e+00> : vector<16x128xf32>
    %287 = tpu.matmul %278, %286, %cst_134 {dimension_numbers = #tpu.dot_dimension_numbers<[1], [0], [0], [1], [0, 0, 1, 1], [], []>} : vector<16x128xf32>, vector<128x128xf32>, vector<16x128xf32> -> vector<16x128xf32>
    %cst_135 = arith.constant 0.000000e+00 : f32
    %288 = vector.broadcast %cst_135 : f32 to vector<16x128xf32>
    %289 = arith.maximumf %287, %288 : vector<16x128xf32>
    %290 = vector.shape_cast %26 : vector<16x128xf32> to vector<1x1x16x128xf32>
    %c0_136 = arith.constant 0 : index
    %c0_137 = arith.constant 0 : index
    %c0_138 = arith.constant 0 : index
    %c0_139 = arith.constant 0 : index
    %291 = vector.load %arg10[%c0_136, %c0_137, %c0_138, %c0_139] : memref<1x5x16x128xf32, #tpu.memory_space<vmem>>, vector<1x1x16x128xf32>
    tpu.vector_store %arg10[%c0_136, %c0_137, %c0_138, %c0_139], %290 {strides = array<i32>} : memref<1x5x16x128xf32, #tpu.memory_space<vmem>>, vector<1x1x16x128xf32>,
    %292 = arith.addf %284, %25 : vector<16x128xf32>
    %293 = vector.shape_cast %292 : vector<16x128xf32> to vector<1x1x16x128xf32>
    %c0_140 = arith.constant 0 : index
    %c1_141 = arith.constant 1 : index
    %c0_142 = arith.constant 0 : index
    %c0_143 = arith.constant 0 : index
    %294 = vector.load %arg10[%c0_140, %c1_141, %c0_142, %c0_143] : memref<1x5x16x128xf32, #tpu.memory_space<vmem>>, vector<1x1x16x128xf32>
    tpu.vector_store %arg10[%c0_140, %c1_141, %c0_142, %c0_143], %293 {strides = array<i32>} : memref<1x5x16x128xf32, #tpu.memory_space<vmem>>, vector<1x1x16x128xf32>,
    %295 = arith.addf %285, %289 : vector<16x128xf32>
    %296 = vector.shape_cast %295 : vector<16x128xf32> to vector<1x1x16x128xf32>
    %c0_144 = arith.constant 0 : index
    %c2_145 = arith.constant 2 : index
    %c0_146 = arith.constant 0 : index
    %c0_147 = arith.constant 0 : index
    %297 = vector.load %arg10[%c0_144, %c2_145, %c0_146, %c0_147] : memref<1x5x16x128xf32, #tpu.memory_space<vmem>>, vector<1x1x16x128xf32>
    tpu.vector_store %arg10[%c0_144, %c2_145, %c0_146, %c0_147], %296 {strides = array<i32>} : memref<1x5x16x128xf32, #tpu.memory_space<vmem>>, vector<1x1x16x128xf32>,
    %298 = arith.addf %88, %26 : vector<16x128xf32>
    %299 = vector.shape_cast %298 : vector<16x128xf32> to vector<1x1x16x128xf32>
    %c0_148 = arith.constant 0 : index
    %c3_149 = arith.constant 3 : index
    %c0_150 = arith.constant 0 : index
    %c0_151 = arith.constant 0 : index
    %300 = vector.load %arg10[%c0_148, %c3_149, %c0_150, %c0_151] : memref<1x5x16x128xf32, #tpu.memory_space<vmem>>, vector<1x1x16x128xf32>
    tpu.vector_store %arg10[%c0_148, %c3_149, %c0_150, %c0_151], %299 {strides = array<i32>} : memref<1x5x16x128xf32, #tpu.memory_space<vmem>>, vector<1x1x16x128xf32>,
    %cst_152 = arith.constant 2.000000e+00 : f32
    %301 = vector.broadcast %cst_152 : f32 to vector<16x128xf32>
    %302 = arith.mulf %301, %146 : vector<16x128xf32>
    %303 = vector.shape_cast %302 : vector<16x128xf32> to vector<1x1x16x128xf32>
    %c0_153 = arith.constant 0 : index
    %c4_154 = arith.constant 4 : index
    %c0_155 = arith.constant 0 : index
    %c0_156 = arith.constant 0 : index
    %304 = vector.load %arg10[%c0_153, %c4_154, %c0_155, %c0_156] : memref<1x5x16x128xf32, #tpu.memory_space<vmem>>, vector<1x1x16x128xf32>
    tpu.vector_store %arg10[%c0_153, %c4_154, %c0_155, %c0_156], %303 {strides = array<i32>} : memref<1x5x16x128xf32, #tpu.memory_space<vmem>>, vector<1x1x16x128xf32>,
    return
  }
  func.func @transform_0(%arg0: i32) -> (i32, i32, i32) {
    %c0_i32 = arith.constant 0 : i32
    %c0_i32_0 = arith.constant 0 : i32
    %c0_i32_1 = arith.constant 0 : i32
    return %arg0, %c0_i32, %c0_i32_0 : i32, i32, i32
  }
  func.func @transform_1(%arg0: i32) -> (i32, i32) {
    %c0_i32 = arith.constant 0 : i32
    %c0_i32_0 = arith.constant 0 : i32
    %c0_i32_1 = arith.constant 0 : i32
    return %c0_i32, %c0_i32_0 : i32, i32
  }
  func.func @transform_2(%arg0: i32) -> (i32, i32) {
    %c0_i32 = arith.constant 0 : i32
    %c0_i32_0 = arith.constant 0 : i32
    %c0_i32_1 = arith.constant 0 : i32
    return %c0_i32, %c0_i32_0 : i32, i32
  }
  func.func @transform_3(%arg0: i32) -> (i32, i32) {
    %c0_i32 = arith.constant 0 : i32
    %c0_i32_0 = arith.constant 0 : i32
    %c0_i32_1 = arith.constant 0 : i32
    return %c0_i32, %c0_i32_0 : i32, i32
  }
  func.func @transform_4(%arg0: i32) -> (i32, i32) {
    %c0_i32 = arith.constant 0 : i32
    %c0_i32_0 = arith.constant 0 : i32
    %c0_i32_1 = arith.constant 0 : i32
    return %c0_i32, %c0_i32_0 : i32, i32
  }
  func.func @transform_5(%arg0: i32) -> (i32, i32) {
    %c0_i32 = arith.constant 0 : i32
    %c0_i32_0 = arith.constant 0 : i32
    %c0_i32_1 = arith.constant 0 : i32
    return %c0_i32, %c0_i32_0 : i32, i32
  }
  func.func @transform_6(%arg0: i32) -> (i32, i32) {
    %c0_i32 = arith.constant 0 : i32
    %c0_i32_0 = arith.constant 0 : i32
    %c0_i32_1 = arith.constant 0 : i32
    return %c0_i32, %c0_i32_0 : i32, i32
  }
  func.func @transform_7(%arg0: i32) -> (i32, i32) {
    %c0_i32 = arith.constant 0 : i32
    %c0_i32_0 = arith.constant 0 : i32
    %c0_i32_1 = arith.constant 0 : i32
    return %c0_i32, %c0_i32_0 : i32, i32
  }
  func.func @transform_8(%arg0: i32) -> (i32, i32) {
    %c0_i32 = arith.constant 0 : i32
    %c0_i32_0 = arith.constant 0 : i32
    %c0_i32_1 = arith.constant 0 : i32
    return %c0_i32, %c0_i32_0 : i32, i32
  }
  func.func @transform_9(%arg0: i32) -> (i32, i32, i32, i32) {
    %c0_i32 = arith.constant 0 : i32
    %c0_i32_0 = arith.constant 0 : i32
    %c0_i32_1 = arith.constant 0 : i32
    %c0_i32_2 = arith.constant 0 : i32
    return %arg0, %c0_i32, %c0_i32_0, %c0_i32_1 : i32, i32, i32, i32
  }
}

</mosaic_0001>

<bundles_post_ra>
// kernel: tpu_custom_call.1
= control target key start
LH: loop header
LB: loop body
LE: loop exit
PB: predicated region body
PF: predicated region fallthrough
CT: control target
= control target key end

     0   :  { %s6839_s0 = inlined_call_operand.hbm [shape: f32[2,32,64], index: 0, kind: input, shape index: {}]   ;;  %s6840_s1 = inlined_call_operand.hbm [shape: f32[64,128], index: 1, kind: input, shape index: {}]   ;;  %s6841_s2 = inlined_call_operand.vmem [shape: f32[1,128], index: 2, kind: input, shape index: {}]   ;;  %s6842_s3 = inlined_call_operand.hbm [shape: f32[9,128], index: 3, kind: input, shape index: {}]   ;;  %s6843_s4 = inlined_call_operand.hbm [shape: f32[16,128], index: 4, kind: input, shape index: {}]   ;;  %s6844_s5 = inlined_call_operand.hbm [shape: f32[128,128], index: 5, kind: input, shape index: {}]   ;;  %s6845_s6 = inlined_call_operand.hbm [shape: f32[25,128], index: 6, kind: input, shape index: {}]   ;;  %s6846_s7 = inlined_call_operand.vmem [shape: f32[16,128], index: 7, kind: input, shape index: {}]   ;;  %s6847_s8 = inlined_call_operand.hbm [shape: f32[128,128], index: 8, kind: input, shape index: {}]   ;;  %s6848_s9 = inlined_call_operand.hbm [shape: f32[2,5,16,128], index: 9, kind: output, shape index: {}]  }
   0x1   :  { %6973 = sst [smem:[#allocation134_spill]] %s6840_s1 }
   0x2   :  { %6974 = sst [smem:[#allocation135_spill]] %s6848_s9 }
   0x3   :  { %14 = vsyncpa [#allocation5], 0 }
   0x4   :  { %16 = vsyncpa [#allocation5 + $0x1], 0 }
   0x5   :  { %17 = vsyncpa [#allocation8], 0 }
   0x6   :  { %18 = vsyncpa [#allocation11], 0 }
   0x7   :  { %19 = vsyncpa [#allocation14], 0 }
   0x8   :  { %20 = vsyncpa [#allocation6], 0 }
   0x9   :  { %22 = vsyncpa [#allocation6 + $0x1], 0  ;;  %s4140_s30 = smov 0   ;;  %s4142_s10 = smov 0  }
   0xa   :  { %s4144_s11 = smov 0   ;;  %s4146_s12 = smov 0  }
   0xb LB: > { %s4070_s13 = smov [#allocation7]   ;;  %s4161_s15 = sadd.s32 4294967295, %s4068_s12   ;;  %s4068_s12 = sphi %s4146_s12, %s7317_s12   ;;  %s4064_s11 = sphi %s4144_s11, %s7316_s11   ;;  %s4060_s10 = sphi %s4142_s10, %s7315_s10   ;;  %s4056_s30 = sphi %s4140_s30, %s7314_s30  }
   0xc   : > { %s265_s14 = sshll.u32 %s4070_s13, 4  ;;  %p3355_p0 = scmp.ge.s32.totalorder %s4068_s12, 1  ;;  %s4166_s14 = int_to_ptr.vmem [resolvable:$true] %s265_s14 }
   0xd   : > { %p6850_p1 = scmp.eq.s32.totalorder %s4161_s15, 0  ;;  %p253_p2 = scmp.lt.s32.totalorder %s4068_s12, 3 }
   0xe   : > { %s4071_s17 = smov [#allocation10]   ;;  %s4072_s20 = smov [#allocation13]  }
   0xf   : > { %p4168_p3 = pnand %p3355_p0, %p253_p2  ;;  %s294_s18 = sshll.u32 %s4071_s17, 4  ;;  %s4181_s18 = int_to_ptr.vmem [resolvable:$true] %s294_s18 }
  0x10   : > { %s320_s21 = sshll.u32 %s4072_s20, 4  ;;  %s6977_s1 = sld [smem:[#allocation134_spill]]  ;;  %s4183_s21 = int_to_ptr.vmem [resolvable:$true] %s320_s21 }
  0x11   : > { %s6975_s16 = scalar_select %p4168_p3, 1, 0 }
  0x12   : > { %p3650_p5 = pneg %p4168_p3 }
  0x14   : > { %p4177_p6 = pnand %p3650_p5, %p6850_p1 }
  0x16   : > { %s3792_s24 = scalar_lea.hbm %s6977_s1, 1024  ;;  %p4193_p8 = pneg %p4177_p6 }
  0x17   : > { %p3793_p7 = scmp.ne.s32.totalorder %s6977_s1, %s3792_s24  ;;  %p3799_p11 = scmp.lt.u32.totalorder %s3792_s24, %s6977_s1 }
  0x19   : > { %p3795_p9 = pnand %p4193_p8, %p3793_p7 }
  0x1b   : > { %p3796_p10 = pneg %p3795_p9 }
  0x1d   : > { %p3801_p12 = pnand %p3799_p11, %p3796_p10 }
  0x1f   : > { %3804 = shalt.err (!%p3801_p12)
}
  0x20   : > { %s3805_s13 = scalar_lea.vmem %s4166_s14, 1024  ;;  %p3813_p5 = scmp.lt.s32.totalorder %s4166_s14, %s4166_s14 }
  0x21   : > { %p3806_p13 = scmp.ne.s32.totalorder %s4166_s14, %s3805_s13  ;;  %p3814_p4 = scmp.lt.s32.totalorder %s3805_s13, %s3805_s13 }
  0x23   : > { %p3808_p0 = pnand %p3806_p13, %p4193_p8  ;;  %p3815_p7 = por %p3814_p4, %p3813_p5 }
  0x25   : > { %p3809_p2 = pneg %p3808_p0 }
  0x27   : > { %p3816_p9 = pnand %p3815_p7, %p3809_p2 }
  0x29   : > { %3819 = shalt.err (!%p3816_p9)
}
  0x2a   : > { %s6852_s17 = smov 128   ;;  %s4074_s20 = smov 8  }
  0x2b   : > { %3653 = dma.hbm_to_vmem [thread:$0]  (!%p4177_p6), %s6977_s1, 1024, %s4166_s14, [#allocation8], %s6852_s17, %s6852_s17, %s4074_s20  }
  0x2c   : > { %s3820_s26 = scalar_lea.hbm %s6843_s4, 256 }
  0x2d   : > { %p3821_p4 = scmp.ne.s32.totalorder %s6843_s4, %s3820_s26  ;;  %p3827_p12 = scmp.lt.u32.totalorder %s3820_s26, %s6843_s4 }
  0x2f   : > { %p3823_p10 = pnand %p3821_p4, %p4193_p8 }
  0x31   : > { %p3824_p11 = pneg %p3823_p10 }
  0x33   : > { %p3829_p13 = pnand %p3827_p12, %p3824_p11 }
  0x35   : > { %3832 = shalt.err (!%p3829_p13)
}
  0x36   : > { %s3833_s14 = scalar_lea.vmem %s4181_s18, 256  ;;  %p3841_p7 = scmp.lt.s32.totalorder %s4181_s18, %s4181_s18 }
  0x37   : > { %p3834_p0 = scmp.ne.s32.totalorder %s4181_s18, %s3833_s14  ;;  %p3842_p9 = scmp.lt.s32.totalorder %s3833_s14, %s3833_s14 }
  0x39   : > { %p3836_p2 = pnand %p3834_p0, %p4193_p8  ;;  %p3843_p4 = por %p3842_p9, %p3841_p7 }
  0x3b   : > { %p3837_p5 = pneg %p3836_p2 }
  0x3d   : > { %p3844_p10 = pnand %p3843_p4, %p3837_p5 }
  0x3f   : > { %3847 = shalt.err (!%p3844_p10)
}
  0x40   : > { %3659 = dma.hbm_to_vmem [thread:$0]  (!%p4177_p6), %s6843_s4, 256, %s4181_s18, [#allocation11], %s6852_s17, %s6852_s17, %s4074_s20  }
  0x41   : > { %s3848_s25 = scalar_lea.hbm %s6845_s6, 512 }
  0x42   : > { %p3849_p11 = scmp.ne.s32.totalorder %s6845_s6, %s3848_s25  ;;  %p3855_p0 = scmp.lt.u32.totalorder %s3848_s25, %s6845_s6 }
  0x44   : > { %p3851_p12 = pnand %p3849_p11, %p4193_p8 }
  0x46   : > { %p3852_p13 = pneg %p3851_p12 }
  0x48   : > { %p3857_p2 = pnand %p3855_p0, %p3852_p13 }
  0x4a   : > { %3860 = shalt.err (!%p3857_p2)
}
  0x4b   : > { %s3861_s18 = scalar_lea.vmem %s4183_s21, 512  ;;  %p3869_p4 = scmp.lt.s32.totalorder %s4183_s21, %s4183_s21 }
  0x4c   : > { %p3862_p5 = scmp.ne.s32.totalorder %s4183_s21, %s3861_s18  ;;  %p3870_p10 = scmp.lt.s32.totalorder %s3861_s18, %s3861_s18 }
  0x4e   : > { %p3864_p7 = pnand %p3862_p5, %p4193_p8  ;;  %p3871_p11 = por %p3870_p10, %p3869_p4 }
  0x50   : > { %p3865_p9 = pneg %p3864_p7 }
  0x52   : > { %p3872_p12 = pnand %p3871_p11, %p3865_p9 }
  0x54   : > { %3875 = shalt.err (!%p3872_p12)
}
  0x55   : > { %3665 = dma.hbm_to_vmem [thread:$0]  (!%p4177_p6), %s6845_s6, 512, %s4183_s21, [#allocation14], %s6852_s17, %s6852_s17, %s4074_s20  }
  0x56   : > { %s4075_s22 = smov [#allocation9]   ;;  %s4076_s24 = smov [#allocation12]  }
  0x57   : > { %s281_s23 = sshll.u32 %s4075_s22, 4  ;;  %s307_s25 = sshll.u32 %s4076_s24, 4  ;;  %s282_s23 = int_to_ptr.vmem [resolvable:$true] %s281_s23  ;;  %s308_s25 = int_to_ptr.vmem [resolvable:$true] %s307_s25 }
  0x58   : > { %s3876_s29 = scalar_lea.hbm %s6842_s3, 256 }
  0x59   : > { %p3877_p13 = scmp.ne.s32.totalorder %s6842_s3, %s3876_s29  ;;  %p3883_p5 = scmp.lt.u32.totalorder %s3876_s29, %s6842_s3 }
  0x5b   : > { %p3879_p0 = pnand %p3877_p13, %p4193_p8 }
  0x5d   : > { %p3880_p2 = pneg %p3879_p0 }
  0x5f   : > { %p3885_p7 = pnand %p3883_p5, %p3880_p2 }
  0x61   : > { %3888 = shalt.err (!%p3885_p7)
}
  0x62   : > { %s3889_s21 = scalar_lea.vmem %s282_s23, 256  ;;  %p3897_p11 = scmp.lt.s32.totalorder %s282_s23, %s282_s23 }
  0x63   : > { %p3890_p9 = scmp.ne.s32.totalorder %s282_s23, %s3889_s21  ;;  %p3898_p12 = scmp.lt.s32.totalorder %s3889_s21, %s3889_s21 }
  0x65   : > { %p3892_p4 = pnand %p3890_p9, %p4193_p8  ;;  %p3899_p1 = por %p3898_p12, %p3897_p11 }
  0x67   : > { %p3893_p10 = pneg %p3892_p4 }
  0x69   : > { %p3900_p3 = pnand %p3899_p1, %p3893_p10 }
  0x6b   : > { %3903 = shalt.err (!%p3900_p3)
}
  0x6c   : > { %3656 = dma.hbm_to_vmem [thread:$0]  (!%p4177_p6), %s6842_s3, 256, %s282_s23, [#allocation8], %s6852_s17, %s6852_s17, %s4074_s20  }
  0x6d   : > { %s3904_s26 = scalar_lea.hbm %s6844_s5, 2048 }
  0x6e   : > { %p3905_p1 = scmp.ne.s32.totalorder %s6844_s5, %s3904_s26  ;;  %p3911_p0 = scmp.lt.u32.totalorder %s3904_s26, %s6844_s5 }
  0x70   : > { %p3907_p3 = pnand %p3905_p1, %p4193_p8 }
  0x72   : > { %p3908_p13 = pneg %p3907_p3 }
  0x74   : > { %p3913_p2 = pnand %p3911_p0, %p3908_p13 }
  0x76   : > { %3916 = shalt.err (!%p3913_p2)
}
  0x77   : > { %s3917_s14 = scalar_lea.vmem %s308_s25, 2048  ;;  %p3925_p4 = scmp.lt.s32.totalorder %s308_s25, %s308_s25 }
  0x78   : > { %p3918_p5 = scmp.ne.s32.totalorder %s308_s25, %s3917_s14  ;;  %p3926_p10 = scmp.lt.s32.totalorder %s3917_s14, %s3917_s14 }
  0x7a   : > { %p3920_p7 = pnand %p3918_p5, %p4193_p8  ;;  %p3927_p11 = por %p3926_p10, %p3925_p4 }
  0x7c   : > { %p3921_p9 = pneg %p3920_p7 }
  0x7e   : > { %p3928_p12 = pnand %p3927_p11, %p3921_p9 }
  0x80   : > { %3931 = shalt.err (!%p3928_p12)
}
  0x81   : > { %3662 = dma.hbm_to_vmem [thread:$0]  (!%p4177_p6), %s6844_s5, 2048, %s308_s25, [#allocation11], %s6852_s17, %s6852_s17, %s4074_s20  }
  0x82   : > { %s4077_s1 = smov [#allocation15]   ;;  %s3932_s26 = scalar_lea.hbm %s6847_s8, 2048 }
  0x83   : > { %s336_s9 = sshll.u32 %s4077_s1, 4  ;;  %p3933_p1 = scmp.ne.s32.totalorder %s6847_s8, %s3932_s26  ;;  %s337_s9 = int_to_ptr.vmem [resolvable:$true] %s336_s9 }
  0x84   : > { %p3939_p0 = scmp.lt.u32.totalorder %s3932_s26, %s6847_s8 }
  0x85   : > { %p3935_p3 = pnand %p3933_p1, %p4193_p8 }
  0x87   : > { %p3936_p13 = pneg %p3935_p3 }
  0x89   : > { %p3941_p2 = pnand %p3939_p0, %p3936_p13 }
  0x8b   : > { %3944 = shalt.err (!%p3941_p2)
}
  0x8c   : > { %s3945_s25 = scalar_lea.vmem %s337_s9, 2048  ;;  %p3953_p4 = scmp.lt.s32.totalorder %s337_s9, %s337_s9 }
  0x8d   : > { %p3946_p5 = scmp.ne.s32.totalorder %s337_s9, %s3945_s25  ;;  %p3954_p10 = scmp.lt.s32.totalorder %s3945_s25, %s3945_s25 }
  0x8f   : > { %p3948_p7 = pnand %p3946_p5, %p4193_p8  ;;  %p3955_p11 = por %p3954_p10, %p3953_p4 }
  0x91   : > { %p3949_p9 = pneg %p3948_p7 }
  0x93   : > { %p3956_p12 = pnand %p3955_p11, %p3949_p9 }
  0x95   : > { %3959 = shalt.err (!%p3956_p12)
}
  0x96   : > { %3668 = dma.hbm_to_vmem [thread:$0]  (!%p4177_p6), %s6847_s8, 2048, %s337_s9, [#allocation14], %s6852_s17, %s6852_s17, %s4074_s20  }
  0x97   : > { %s3354_s19 = sadd.s32 4294967294, %s4068_s12   ;;  %s4334_s27 = sadd.s32 1, %s4068_s12  }
  0x98   : > { %s32_s21 = ssub.s32 %s4068_s12, %s4334_s27  ;;  %s35_s1 = sadd.s32 1, %s4064_s11 }
  0x99   : > { %p33_p8 = scmp.eq.s32.totalorder %s32_s21, 0  ;;  %p42_p1 = scmp.ne.s32.totalorder %s4064_s11, %s4060_s10 }
  0x9a   : > { %p43_p3 = scmp.eq.s32.totalorder %s4068_s12, 0  ;;  %p48_p13 = scmp.ne.s32.totalorder %s4060_s10, %s4056_s30 }
  0x9b   : > { %s4345_s22 = scalar_select %p33_p8, %s4064_s11, %s35_s1  }
  0x9c   : > { %p4347_p0 = por %p43_p3, %p42_p1  ;;  %p6980_p2 = scmp.eq.s32.totalorder %s4161_s15, 0 }
  0x9d   : > { %p240_p5 = scmp.eq.s32.totalorder %s4161_s15, 1  ;;  %p246_p7 = scmp.eq.s32.totalorder %s3354_s19, 1 }
  0x9e   : > { %p4353_p6 = por %p6980_p2, %p48_p13  ;;  %p3683_p9 = scmp.lt.s32.totalorder %s4068_s12, 2 }
  0x9f   : > { %s350_s26 = sand.u32 1, %s4064_s11   ;;  %p4360_p4 = por %p240_p5, %p42_p1 }
  0xa0   : > { %p4364_p10 = por %p246_p7, %p48_p13  ;;  %s3363_s13 = sshll.u32 %s350_s26, 5 }
  0xa1   : > { %s6982_s28 = scalar_select %p4360_p4, 1, 0 }
  0xa2   : > { %s6983_s29 = scalar_select %p4364_p10, 1, 0 }
  0xa3   : > { %s3394_s18 = sshll.u32 %s4068_s12, 9  ;;  %s354_s19 = scalar_lea.vmem [#allocation4], %s3363_s13 }
  0xa4   : > { %s4372_s23 = scalar_lea.hbm %s6839_s0, %s3394_s18  ;;  %s361_s21 = sshll.u32 %s354_s19, 4  ;;  %s4374_s21 = int_to_ptr.vmem [resolvable:$true] %s361_s21 }
  0xa5   : > { %p4378_p11 = pnand %p3683_p9, %p4347_p0  ;;  %s4382_s17 = scalar_lea.sflag [#allocation5], %s350_s26 }
  0xa6   : > { %s3960_s25 = scalar_lea.hbm %s4372_s23, 512  ;;  %s3965_s24 = scalar_lea.hbm %s6839_s0, 1024 }
  0xa7   : > { %p3961_p12 = scmp.ne.s32.totalorder %s4372_s23, %s3960_s25  ;;  %p3962_p8 = pneg %p4378_p11 }
  0xa8   : > { %p3966_p13 = scmp.lt.u32.totalorder %s4372_s23, %s6839_s0  ;;  %p3967_p0 = scmp.lt.u32.totalorder %s3965_s24, %s3960_s25 }
  0xa9   : > { %p3963_p1 = pnand %p3962_p8, %p3961_p12  ;;  %p3969_p5 = scmp.lt.u32.totalorder %s3960_s25, %s4372_s23 }
  0xaa   : > { %p3968_p2 = por %p3967_p0, %p3966_p13 }
  0xab   : > { %p3964_p3 = pneg %p3963_p1 }
  0xac   : > { %p3970_p7 = por %p3969_p5, %p3968_p2 }
  0xae   : > { %p3971_p9 = pnand %p3970_p7, %p3964_p3 }
  0xb0   : > { %3974 = shalt.err (!%p3971_p9)
}
  0xb1   : > { %s3975_s26 = scalar_lea.vmem %s4374_s21, 512  ;;  %s4078_s13 = smov [#allocation4]  }
  0xb2   : > { %p3976_p12 = scmp.ne.s32.totalorder %s4374_s21, %s3975_s26  ;;  %s3980_s18 = sshll.u32 %s4078_s13, 4  ;;  %s3981_s18 = int_to_ptr.vmem [resolvable:$false] %s3980_s18 }
  0xb3   : > { %s3982_s14 = scalar_lea.vmem %s3981_s18, 1024  ;;  %p3983_p4 = scmp.lt.s32.totalorder %s4374_s21, %s3981_s18 }
  0xb4   : > { %p3978_p1 = pnand %p3976_p12, %p3962_p8  ;;  %p3984_p13 = scmp.lt.s32.totalorder %s3982_s14, %s3975_s26 }
  0xb6   : > { %p3979_p10 = pneg %p3978_p1  ;;  %p3985_p0 = por %p3984_p13, %p3983_p4 }
  0xb8   : > { %p3986_p2 = pnand %p3985_p0, %p3979_p10 }
  0xba   : > { %3989 = shalt.err (!%p3986_p2)
}
  0xbb   : > { %s6985_s25 = smov 128   ;;  %p6986_p8 = scmp.ne.s32.totalorder %s6975_s16, 0 }
  0xbc   : > { %3672 = dma.hbm_to_vmem [thread:$0]  (!%p4378_p11), %s4372_s23, 512, %s4374_s21, %s4382_s17, %s6985_s25, %s6985_s25, %s4074_s20  }
  0xbd   : > { %373 = sbr.rel (%p6986_p8) target bundleno = 1315 (0x523), region = 56 }
  0xc4   : > { %s4416_s24 = sand.u32 1, %s4060_s10  }
  0xc5   : > { %s3367_s19 = sshll.u32 %s4416_s24, 5  ;;  %s376_s26 = scalar_lea.sflag [#allocation5], %s4416_s24 }
  0xc6   : > { %s4420_s13 = scalar_lea.vmem [#allocation4], %s3367_s19 }
  0xc7   : > { %4035 = dma.done.wait (%p4353_p6), %s376_s26, 512  }
  0xc8   : > { %4037 = vsyncadd (%p4353_p6), %s376_s26, 4294966784  ;;  %p6987_p4 = scmp.eq.s32.totalorder %s4161_s15, 0 }
  0xca   : > { %4039 = dma.done.wait (%p6987_p4), [#allocation8], 1280   ;;  %p6988_p10 = pmov %p6987_p4 }
  0xcb   : > { %p6989_p11 = pmov %p6987_p4 }
  0xcc   : > { %4041 = vsyncadd (%p6988_p10), [#allocation8], 4294966016 }
  0xcd   : > { %4043 = dma.done.wait (%p6989_p11), [#allocation11], 2304   ;;  %p6990_p3 = pmov %p6987_p4 }
  0xcf   : > { %4045 = vsyncadd (%p6990_p3), [#allocation11], 4294964992  ;;  %p6991_p5 = pmov %p6990_p3 }
  0xd0   : > { %p6992_p7 = pmov %p6990_p3 }
  0xd1   : > { %4047 = dma.done.wait (%p6991_p5), [#allocation14], 2560  }
  0xd2   : > { %4049 = vsyncadd (%p6992_p7), [#allocation14], 4294964736  ;;  %v649_v0 = vlaneseq  ;;  %v470_v2 = vld [vmem:[#allocation7] sm:$0xff]  ;;  %v471_v3 = vld [vmem:[#allocation7 + $0x8] sm:$0xff]  ;;  %vm485_vm0 = vcmask 523264   ;;  %s4079_s16 = smov 16  }
  0xd3   : > { %v472_v4 = vld [vmem:[#allocation7 + $0x10] sm:$0xff]  ;;  %v3540_v5 = vpack.c.bf16 %v471_v3, %v470_v2  ;;  %v473_v6 = vld [vmem:[#allocation7 + $0x18] sm:$0xff]  ;;  %v474_v10 = vld [vmem:[#allocation7 + $0x20] sm:$0xff]  ;;  %s4080_s17 = smov 8   ;;  %s4081_s20 = smov 24   ;;  %vm2835_vm1 = vcmask 1040384  }
  0xd4   : > { %v650_v1 = vshrl.u32 %v649_v0, 7  ;;  %v3544_v9 = vpack.c.bf16 %v473_v6, %v472_v4  ;;  %v475_v11 = vld [vmem:[#allocation7 + $0x28] sm:$0xff]  ;;  %v466_v12 = vld [vmem:[%s4420_s13] sm:$0xff]  ;;  %v476_v19 = vld [vmem:[#allocation7 + $0x30] sm:$0xff]  ;;  %s4082_s9 = smov 32   ;;  %vm448_vm2 = vcmask 123904  }
  0xd5   : > { %3541 = vmatprep.subr.bf16.mxu0 %v3540_v5  ;;  %3461 = vmatprep.mubr.msk.f32.mxu0 %vm485_vm0, %v466_v12  ;;  %v631_v15 = vld [vmem:[#allocation9] sm:$0xff]  ;;  %v3548_v16 = vpack.c.bf16 %v475_v11, %v474_v10  ;;  %v477_v20 = vld [vmem:[#allocation7 + $0x38] sm:$0xff]  ;;  %v467_v31 = vld [vmem:[%s4420_s13 + $0x8] sm:$0xff]  ;;  %vm454_vm3 = vcmask 255104   ;;  %v4083_v0 = vmov 0.0   ;;  %vm444_vm4 = vcmask 130050  }
  0xd6   : > { %v4438_v7 = vsub.s32 1, %v650_v1  ;;  %v4440_v8 = vsub.s32 0, %v650_v1  ;;  %v4444_v13 = vsub.s32 3, %v650_v1  ;;  %v4446_v14 = vsub.s32 2, %v650_v1  ;;  %3543 = vmatpush3.bf16.msra.mxu0 %v3540_v5  ;;  %v633_v33 = vld [vmem:[#allocation13] sm:$0xff]  ;;  %v468_v34 = vld [vmem:[%s4420_s13 + $0x10] sm:$0xff] }
  0xd7   : > { %3545 = vmatprep.subr.bf16.mxu0 %v3544_v9  ;;  %v4454_v23 = vsub.s32 5, %v650_v1  ;;  %v4456_v24 = vsub.s32 4, %v650_v1  ;;  %v3552_v25 = vpack.c.bf16 %v477_v20, %v476_v19  ;;  %v4462_v28 = vsub.s32 7, %v650_v1  ;;  %v469_v36 = vld [vmem:[%s4420_s13 + $0x18] sm:$0xff]  ;;  %v3379_v37 = vld [vmem:[#allocation9 + $0x8] ss:$0 sm:$0xff] }
  0xd8   : > { %6993 = vst [vmem:[#allocation22_spill] sm:$0xff] %v4440_v8  ;;  %6994 = vst [vmem:[#allocation23_spill] sm:$0xff] %v4446_v14  ;;  %v706_v17 = vrot.slane %v631_v15, %v4438_v7  ;;  %v652_v18 = vrot.slane %v631_v15, %v4440_v8  ;;  %v859_v21 = vrot.slane %v631_v15, %v4444_v13  ;;  %v1099_v29 = vsub.s32 6, %v650_v1  ;;  %v634_v42 = vld [vmem:[#allocation13 + $0x8] sm:$0xff]  ;;  %v4494_v49 = vld [vmem:[#allocation13 + $0x10] sm:$0xff]  ;;  %s3620_s1 = smul.u32 80, %s4416_s24 }
  0xd9   : > { %v781_v22 = vrot.slane %v631_v15, %v4446_v14  ;;  %6995 = vst [vmem:[#allocation24_spill] sm:$0xff] %v4454_v23  ;;  %v1012_v26 = vrot.slane %v631_v15, %v4454_v23  ;;  %v928_v27 = vrot.slane %v631_v15, %v4456_v24  ;;  %6996 = vst [vmem:[#allocation25_spill] sm:$0xff] %v4462_v28  ;;  %v2831_v58 = vld [vmem:[#allocation10] sm:$0xff]  ;;  %v3380_v60 = vld [vmem:[#allocation13 + $0x18] ss:$0 sm:$0xff]  ;;  %vm450_vm5 = vcmask 261250  }
  0xda   : > { %708 = vrot.lane.b32.xlu1 %v706_v17, %s4079_s16  ;;  %654 = vrot.lane.b32.xlu0 %v652_v18, %s4080_s17  ;;  %v1169_v30 = vrot.slane %v631_v15, %v4462_v28  ;;  %v1100_v32 = vrot.slane %v631_v15, %v1099_v29  ;;  %v1926_v35 = vrot.slane %v633_v33, %v4438_v7  ;;  %v2836_v59 = vrot.slane %v2831_v58, 7  ;;  %v2832_v61 = vld [vmem:[#allocation10 + $0x8] sm:$0xff]  ;;  %v3374_v1 = vld [vmem:[%s6841_s2] ss:$0 sm:$0xff]  ;;  %s4551_s18 = scalar_lea.vmem [#allocation16], %s3620_s1  ;;  %s4084_s14 = smov 120  }
  0xdb   : > { %3547 = vmatpush3.bf16.msra.mxu0 %v3544_v9  ;;  %v1986_v38 = vrot.slane %v633_v33, %v4444_v13  ;;  %v1956_v39 = vrot.slane %v633_v33, %v4446_v14  ;;  %v2067_v40 = vrot.slane %v633_v33, %v1099_v29  ;;  %v2017_v41 = vrot.slane %v633_v33, %v4456_v24  ;;  %s4085_s25 = smov 112   ;;  %s4086_s19 = smov 104  }
  0xdc   : > { %3549 = vmatprep.subr.bf16.mxu0 %v3548_v16  ;;  %v2155_v43 = vrot.slane %v634_v42, %v4440_v8  ;;  %v2111_v44 = vrot.slane %v633_v33, %v4462_v28  ;;  %v2306_v45 = vrot.slane %v634_v42, %v4456_v24  ;;  %v2199_v46 = vrot.slane %v634_v42, %v4438_v7  ;;  %s4087_s26 = smov 96   ;;  %s3621_s23 = smul.u32 1280, %s4161_s15 }
  0xdd   : > { %v2394_v47 = vrot.slane %v634_v42, %v1099_v29  ;;  %v2262_v48 = vrot.slane %v634_v42, %v4444_v13  ;;  %v2458_v50 = vrot.slane %v4494_v49, %v4440_v8  ;;  %v2350_v51 = vrot.slane %v634_v42, %v4454_v23  ;;  %449 = vst.msk [vmem:[#allocation2 + $0x20] sm:$0x3] %vm448_vm2, %v4083_v0  ;;  %s3224_s21 = sshll.u32 %s4551_s18, 4  ;;  %s3211_s15 = scalar_lea.sflag [#allocation6], %s4416_s24  ;;  %s6792_s21 = int_to_ptr.vmem [resolvable:$true] %s3224_s21 }
  0xde   : > { %861 = vrot.lane.b32.xlu1 %v859_v21, %s4080_s17  ;;  %783 = vrot.lane.b32.xlu0 %v781_v22, %s4081_s20  ;;  %v2546_v52 = vrot.slane %v4494_v49, %v4446_v14  ;;  %v2502_v53 = vrot.slane %v4494_v49, %v4438_v7  ;;  %v2658_v54 = vrot.slane %v4494_v49, %v4454_v23  ;;  %v2837_v62 = vrot.slane %v2832_v61, 7  ;;  %p7311_p9 = scmp.ne.s32.totalorder %s6982_s28, 0  ;;  %s4088_s13 = smov [#allocation16]  }
  0xdf   : > { %3551 = vmatpush3.bf16.msra.mxu0 %v3548_v16  ;;  %v2590_v55 = vrot.slane %v4494_v49, %v4444_v13  ;;  %v2746_v56 = vrot.slane %v4494_v49, %v4462_v28  ;;  %v2702_v57 = vrot.slane %v4494_v49, %v1099_v29  ;;  %455 = vst.msk [vmem:[#allocation2 + $0x28] sm:$0x3] %vm454_vm3, %v4083_v0  ;;  %438 = vst [vmem:[#allocation2] sm:$0x3] %v4083_v0  ;;  %vm439_vm6 = vcmask 254976  }
  0xe0   : > { %3553 = vmatprep.subr.bf16.mxu0 %v3552_v25  ;;  %v2838_v63 = vsel %vm2835_vm1, %v2836_v59, %v2837_v62  ;;  %441 = vst [vmem:[#allocation2 + $0x20] sm:$0xc] %v4083_v0  ;;  %456 = vst [vmem:[#allocation3] sm:$0x3] %v4083_v0  ;;  %vm442_vm7 = vcmask 257026   ;;  %vm446_vm8 = vcmask 130048  }
  0xe1   : > { %458 = vst [vmem:[#allocation3 + $0x20] sm:$0xc] %v4083_v0  ;;  %462 = vst.msk [vmem:[#allocation3 + $0x20] sm:$0x3] %vm448_vm2, %v4083_v0  ;;  %vm452_vm9 = vcmask 261248   ;;  %vm589_vm10 = vcmask 1041408  }
  0xe2   : > { %1014 = vrot.lane.b32.xlu1 %v1012_v26, %s4081_s20  ;;  %930 = vrot.lane.b32.xlu0 %v928_v27, %s4079_s16  ;;  %465 = vst.msk [vmem:[#allocation3 + $0x28] sm:$0x3] %vm454_vm3, %v4083_v0  ;;  %vm608_vm11 = vcmask 1041536   ;;  %vm602_vm12 = vcmask 1047682   ;;  %vm605_vm13 = vcmask 1047680   ;;  %vm833_vm14 = vcmask 1046528  }
  0xe3   : > { %3555 = vmatpush3.bf16.msra.mxu0 %v3552_v25  ;;  %445 = vst.msk [vmem:[#allocation2] sm:$0xfc] %vm444_vm4, %v4083_v0  ;;  %460 = vst.msk [vmem:[#allocation3] sm:$0xfc] %vm444_vm4, %v4083_v0  ;;  %vm1074_vm15 = vcmask 1045504   ;;  %vm2445_vm3 = vcmask 1044480  }
  0xe4   : > { %451 = vst.msk [vmem:[#allocation2 + $0x8] sm:$0xfc] %vm450_vm5, %v4083_v0  ;;  %463 = vst.msk [vmem:[#allocation3 + $0x8] sm:$0xfc] %vm450_vm5, %v4083_v0  ;;  %vm2038_vm5 = vcmask 785408  }
  0xe5   : > { %440 = vst.msk [vmem:[#allocation2 + $0x8] sm:$0x3] %vm439_vm6, %v4083_v0  ;;  %457 = vst.msk [vmem:[#allocation3 + $0x8] sm:$0x3] %vm439_vm6, %v4083_v0 }
  0xe6   : > { %3462 = vmatmul.mubr.msk.f32.vlgmr.msra.gmra.mrb[0].mxu0 %vm485_vm0, %v467_v31  ;;  %1171 = vrot.lane.b32.xlu1 %v1169_v30, %s4079_s16  ;;  %443 = vst.msk [vmem:[#allocation2 + $0x28] sm:$0xc] %vm442_vm7, %v4083_v0  ;;  %459 = vst.msk [vmem:[#allocation3 + $0x28] sm:$0xc] %vm442_vm7, %v4083_v0 }
  0xe7   : > { %3464 = vmatprep.mubr.msk.f32.mxu0 %vm485_vm0, %v468_v34  ;;  %1102 = vrot.lane.b32.xlu0 %v1100_v32, %s4080_s17  ;;  %447 = vst.msk [vmem:[#allocation2 + $0x10] sm:$0xff] %vm446_vm8, %v4083_v0  ;;  %461 = vst.msk [vmem:[#allocation3 + $0x10] sm:$0xff] %vm446_vm8, %v4083_v0 }
  0xe8   : > { %453 = vst.msk [vmem:[#allocation2 + $0x18] sm:$0xff] %vm452_vm9, %v4083_v0  ;;  %464 = vst.msk [vmem:[#allocation3 + $0x18] sm:$0xff] %vm452_vm9, %v4083_v0 }
  0xea   : > { %3465 = vmatmul.mubr.msk.f32.gmra.mrb[2].mxu0 %vm485_vm0, %v469_v36  ;;  %1928 = vrot.lane.b32.xlu1 %v1926_v35, %s4080_s17  ;;  %vm2643_vm0 = vcmask 1043456  }
  0xeb   : > { %1255 = vrot.lane.b32.xlu0 %v3379_v37, %s4081_s20 }
  0xee   : > { %1988 = vrot.lane.b32.xlu1 %v1986_v38, %s4081_s20 }
  0xef   : > { %1958 = vrot.lane.b32.xlu0 %v1956_v39, %s4079_s16 }
  0xf2   : > { %2069 = vrot.lane.b32.xlu1 %v2067_v40, %s4080_s17 }
  0xf3   : > { %2019 = vrot.lane.b32.xlu0 %v2017_v41, %s4082_s9 }
  0xf6   : > { %2157 = vrot.lane.b32.xlu1 %v2155_v43, %s4081_s20 }
  0xf7   : > { %2113 = vrot.lane.b32.xlu0 %v2111_v44, %s4079_s16 }
  0xfa   : > { %2308 = vrot.lane.b32.xlu1 %v2306_v45, %s4079_s16 }
  0xfb   : > { %2201 = vrot.lane.b32.xlu0 %v2199_v46, %s4082_s9 }
  0xfe   : > { %2396 = vrot.lane.b32.xlu1 %v2394_v47, %s4082_s9 }
  0xff   : > { %2264 = vrot.lane.b32.xlu0 %v2262_v48, %s4080_s17 }
 0x102   : > { %2460 = vrot.lane.b32.xlu1 %v2458_v50, %s4080_s17 }
 0x103   : > { %2352 = vrot.lane.b32.xlu0 %v2350_v51, %s4081_s20 }
 0x106   : > { %2548 = vrot.lane.b32.xlu1 %v2546_v52, %s4081_s20 }
 0x107   : > { %2504 = vrot.lane.b32.xlu0 %v2502_v53, %s4079_s16 }
 0x10a   : > { %2660 = vrot.lane.b32.xlu1 %v2658_v54, %s4080_s17 }
 0x10b   : > { %2592 = vrot.lane.b32.xlu0 %v2590_v55, %s4082_s9 }
 0x10e   : > { %2748 = vrot.lane.b32.xlu1 %v2746_v56, %s4081_s20 }
 0x10f   : > { %2704 = vrot.lane.b32.xlu0 %v2702_v57, %s4079_s16 }
 0x112   : > { %2839 = vrot.lane.b32.xlu1 %v2836_v59, %s4080_s17 }
 0x113   : > { %2792 = vrot.lane.b32.xlu0 %v3380_v60, %s4082_s9 }
 0x116   : > { %2843 = vrot.lane.b32.xlu1 %v2837_v62, %s4080_s17 }
 0x117   : > { %2841 = vrot.lane.b32.xlu0 %v2838_v63, %s4080_s17 }
 0x14c   : > { %v4563_v22 = vpop.permute.xlu1 %708  ;;  %v4565_v25 = vpop.permute.xlu0 %654 }
 0x150   : > { %v4567_v26 = vpop.permute.xlu1 %861  ;;  %v4569_v27 = vpop.permute.xlu0 %783 }
 0x154   : > { %v4571_v29 = vpop.permute.xlu1 %1014  ;;  %v4573_v30 = vpop.permute.xlu0 %930 }
 0x158   : > { %v4575_v31 = vpop.permute.xlu1 %1171 }
 0x159   : > { %v4577_v32 = vpop.permute.xlu0 %1102 }
 0x15c   : > { %v4579_v33 = vpop.permute.xlu1 %1928 }
 0x15d   : > { %v4581_v34 = vpop.permute.xlu0 %1255 }
 0x160   : > { %v4583_v35 = vpop.permute.xlu1 %1988 }
 0x161   : > { %v4585_v36 = vpop.permute.xlu0 %1958 }
 0x164   : > { %v4587_v37 = vpop.permute.xlu1 %2069 }
 0x165   : > { %v4589_v38 = vpop.permute.xlu0 %2019 }
 0x168   : > { %v4591_v39 = vpop.permute.xlu1 %2157 }
 0x169   : > { %v4593_v40 = vpop.permute.xlu0 %2113 }
 0x16c   : > { %v4595_v41 = vpop.permute.xlu1 %2308 }
 0x16d   : > { %7001 = vst [vmem:[#allocation30_spill] sm:$0xff] %v4595_v41  ;;  %v4597_v42 = vpop.permute.xlu0 %2201 }
 0x16e   : > { %7002 = vst [vmem:[#allocation31_spill] sm:$0xff] %v4597_v42 }
 0x170   : > { %v4599_v43 = vpop.permute.xlu1 %2396 }
 0x171   : > { %7003 = vst [vmem:[#allocation32_spill] sm:$0xff] %v4599_v43  ;;  %v4601_v44 = vpop.permute.xlu0 %2264 }
 0x172   : > { %7004 = vst [vmem:[#allocation33_spill] sm:$0xff] %v4601_v44 }
 0x174   : > { %v4603_v45 = vpop.permute.xlu1 %2460 }
 0x175   : > { %7005 = vst [vmem:[#allocation34_spill] sm:$0xff] %v4603_v45  ;;  %v4605_v46 = vpop.permute.xlu0 %2352 }
 0x176   : > { %7006 = vst [vmem:[#allocation35_spill] sm:$0xff] %v4605_v46 }
 0x178   : > { %v4609_v50 = vpop.permute.xlu1 %2548 }
 0x179   : > { %7007 = vst [vmem:[#allocation36_spill] sm:$0xff] %v4609_v50  ;;  %v4611_v51 = vpop.permute.xlu0 %2504 }
 0x17a   : > { %7008 = vst [vmem:[#allocation37_spill] sm:$0xff] %v4611_v51 }
 0x17c   : > { %v4620_v53 = vpop.permute.xlu1 %2660 }
 0x17d   : > { %7010 = vst [vmem:[#allocation39_spill] sm:$0xff] %v4620_v53  ;;  %v4622_v54 = vpop.permute.xlu0 %2592 }
 0x17e   : > { %7011 = vst [vmem:[#allocation40_spill] sm:$0xff] %v4622_v54 }
 0x180   : > { %v4624_v55 = vpop.permute.xlu1 %2748 }
 0x181   : > { %7012 = vst [vmem:[#allocation41_spill] sm:$0xff] %v4624_v55  ;;  %v4626_v56 = vpop.permute.xlu0 %2704 }
 0x182   : > { %7013 = vst [vmem:[#allocation42_spill] sm:$0xff] %v4626_v56 }
 0x184   : > { %v4628_v57 = vpop.permute.xlu1 %2839 }
 0x185   : > { %7014 = vst [vmem:[#allocation43_spill] sm:$0xff] %v4628_v57  ;;  %v4630_v58 = vpop.permute.xlu0 %2792 }
 0x186   : > { %7015 = vst [vmem:[#allocation44_spill] sm:$0xff] %v4630_v58 }
 0x188   : > { %v4632_v59 = vpop.permute.xlu1 %2843 }
 0x189   : > { %7016 = vst [vmem:[#allocation45_spill] sm:$0xff] %v4632_v59  ;;  %v4634_v60 = vpop.permute.xlu0 %2841 }
 0x18a   : > { %7017 = vst [vmem:[#allocation46_spill] sm:$0xff] %v4634_v60 }
 0x1b9   : > { %v3463_v2 = vpop.f32.mrb[0].mxu0 }
 0x1ba   : > { %v4534_v3 = vadd.f32 %v3463_v2, %v3374_v1  ;;  %v564_v4 = vpop.f32.mrb[1].mxu0 }
 0x1bb   : > { %v4536_v5 = vadd.f32 %v3374_v1, %v564_v4 }
 0x1bc   : > { %6997 = vst [vmem:[#allocation26_spill] sm:$0xff] %v4534_v3  ;;  %v6855_v6 = vmax.f32 %v4534_v3, 0.0 }
 0x1bd   : > { %6998 = vst [vmem:[#allocation27_spill] sm:$0xff] %v4536_v5  ;;  %v6854_v7 = vmax.f32 %v4536_v5, 0.0  ;;  %v3466_v9 = vpop.f32.mrb[2].mxu0 }
 0x1be   : > { %v591_v10 = vrot.slane %v6855_v6, 6  ;;  %v580_v11 = vadd.f32 %v3466_v9, %v3374_v1  ;;  %v574_v12 = vpop.f32.mrb[3].mxu0 }
 0x1bf   : > { %v590_v13 = vrot.slane %v6854_v7, 6  ;;  %v575_v15 = vadd.f32 %v3374_v1, %v574_v12 }
 0x1c0   : > { %v4545_v16 = vmax.f32 %v580_v11, 0.0  ;;  %597 = vrot.lane.b32.xlu1 %v591_v10, %s4079_s16 }
 0x1c1   : > { %v4548_v17 = vmax.f32 %v575_v15, 0.0  ;;  %593 = vrot.lane.b32.xlu0 %v590_v13, %s4079_s16  ;;  %v592_v20 = vsel %vm589_vm10, %v590_v13, %v591_v10 }
 0x1c2   : > { %6999 = vst [vmem:[#allocation28_spill] sm:$0xff] %v4545_v16  ;;  %3119 = vst [vmem:[%s4551_s18 + $0x8] sm:$0xff] %v4545_v16  ;;  %v614_v18 = vrot.slane %v4545_v16, 6  ;;  %v6856_v47 = vrot.slane %v4545_v16, 7 }
 0x1c3   : > { %7000 = vst [vmem:[#allocation29_spill] sm:$0xff] %v4548_v17  ;;  %3118 = vst [vmem:[%s4551_s18] sm:$0xff] %v4548_v17  ;;  %v613_v19 = vrot.slane %v4548_v17, 6  ;;  %v6857_v48 = vrot.slane %v4548_v17, 7 }
 0x1c4   : > { %620 = vrot.lane.b32.xlu1 %v614_v18, %s4079_s16 }
 0x1c5   : > { %595 = vrot.lane.b32.xlu0 %v592_v20, %s4079_s16  ;;  %v615_v21 = vsel %vm589_vm10, %v613_v19, %v614_v18  ;;  %v4618_v52 = vsel %vm2835_vm1, %v6857_v48, %v6856_v47  ;;  %vm687_vm1 = vcmask 982016  }
 0x1c6   : > { %7009 = vst [vmem:[#allocation38_spill] sm:$0xff] %v4618_v52 }
 0x1c8   : > { %616 = vrot.lane.b32.xlu1 %v613_v19, %s4079_s16 }
 0x1c9   : > { %618 = vrot.lane.b32.xlu0 %v615_v21, %s4079_s16  ;;  %s3994_s16 = sshll.u32 %s4088_s13, 4  ;;  %s3995_s16 = int_to_ptr.vmem [resolvable:$false] %s3994_s16 }
 0x1ca   : > { %s3996_s20 = scalar_lea.vmem %s3995_s16, 2560  ;;  %p3997_p13 = scmp.lt.s32.totalorder %s6792_s21, %s3995_s16 }
 0x232   : > { %v598_v61 = vpop.permute.xlu1 %597 }
 0x233   : > { %609 = vst.msk [vmem:[#allocation2 + $0x20] sm:$0x3] %vm608_vm11, %v598_v61  ;;  %v594_v62 = vpop.permute.xlu0 %593 }
 0x234   : > { %610 = vst.msk [vmem:[#allocation2 + $0x28] sm:$0x3] %vm448_vm2, %v598_v61 }
 0x235   : > { %603 = vst.msk [vmem:[#allocation2] sm:$0xfc] %vm602_vm12, %v594_v62 }
 0x236   : > { %604 = vst.msk [vmem:[#allocation2 + $0x8] sm:$0xfc] %vm444_vm4, %v594_v62  ;;  %v621_v63 = vpop.permute.xlu1 %620 }
 0x237   : > { %629 = vst.msk [vmem:[#allocation3 + $0x20] sm:$0x3] %vm608_vm11, %v621_v63  ;;  %v596_v0 = vpop.permute.xlu0 %595 }
 0x238   : > { %630 = vst.msk [vmem:[#allocation3 + $0x28] sm:$0x3] %vm448_vm2, %v621_v63  ;;  %vm762_vm2 = vcmask 916480  }
 0x239   : > { %606 = vst.msk [vmem:[#allocation2 + $0x10] sm:$0xff] %vm605_vm13, %v596_v0 }
 0x23a   : > { %607 = vst.msk [vmem:[#allocation2 + $0x18] sm:$0xff] %vm446_vm8, %v596_v0  ;;  %v617_v1 = vpop.permute.xlu1 %616  ;;  %v4644_v4 = vld [vmem:[#allocation2 + $0x20] sm:$0x1] }
 0x23b   : > { %v4642_v2 = vld [vmem:[#allocation2 + $0x28] sm:$0x1]  ;;  %625 = vst.msk [vmem:[#allocation3] sm:$0xfc] %vm602_vm12, %v617_v1  ;;  %v619_v9 = vpop.permute.xlu0 %618  ;;  %683 = vrot.lane.b32.xlu1 %v4644_v4, %s4084_s14  ;;  %v715_v15 = vmul.f32 %v4563_v22, %v4644_v4  ;;  %v790_v20 = vmul.f32 %v4569_v27, %v4644_v4  ;;  %v4692_v21 = vld [vmem:[#allocation2 + $0x20] sm:$0x3] }
 0x23c   : > { %626 = vst.msk [vmem:[#allocation3 + $0x8] sm:$0xfc] %vm444_vm4, %v617_v1  ;;  %685 = vrot.lane.b32.xlu0 %v4642_v2, %s4084_s14  ;;  %v4660_v11 = vld [vmem:[#allocation2] sm:$0xfe]  ;;  %v716_v18 = vmul.f32 %v4563_v22, %v4642_v2  ;;  %v791_v19 = vmul.f32 %v4569_v27, %v4642_v2  ;;  %v4694_v61 = vld [vmem:[#allocation2 + $0x28] sm:$0x3]  ;;  %v4770_v5 = vmul.f32 %v4571_v29, %v4692_v21 }
 0x23d   : > { %627 = vst.msk [vmem:[#allocation3 + $0x10] sm:$0xff] %vm605_vm13, %v619_v9  ;;  %v4658_v10 = vld [vmem:[#allocation2 + $0x8] sm:$0xfe]  ;;  %v4699_v62 = vrot.slane %v4692_v21, 1  ;;  %v4702_v63 = vrot.slane %v4694_v61, 1  ;;  %v4766_v48 = vmul.f32 %v4571_v29, %v4694_v61  ;;  %vm2007_vm4 = vcmask 850944  }
 0x23e   : > { %628 = vst.msk [vmem:[#allocation3 + $0x18] sm:$0xff] %vm446_vm8, %v619_v9  ;;  %v4708_v0 = vld [vmem:[#allocation2 + $0x28] sm:$0x7]  ;;  %v4710_v1 = vld [vmem:[#allocation2 + $0x20] sm:$0x7]  ;;  %v787_v7 = vmul.f32 %v4569_v27, %v4658_v10 }
 0x23f   : > { %760 = vrot.lane.b32.xlu1 %v4642_v2, %s4085_s25  ;;  %7018 = vst [vmem:[#allocation47_spill] sm:$0xff] %v4699_v62  ;;  %7019 = vst [vmem:[#allocation48_spill] sm:$0xff] %v4702_v63  ;;  %v4717_v9 = vrot.slane %v4708_v0, 2  ;;  %v4782_v3 = vmul.f32 %v4575_v31, %v4708_v0  ;;  %v4786_v16 = vmul.f32 %v4575_v31, %v4710_v1  ;;  %v4818_v28 = vld [vmem:[#allocation2 + $0x8] sm:$0xfc] }
 0x240   : > { %758 = vrot.lane.b32.xlu0 %v4644_v4, %s4085_s25  ;;  %v4670_v12 = vld [vmem:[#allocation2 + $0x10] sm:$0xff]  ;;  %v4798_v17 = vmul.f32 %v4581_v34, %v4710_v1  ;;  %v4802_v52 = vmul.f32 %v4581_v34, %v4708_v0  ;;  %v4820_v14 = vld [vmem:[#allocation2] sm:$0xfc]  ;;  %v4824_v23 = vld [vmem:[#allocation3 + $0x28] sm:$0x1] }
 0x241   : > { %v4672_v13 = vld [vmem:[#allocation2 + $0x18] sm:$0xff]  ;;  %7020 = vst [vmem:[#allocation49_spill] sm:$0xff] %v4717_v9  ;;  %v713_v47 = vmul.f32 %v4563_v22, %v4670_v12  ;;  %v835_v8 = vrot.slane %v4670_v12, 1  ;;  %v1441_v51 = vmul.f32 %v4824_v23, %v4569_v27 }
 0x242   : > { %v714_v6 = vmul.f32 %v4563_v22, %v4672_v13  ;;  %v1020_v60 = vmul.f32 %v4571_v29, %v4672_v13 }
 0x243   : > { %675 = vrot.lane.b32.xlu1 %v4660_v11, %s4084_s14  ;;  %v4850_v53 = vsel %vm833_vm14, %v835_v8, %v4699_v62 }
 0x244   : > { %677 = vrot.lane.b32.xlu0 %v4658_v10, %s4084_s14  ;;  %7025 = vst [vmem:[#allocation54_spill] sm:$0xff] %v4850_v53 }
 0x247   : > { %752 = vrot.lane.b32.xlu1 %v4658_v10, %s4085_s25 }
 0x248   : > { %750 = vrot.lane.b32.xlu0 %v4660_v11, %s4085_s25 }
 0x24b   : > { %679 = vrot.lane.b32.xlu1 %v4670_v12, %s4084_s14 }
 0x24c   : > { %681 = vrot.lane.b32.xlu0 %v4672_v13, %s4084_s14 }
 0x24f   : > { %733 = vrot.lane.b32.xlu1 %v716_v18, %s4084_s14  ;;  %v712_v18 = vmul.f32 %v4563_v22, %v4658_v10 }
 0x250   : > { %731 = vrot.lane.b32.xlu0 %v715_v15, %s4084_s14  ;;  %v4720_v15 = vrot.slane %v4710_v1, 2 }
 0x252   : > { %7021 = vst [vmem:[#allocation50_spill] sm:$0xff] %v4720_v15 }
 0x253   : > { %756 = vrot.lane.b32.xlu1 %v4672_v13, %s4085_s25 }
 0x254   : > { %754 = vrot.lane.b32.xlu0 %v4670_v12, %s4085_s25 }
 0x257   : > { %806 = vrot.lane.b32.xlu1 %v790_v20, %s4085_s25  ;;  %v786_v20 = vmul.f32 %v4569_v27, %v4660_v11 }
 0x258   : > { %808 = vrot.lane.b32.xlu0 %v791_v19, %s4085_s25  ;;  %v711_v19 = vmul.f32 %v4563_v22, %v4660_v11 }
 0x25b   : > { %908 = vrot.lane.b32.xlu1 %v4702_v63, %s4084_s14 }
 0x25c   : > { %906 = vrot.lane.b32.xlu0 %v4699_v62, %s4084_s14 }
 0x25f   : > { %990 = vrot.lane.b32.xlu1 %v4699_v62, %s4085_s25 }
 0x260   : > { %992 = vrot.lane.b32.xlu0 %v4702_v63, %s4085_s25 }
 0x263   : > { %1147 = vrot.lane.b32.xlu1 %v4720_v15, %s4084_s14 }
 0x264   : > { %1149 = vrot.lane.b32.xlu0 %v4717_v9, %s4084_s14 }
 0x267   : > { %1233 = vrot.lane.b32.xlu1 %v4717_v9, %s4085_s25 }
 0x268   : > { %1231 = vrot.lane.b32.xlu0 %v4720_v15, %s4085_s25 }
 0x26b   : > { %725 = vrot.lane.b32.xlu1 %v712_v18, %s4084_s14  ;;  %v788_v18 = vmul.f32 %v4569_v27, %v4670_v12 }
 0x26c   : > { %723 = vrot.lane.b32.xlu0 %v711_v19, %s4084_s14  ;;  %v789_v19 = vmul.f32 %v4569_v27, %v4672_v13 }
 0x26f   : > { %798 = vrot.lane.b32.xlu1 %v786_v20, %s4085_s25  ;;  %v4754_v20 = vmul.f32 %v4573_v30, %v4692_v21 }
 0x270   : > { %800 = vrot.lane.b32.xlu0 %v787_v7, %s4085_s25  ;;  %v4758_v7 = vmul.f32 %v4573_v30, %v4694_v61 }
 0x273   : > { %729 = vrot.lane.b32.xlu1 %v714_v6, %s4084_s14  ;;  %v6862_v6 = vrot.slane %v4754_v20, 1 }
 0x274   : > { %727 = vrot.lane.b32.xlu0 %v713_v47, %s4084_s14  ;;  %v6861_v47 = vrot.slane %v4758_v7, 1 }
 0x277   : > { %802 = vrot.lane.b32.xlu1 %v788_v18, %s4085_s25  ;;  %v6865_v18 = vrot.slane %v4766_v48, 1 }
 0x278   : > { %804 = vrot.lane.b32.xlu0 %v789_v19, %s4085_s25  ;;  %v6864_v19 = vrot.slane %v4770_v5, 1 }
 0x27b   : > { %963 = vrot.lane.b32.xlu1 %v6862_v6, %s4084_s14  ;;  %v6870_v6 = vrot.slane %v4786_v16, 2 }
 0x27c   : > { %965 = vrot.lane.b32.xlu0 %v6861_v47, %s4084_s14  ;;  %v6868_v47 = vrot.slane %v4782_v3, 2 }
 0x27f   : > { %1049 = vrot.lane.b32.xlu1 %v6865_v18, %s4085_s25  ;;  %v6872_v18 = vrot.slane %v4802_v52, 2 }
 0x280   : > { %1047 = vrot.lane.b32.xlu0 %v6864_v19, %s4085_s25  ;;  %v6873_v19 = vrot.slane %v4798_v17, 2 }
 0x283   : > { %1206 = vrot.lane.b32.xlu1 %v6868_v47, %s4084_s14  ;;  %v4822_v47 = vld [vmem:[#allocation3 + $0x20] sm:$0x1] }
 0x284   : > { %1204 = vrot.lane.b32.xlu0 %v6870_v6, %s4084_s14  ;;  %v838_v6 = vrot.slane %v4672_v13, 1  ;;  %v1440_v45 = vmul.f32 %v4822_v47, %v4569_v27 }
 0x286   : > { %v4846_v56 = vsel %vm833_vm14, %v838_v6, %v4702_v63 }
 0x287   : > { %1288 = vrot.lane.b32.xlu1 %v6873_v19, %s4085_s25  ;;  %v834_v19 = vrot.slane %v4820_v14, 1  ;;  %7024 = vst [vmem:[#allocation53_spill] sm:$0xff] %v4846_v56 }
 0x288   : > { %1290 = vrot.lane.b32.xlu0 %v6872_v18, %s4085_s25  ;;  %v837_v18 = vrot.slane %v4818_v28, 1 }
 0x289   : > { %v4838_v55 = vsel %vm833_vm14, %v834_v19, %v835_v8  ;;  %v1076_v19 = vrot.slane %v4670_v12, 2  ;;  %v1079_v8 = vrot.slane %v4672_v13, 2 }
 0x28a   : > { %v4835_v58 = vsel %vm833_vm14, %v837_v18, %v838_v6  ;;  %7023 = vst [vmem:[#allocation52_spill] sm:$0xff] %v4838_v55  ;;  %v4860_v18 = vld [vmem:[#allocation2] sm:$0xf8]  ;;  %v4862_v6 = vld [vmem:[#allocation2 + $0x8] sm:$0xf8] }
 0x28b   : > { %1351 = vrot.lane.b32.xlu1 %v4822_v47, %s4084_s14  ;;  %7022 = vst [vmem:[#allocation51_spill] sm:$0xff] %v4835_v58  ;;  %v1078_v63 = vrot.slane %v4862_v6, 2 }
 0x28c   : > { %1353 = vrot.lane.b32.xlu0 %v4824_v23, %s4084_s14 }
 0x28d   : > { %v4876_v62 = vsel %vm1074_vm15, %v1078_v63, %v1079_v8 }
 0x28e   : > { %7027 = vst [vmem:[#allocation56_spill] sm:$0xff] %v4876_v62 }
 0x28f   : > { %900 = vrot.lane.b32.xlu1 %v4835_v58, %s4084_s14 }
 0x290   : > { %898 = vrot.lane.b32.xlu0 %v4838_v55, %s4084_s14 }
 0x293   : > { %904 = vrot.lane.b32.xlu1 %v4846_v56, %s4084_s14 }
 0x294   : > { %902 = vrot.lane.b32.xlu0 %v4850_v53, %s4084_s14 }
 0x297   : > { %982 = vrot.lane.b32.xlu1 %v4838_v55, %s4085_s25  ;;  %v1075_v55 = vrot.slane %v4860_v18, 2 }
 0x298   : > { %984 = vrot.lane.b32.xlu0 %v4835_v58, %s4085_s25 }
 0x299   : > { %v4873_v58 = vsel %vm1074_vm15, %v1075_v55, %v1076_v19 }
 0x29a   : > { %7026 = vst [vmem:[#allocation55_spill] sm:$0xff] %v4873_v58 }
 0x29b   : > { %986 = vrot.lane.b32.xlu1 %v4850_v53, %s4085_s25  ;;  %v4884_v53 = vsel %vm1074_vm15, %v1076_v19, %v4720_v15  ;;  %v4906_v19 = vld [vmem:[#allocation3] sm:$0xfe] }
 0x29c   : > { %988 = vrot.lane.b32.xlu0 %v4846_v56, %s4085_s25  ;;  %7028 = vst [vmem:[#allocation57_spill] sm:$0xff] %v4884_v53  ;;  %v4888_v56 = vsel %vm1074_vm15, %v1079_v8, %v4717_v9  ;;  %v4908_v8 = vld [vmem:[#allocation3 + $0x8] sm:$0xfe] }
 0x29d   : > { %7029 = vst [vmem:[#allocation58_spill] sm:$0xff] %v4888_v56 }
 0x29f   : > { %1139 = vrot.lane.b32.xlu1 %v4873_v58, %s4084_s14 }
 0x2a0   : > { %1141 = vrot.lane.b32.xlu0 %v4876_v62, %s4084_s14 }
 0x2a3   : > { %1143 = vrot.lane.b32.xlu1 %v4884_v53, %s4084_s14 }
 0x2a4   : > { %1145 = vrot.lane.b32.xlu0 %v4888_v56, %s4084_s14 }
 0x2a7   : > { %1225 = vrot.lane.b32.xlu1 %v4876_v62, %s4085_s25 }
 0x2a8   : > { %1223 = vrot.lane.b32.xlu0 %v4873_v58, %s4085_s25  ;;  %v4918_v58 = vld [vmem:[#allocation3 + $0x10] sm:$0xff] }
 0x2ab   : > { %1229 = vrot.lane.b32.xlu1 %v4888_v56, %s4085_s25 }
 0x2ac   : > { %1227 = vrot.lane.b32.xlu0 %v4884_v53, %s4085_s25  ;;  %v4920_v53 = vld [vmem:[#allocation3 + $0x18] sm:$0xff] }
 0x2ad   : > { %v4904_v63 = vpop.permute.xlu1 %683 }
 0x2ae   : > { %v4902_v55 = vpop.permute.xlu0 %685  ;;  %7031 = vst [vmem:[#allocation60_spill] sm:$0xff] %v4904_v63  ;;  %v1374_v63 = vmul.f32 %v4822_v47, %v4563_v22 }
 0x2af   : > { %7030 = vst [vmem:[#allocation59_spill] sm:$0xff] %v4902_v55  ;;  %1343 = vrot.lane.b32.xlu1 %v4906_v19, %s4084_s14  ;;  %v936_v55 = vmul.f32 %v4573_v30, %v4672_v13 }
 0x2b0   : > { %1345 = vrot.lane.b32.xlu0 %v4908_v8, %s4084_s14 }
 0x2b1   : > { %v4916_v56 = vpop.permute.xlu1 %760 }
 0x2b2   : > { %v4914_v62 = vpop.permute.xlu0 %758  ;;  %7033 = vst [vmem:[#allocation62_spill] sm:$0xff] %v4916_v56  ;;  %v935_v56 = vmul.f32 %v4573_v30, %v4670_v12 }
 0x2b3   : > { %7032 = vst [vmem:[#allocation61_spill] sm:$0xff] %v4914_v62  ;;  %1347 = vrot.lane.b32.xlu1 %v4918_v58, %s4084_s14  ;;  %v1375_v62 = vmul.f32 %v4824_v23, %v4563_v22 }
 0x2b4   : > { %1349 = vrot.lane.b32.xlu0 %v4920_v53, %s4084_s14  ;;  %v946_v43 = vrot.slane %v935_v56, 1  ;;  %v1019_v56 = vmul.f32 %v4571_v29, %v4670_v12 }
 0x2b5   : > { %v4928_v9 = vpop.permute.xlu1 %675 }
 0x2b6   : > { %v4926_v15 = vpop.permute.xlu0 %677  ;;  %7035 = vst [vmem:[#allocation64_spill] sm:$0xff] %v4928_v9  ;;  %v934_v9 = vmul.f32 %v4573_v30, %v4818_v28 }
 0x2b7   : > { %7034 = vst [vmem:[#allocation63_spill] sm:$0xff] %v4926_v15  ;;  %1390 = vrot.lane.b32.xlu1 %v1374_v63, %s4084_s14  ;;  %v933_v15 = vmul.f32 %v4573_v30, %v4820_v14  ;;  %v949_v63 = vrot.slane %v936_v55, 1 }
 0x2b8   : > { %1392 = vrot.lane.b32.xlu0 %v1375_v62, %s4084_s14  ;;  %v948_v46 = vrot.slane %v934_v9, 1 }
 0x2b9   : > { %v4946_v50 = vpop.permute.xlu1 %752  ;;  %v945_v62 = vrot.slane %v933_v15, 1 }
 0x2ba   : > { %v4944_v54 = vpop.permute.xlu0 %750  ;;  %7037 = vst [vmem:[#allocation66_spill] sm:$0xff] %v4946_v50  ;;  %v950_v50 = vsel %vm833_vm14, %v948_v46, %v949_v63  ;;  %v7040_v46 = vrot.slane %v4754_v20, 1 }
 0x2bb   : > { %7036 = vst [vmem:[#allocation65_spill] sm:$0xff] %v4944_v54  ;;  %1458 = vrot.lane.b32.xlu1 %v1441_v51, %s4085_s25  ;;  %v947_v54 = vsel %vm833_vm14, %v945_v62, %v946_v43  ;;  %v1017_v51 = vmul.f32 %v4571_v29, %v4820_v14  ;;  %v7041_v62 = vrot.slane %v4758_v7, 1  ;;  %v1177_v7 = vmul.f32 %v4575_v31, %v4672_v13 }
 0x2bc   : > { %1456 = vrot.lane.b32.xlu0 %v1440_v45, %s4085_s25  ;;  %v1018_v45 = vmul.f32 %v4571_v29, %v4818_v28  ;;  %v952_v55 = vsel %vm833_vm14, %v946_v43, %v7040_v46  ;;  %v7045_v46 = vrot.slane %v4770_v5, 1  ;;  %v1260_v5 = vmul.f32 %v4581_v34, %v4670_v12 }
 0x2bd   : > { %v4956_v44 = vpop.permute.xlu1 %679  ;;  %v1029_v57 = vrot.slane %v1017_v51, 1 }
 0x2be   : > { %v4954_v41 = vpop.permute.xlu0 %681  ;;  %7039 = vst [vmem:[#allocation68_spill] sm:$0xff] %v4956_v44  ;;  %v1033_v44 = vrot.slane %v1020_v60, 1  ;;  %v1176_v60 = vmul.f32 %v4575_v31, %v4670_v12 }
 0x2bf   : > { %7038 = vst [vmem:[#allocation67_spill] sm:$0xff] %v4954_v41  ;;  %955 = vrot.lane.b32.xlu1 %v947_v54, %s4084_s14  ;;  %v954_v54 = vsel %vm833_vm14, %v949_v63, %v7041_v62  ;;  %v1032_v41 = vrot.slane %v1018_v45, 1  ;;  %v1175_v63 = vmul.f32 %v4575_v31, %v4862_v6  ;;  %v1190_v62 = vrot.slane %v1177_v7, 2 }
 0x2c0   : > { %957 = vrot.lane.b32.xlu0 %v950_v50, %s4084_s14  ;;  %v1030_v50 = vrot.slane %v1019_v56, 1  ;;  %v1174_v56 = vmul.f32 %v4575_v31, %v4860_v18  ;;  %v1258_v7 = vmul.f32 %v4581_v34, %v4860_v18 }
 0x2c1   : > { %v4972_v15 = vpop.permute.xlu1 %733  ;;  %v1034_v20 = vsel %vm833_vm14, %v1032_v41, %v1033_v44 }
 0x2c2   : > { %v4970_v9 = vpop.permute.xlu0 %731  ;;  %v1031_v43 = vsel %vm833_vm14, %v1029_v57, %v1030_v50  ;;  %v7044_v57 = vrot.slane %v4766_v48, 1 }
 0x2c3   : > { %959 = vrot.lane.b32.xlu1 %v952_v55, %s4084_s14  ;;  %v1036_v55 = vsel %vm833_vm14, %v1030_v50, %v7045_v46  ;;  %v1261_v50 = vmul.f32 %v4581_v34, %v4672_v13 }
 0x2c4   : > { %961 = vrot.lane.b32.xlu0 %v954_v54, %s4084_s14  ;;  %v1038_v51 = vsel %vm833_vm14, %v1033_v44, %v7044_v57  ;;  %v1187_v54 = vrot.slane %v1176_v60, 2  ;;  %v1259_v60 = vmul.f32 %v4581_v34, %v4862_v6  ;;  %v2636_v57 = vrot.slane %v4494_v49, %v4456_v24 }
 0x2c5   : > { %v4984_v42 = vpop.permute.xlu1 %756 }
 0x2c6   : > { %v4982_v59 = vpop.permute.xlu0 %754  ;;  %7043 = vst [vmem:[#allocation70_spill] sm:$0xff] %v4984_v42 }
 0x2c7   : > { %7042 = vst [vmem:[#allocation69_spill] sm:$0xff] %v4982_v59  ;;  %1041 = vrot.lane.b32.xlu1 %v1034_v20, %s4085_s25  ;;  %v1189_v20 = vrot.slane %v1175_v63, 2 }
 0x2c8   : > { %1039 = vrot.lane.b32.xlu0 %v1031_v43, %s4085_s25  ;;  %v1186_v43 = vrot.slane %v1174_v56, 2 }
 0x2c9   : > { %v5000_v41 = vpop.permute.xlu1 %806  ;;  %v1191_v48 = vsel %vm1074_vm15, %v1189_v20, %v1190_v62 }
 0x2ca   : > { %v4998_v45 = vpop.permute.xlu0 %808  ;;  %v1188_v44 = vsel %vm1074_vm15, %v1186_v43, %v1187_v54  ;;  %v1271_v43 = vrot.slane %v1260_v5, 2 }
 0x2cb   : > { %1045 = vrot.lane.b32.xlu1 %v1038_v51, %s4085_s25  ;;  %v7050_v51 = vrot.slane %v4782_v3, 2  ;;  %v2638_v3 = vmul.f32 %v2636_v57, %v4918_v58 }
 0x2cc   : > { %1043 = vrot.lane.b32.xlu0 %v1036_v55, %s4085_s25  ;;  %v7051_v55 = vrot.slane %v4786_v16, 2 }
 0x2cd   : > { %v5012_v42 = vpop.permute.xlu1 %908  ;;  %v1195_v46 = vsel %vm1074_vm15, %v1190_v62, %v7050_v51 }
 0x2ce   : > { %v5010_v59 = vpop.permute.xlu0 %906  ;;  %7047 = vst [vmem:[#allocation72_spill] sm:$0xff] %v5012_v42  ;;  %v1193_v20 = vsel %vm1074_vm15, %v1187_v54, %v7051_v55 }
 0x2cf   : > { %7046 = vst [vmem:[#allocation71_spill] sm:$0xff] %v5010_v59  ;;  %1198 = vrot.lane.b32.xlu1 %v1191_v48, %s4084_s14  ;;  %v1274_v48 = vrot.slane %v1261_v50, 2  ;;  %v2632_v59 = vld [vmem:[#allocation3 + $0x20] sm:$0xf]  ;;  %v2645_v50 = vrot.slane %v2638_v3, 4  ;;  %v1436_v3 = vmul.f32 %v4906_v19, %v4569_v27 }
 0x2d0   : > { %1196 = vrot.lane.b32.xlu0 %v1188_v44, %s4084_s14  ;;  %v2631_v44 = vld [vmem:[#allocation3] sm:$0xf0]  ;;  %v2639_v16 = vmul.f32 %v2636_v57, %v2632_v59 }
 0x2d1   : > { %v5028_v56 = vpop.permute.xlu1 %990  ;;  %v2637_v42 = vmul.f32 %v2636_v57, %v2631_v44  ;;  %v7059_v57 = vrot.slane %v4802_v52, 2  ;;  %v1370_v44 = vmul.f32 %v4906_v19, %v4563_v22 }
 0x2d2   : > { %v5026_v63 = vpop.permute.xlu0 %992  ;;  %7049 = vst [vmem:[#allocation74_spill] sm:$0xff] %v5028_v56  ;;  %v1273_v56 = vrot.slane %v1259_v60, 2 }
 0x2d3   : > { %7048 = vst [vmem:[#allocation73_spill] sm:$0xff] %v5026_v63  ;;  %1202 = vrot.lane.b32.xlu1 %v1195_v46, %s4084_s14  ;;  %v1270_v63 = vrot.slane %v1258_v7, 2  ;;  %v2644_v5 = vrot.slane %v2637_v42, 4  ;;  %v2647_v7 = vrot.slane %v2639_v16, 4  ;;  %v1279_v42 = vsel %vm1074_vm15, %v1274_v48, %v7059_v57  ;;  %v1922_v16 = vld [vmem:[#allocation3 + $0x8] sm:$0xff] }
 0x2d4   : > { %1200 = vrot.lane.b32.xlu0 %v1193_v20, %s4084_s14  ;;  %v1275_v54 = vsel %vm1074_vm15, %v1273_v56, %v1274_v48  ;;  %v1437_v48 = vmul.f32 %v4908_v8, %v4569_v27  ;;  %v661_v57 = vmul.f32 %v4565_v25, %v4644_v4 }
 0x2d5   : > { %v5042_v49 = vpop.permute.xlu1 %1147  ;;  %v1272_v62 = vsel %vm1074_vm15, %v1270_v63, %v1271_v43  ;;  %v5054_v46 = vsel %vm2643_vm0, %v2644_v5, %v2645_v50  ;;  %v5057_v59 = vsel %vm2643_vm0, %v2645_v50, %v2647_v7  ;;  %v7058_v63 = vrot.slane %v4798_v17, 2 }
 0x2d6   : > { %v5040_v24 = vpop.permute.xlu0 %1149  ;;  %7053 = vst [vmem:[#allocation76_spill] sm:$0xff] %v5042_v49  ;;  %7056 = vst [vmem:[#allocation79_spill] sm:$0xff] %v5054_v46  ;;  %v1371_v17 = vmul.f32 %v4908_v8, %v4563_v22  ;;  %v1932_v50 = vmul.f32 %v4579_v33, %v1922_v16 }
 0x2d7   : > { %7052 = vst [vmem:[#allocation75_spill] sm:$0xff] %v5040_v24  ;;  %1280 = vrot.lane.b32.xlu1 %v1272_v62, %s4085_s25  ;;  %7057 = vst [vmem:[#allocation80_spill] sm:$0xff] %v5057_v59  ;;  %v1277_v56 = vsel %vm1074_vm15, %v1271_v43, %v7058_v63  ;;  %v1913_v62 = vld [vmem:[#allocation3] sm:$0xff]  ;;  %v662_v63 = vmul.f32 %v4565_v25, %v4642_v2  ;;  %v5108_v2 = vmul.f32 %v4567_v26, %v4694_v61 }
 0x2d8   : > { %1282 = vrot.lane.b32.xlu0 %v1275_v54, %s4085_s25  ;;  %v1931_v7 = vmul.f32 %v4579_v33, %v1913_v62 }
 0x2d9   : > { %v5051_v51 = vpop.permute.xlu1 %1233  ;;  %v6910_v61 = vrot.slane %v5108_v2, 1 }
 0x2da   : > { %v5049_v60 = vpop.permute.xlu0 %1231  ;;  %7055 = vst [vmem:[#allocation78_spill] sm:$0xff] %v5051_v51 }
 0x2db   : > { %7054 = vst [vmem:[#allocation77_spill] sm:$0xff] %v5049_v60  ;;  %1284 = vrot.lane.b32.xlu1 %v1277_v56, %s4085_s25  ;;  %v737_v56 = vsel %vm687_vm1, %v4970_v9, %v4972_v15  ;;  %v5112_v9 = vmul.f32 %v4567_v26, %v4692_v21 }
 0x2dc   : > { %1286 = vrot.lane.b32.xlu0 %v1279_v42, %s4085_s25  ;;  %v749_v42 = vadd.f32 %v4972_v15, %v662_v63  ;;  %v1961_v15 = vmul.f32 %v4585_v36, %v1913_v62 }
 0x2dd   : > { %v5067_v55 = vpop.permute.xlu1 %725  ;;  %v6912_v21 = vrot.slane %v5112_v9, 1 }
 0x2de   : > { %v5069_v20 = vpop.permute.xlu0 %723 }
 0x2df   : > { %1382 = vrot.lane.b32.xlu1 %v1370_v44, %s4084_s14  ;;  %v812_v44 = vsel %vm762_vm2, %v5000_v41, %v4998_v45 }
 0x2e0   : > { %1384 = vrot.lane.b32.xlu0 %v1371_v17, %s4084_s14  ;;  %v748_v17 = vadd.f32 %v737_v56, %v661_v57  ;;  %v1992_v56 = vmul.f32 %v4583_v35, %v1922_v16  ;;  %v1991_v57 = vmul.f32 %v4583_v35, %v1913_v62 }
 0x2e1   : > { %v5077_v52 = vpop.permute.xlu1 %798 }
 0x2e2   : > { %v5079_v43 = vpop.permute.xlu0 %800  ;;  %v823_v41 = vadd.f32 %v812_v44, %v748_v17  ;;  %v5140_v17 = vmul.f32 %v4577_v32, %v4710_v1 }
 0x2e3   : > { %1450 = vrot.lane.b32.xlu1 %v1437_v48, %s4085_s25 }
 0x2e4   : > { %1448 = vrot.lane.b32.xlu0 %v1436_v3, %s4085_s25  ;;  %v1962_v3 = vmul.f32 %v4585_v36, %v1922_v16  ;;  %v896_v44 = vadd.f32 %v6912_v21, %v823_v41  ;;  %v6913_v1 = vrot.slane %v5140_v17, 2 }
 0x2e5   : > { %v5087_v54 = vpop.permute.xlu1 %729 }
 0x2e6   : > { %v5089_v5 = vpop.permute.xlu0 %727 }
 0x2e7   : > { %1941 = vrot.lane.b32.xlu1 %v1932_v50, %s4084_s14  ;;  %v824_v50 = vadd.f32 %v4998_v45, %v749_v42  ;;  %v5132_v42 = vmul.f32 %v4577_v32, %v4708_v0  ;;  %v2022_v0 = vmul.f32 %v4589_v38, %v1913_v62 }
 0x2e8   : > { %1939 = vrot.lane.b32.xlu0 %v1931_v7, %s4084_s14 }
 0x2e9   : > { %v5114_v4 = vpop.permute.xlu1 %802  ;;  %v897_v60 = vadd.f32 %v6910_v61, %v824_v50  ;;  %v2023_v61 = vmul.f32 %v4589_v38, %v1922_v16  ;;  %v6914_v21 = vrot.slane %v5132_v42, 2 }
 0x2ea   : > { %v5116_v48 = vpop.permute.xlu0 %804 }
 0x2eb   : > { %1971 = vrot.lane.b32.xlu1 %v1962_v3, %s4085_s25 }
 0x2ec   : > { %1969 = vrot.lane.b32.xlu0 %v1961_v15, %s4085_s25 }
 0x2ed   : > { %v964_v7 = vpop.permute.xlu1 %963 }
 0x2ee   : > { %v966_v63 = vpop.permute.xlu0 %965 }
 0x2ef   : > { %v969_v45 = vsel %vm687_vm1, %v964_v7, %v966_v63  ;;  %2001 = vrot.lane.b32.xlu1 %v1992_v56, %s4086_s19  ;;  %v981_v3 = vadd.f32 %v966_v63, %v897_v60 }
 0x2f0   : > { %1999 = vrot.lane.b32.xlu0 %v1991_v57, %s4086_s19  ;;  %v980_v15 = vadd.f32 %v969_v45, %v896_v44  ;;  %v1372_v57 = vmul.f32 %v4918_v58, %v4563_v22  ;;  %v5165_v45 = vld [vmem:[#allocation3 + $0x20] sm:$0x3]  ;;  %v5167_v44 = vld [vmem:[#allocation3 + $0x28] sm:$0x3] }
 0x2f1   : > { %v1050_v50 = vpop.permute.xlu1 %1049  ;;  %7061 = vst [vmem:[#allocation82_spill] sm:$0xff] %v5165_v45  ;;  %7062 = vst [vmem:[#allocation83_spill] sm:$0xff] %v5167_v44 }
 0x2f2   : > { %v1048_v7 = vpop.permute.xlu0 %1047  ;;  %v1065_v51 = vadd.f32 %v1050_v50, %v981_v3 }
 0x2f3   : > { %v1053_v41 = vsel %vm762_vm2, %v1048_v7, %v1050_v50  ;;  %2032 = vrot.lane.b32.xlu1 %v2023_v61, %s4087_s26  ;;  %v1373_v61 = vmul.f32 %v4920_v53, %v4563_v22  ;;  %v1438_v50 = vmul.f32 %v4918_v58, %v4569_v27  ;;  %v5181_v22 = vmul.f32 %v5165_v45, %v4573_v30 }
 0x2f4   : > { %v1064_v56 = vadd.f32 %v1053_v41, %v980_v15  ;;  %2030 = vrot.lane.b32.xlu0 %v2022_v0, %s4087_s26  ;;  %v5151_v60 = vadd.f32 %v6914_v21, %v1065_v51  ;;  %v1439_v15 = vmul.f32 %v4920_v53, %v4569_v27  ;;  %v5185_v7 = vmul.f32 %v5167_v44, %v4573_v30 }
 0x2f5   : > { %v5153_v16 = vpop.permute.xlu1 %1206 }
 0x2f6   : > { %v5157_v62 = vadd.f32 %v6913_v1, %v1064_v56  ;;  %v5159_v63 = vpop.permute.xlu0 %1204  ;;  %v6918_v56 = vrot.slane %v5181_v22, 1  ;;  %v6917_v27 = vrot.slane %v5185_v7, 1  ;;  %v5203_v1 = vld [vmem:[#allocation3 + $0x28] sm:$0x7] }
 0x2f7   : > { %1386 = vrot.lane.b32.xlu1 %v1372_v57, %s4084_s14  ;;  %v5197_v57 = vmul.f32 %v5167_v44, %v4571_v29  ;;  %7067 = vst [vmem:[#allocation88_spill] sm:$0xff] %v5203_v1  ;;  %v5221_v49 = vmul.f32 %v5203_v1, %v4575_v31  ;;  %v5241_v59 = vmul.f32 %v5203_v1, %v4581_v34 }
 0x2f8   : > { %7060 = vst [vmem:[#allocation81_spill] sm:$0xff] %v5157_v62  ;;  %1388 = vrot.lane.b32.xlu0 %v1373_v61, %s4084_s14  ;;  %v5201_v61 = vmul.f32 %v5165_v45, %v4571_v29  ;;  %v2024_v45 = vmul.f32 %v4589_v38, %v4918_v58 }
 0x2f9   : > { %v5171_v51 = vpop.permute.xlu1 %1288 }
 0x2fa   : > { %7063 = vst [vmem:[#allocation84_spill] sm:$0xff] %v5171_v51  ;;  %v5173_v3 = vpop.permute.xlu0 %1290 }
 0x2fb   : > { %7064 = vst [vmem:[#allocation85_spill] sm:$0xff] %v5173_v3  ;;  %1454 = vrot.lane.b32.xlu1 %v1439_v15, %s4085_s25  ;;  %v5205_v15 = vld [vmem:[#allocation3 + $0x20] sm:$0x7] }
 0x2fc   : > { %1452 = vrot.lane.b32.xlu0 %v1438_v50, %s4085_s25  ;;  %7068 = vst [vmem:[#allocation89_spill] sm:$0xff] %v5205_v15  ;;  %v5225_v24 = vmul.f32 %v5205_v15, %v4575_v31  ;;  %v5245_v46 = vmul.f32 %v5205_v15, %v4581_v34 }
 0x2fd   : > { %v5189_v0 = vpop.permute.xlu1 %1351 }
 0x2fe   : > { %7065 = vst [vmem:[#allocation86_spill] sm:$0xff] %v5189_v0  ;;  %v5191_v41 = vpop.permute.xlu0 %1353  ;;  %v6921_v0 = vrot.slane %v5197_v57, 1 }
 0x2ff   : > { %7066 = vst [vmem:[#allocation87_spill] sm:$0xff] %v5191_v41  ;;  %1596 = vrot.lane.b32.xlu1 %v6918_v56, %s4084_s14  ;;  %v6920_v41 = vrot.slane %v5201_v61, 1 }
 0x300   : > { %1598 = vrot.lane.b32.xlu0 %v6917_v27, %s4084_s14 }
 0x301   : > { %v5213_v50 = vpop.permute.xlu1 %900 }
 0x302   : > { %7069 = vst [vmem:[#allocation90_spill] sm:$0xff] %v5213_v50  ;;  %v5215_v21 = vpop.permute.xlu0 %898  ;;  %v6926_v50 = vrot.slane %v5225_v24, 2 }
 0x303   : > { %7070 = vst [vmem:[#allocation91_spill] sm:$0xff] %v5215_v21  ;;  %1674 = vrot.lane.b32.xlu1 %v6921_v0, %s4085_s25  ;;  %v6923_v21 = vrot.slane %v5221_v49, 2 }
 0x304   : > { %1672 = vrot.lane.b32.xlu0 %v6920_v41, %s4085_s25 }
 0x305   : > { %v5233_v27 = vpop.permute.xlu1 %904 }
 0x306   : > { %7071 = vst [vmem:[#allocation92_spill] sm:$0xff] %v5233_v27  ;;  %v5235_v56 = vpop.permute.xlu0 %902  ;;  %v6929_v27 = vrot.slane %v5245_v46, 2 }
 0x307   : > { %7072 = vst [vmem:[#allocation93_spill] sm:$0xff] %v5235_v56  ;;  %1814 = vrot.lane.b32.xlu1 %v6923_v21, %s4084_s14  ;;  %v6928_v56 = vrot.slane %v5241_v59, 2 }
 0x308   : > { %1812 = vrot.lane.b32.xlu0 %v6926_v50, %s4084_s14  ;;  %v1934_v50 = vmul.f32 %v4579_v33, %v4920_v53 }
 0x309   : > { %v5253_v41 = vpop.permute.xlu1 %982 }
 0x30a   : > { %7073 = vst [vmem:[#allocation94_spill] sm:$0xff] %v5253_v41  ;;  %v5255_v0 = vpop.permute.xlu0 %984  ;;  %v1933_v41 = vmul.f32 %v4579_v33, %v4918_v58  ;;  %v5287_v33 = vld [vmem:[#allocation3 + $0x8] sm:$0xfc] }
 0x30b   : > { %7074 = vst [vmem:[#allocation95_spill] sm:$0xff] %v5255_v0  ;;  %1890 = vrot.lane.b32.xlu1 %v6928_v56, %s4085_s25 }
 0x30c   : > { %1888 = vrot.lane.b32.xlu0 %v6929_v27, %s4085_s25  ;;  %v1964_v27 = vmul.f32 %v4585_v36, %v4920_v53 }
 0x30d   : > { %v5265_v21 = vpop.permute.xlu1 %986 }
 0x30e   : > { %7075 = vst [vmem:[#allocation96_spill] sm:$0xff] %v5265_v21  ;;  %v5267_v15 = vpop.permute.xlu0 %988  ;;  %v1963_v21 = vmul.f32 %v4585_v36, %v4918_v58 }
 0x30f   : > { %7076 = vst [vmem:[#allocation97_spill] sm:$0xff] %v5267_v15  ;;  %1945 = vrot.lane.b32.xlu1 %v1934_v50, %s4084_s14  ;;  %v5285_v15 = vld [vmem:[#allocation3] sm:$0xfc] }
 0x310   : > { %1943 = vrot.lane.b32.xlu0 %v1933_v41, %s4084_s14  ;;  %7079 = vst [vmem:[#allocation100_spill] sm:$0xff] %v5285_v15  ;;  %v1566_v36 = vmul.f32 %v5285_v15, %v4573_v30 }
 0x311   : > { %v5275_v0 = vpop.permute.xlu1 %1139 }
 0x312   : > { %7077 = vst [vmem:[#allocation98_spill] sm:$0xff] %v5275_v0  ;;  %v5277_v56 = vpop.permute.xlu0 %1141  ;;  %v1994_v0 = vmul.f32 %v4583_v35, %v4920_v53  ;;  %v1578_v44 = vrot.slane %v1566_v36, 1 }
 0x313   : > { %7078 = vst [vmem:[#allocation99_spill] sm:$0xff] %v5277_v56  ;;  %1975 = vrot.lane.b32.xlu1 %v1964_v27, %s4085_s25  ;;  %v1993_v56 = vmul.f32 %v4583_v35, %v4918_v58  ;;  %v1567_v27 = vmul.f32 %v5287_v33, %v4573_v30  ;;  %v2025_v35 = vmul.f32 %v4589_v38, %v4920_v53 }
 0x314   : > { %1973 = vrot.lane.b32.xlu0 %v1963_v21, %s4085_s25  ;;  %v1568_v21 = vmul.f32 %v4918_v58, %v4573_v30 }
 0x315   : > { %v5289_v50 = vpop.permute.xlu1 %1143  ;;  %v1581_v51 = vrot.slane %v1567_v27, 1 }
 0x316   : > { %7080 = vst [vmem:[#allocation101_spill] sm:$0xff] %v5289_v50  ;;  %v5291_v41 = vpop.permute.xlu0 %1145  ;;  %v1569_v50 = vmul.f32 %v4920_v53, %v4573_v30  ;;  %v1579_v62 = vrot.slane %v1568_v21, 1  ;;  %v5333_v21 = vld [vmem:[#allocation3 + $0x8] sm:$0xf8] }
 0x317   : > { %7081 = vst [vmem:[#allocation102_spill] sm:$0xff] %v5291_v41  ;;  %2005 = vrot.lane.b32.xlu1 %v1994_v0, %s4086_s19 }
 0x318   : > { %2003 = vrot.lane.b32.xlu0 %v1993_v56, %s4086_s19  ;;  %v1582_v3 = vrot.slane %v1569_v50, 1  ;;  %v1643_v56 = vmul.f32 %v5287_v33, %v4571_v29  ;;  %v1580_v38 = vsel %vm833_vm14, %v1578_v44, %v1579_v62  ;;  %v1642_v50 = vmul.f32 %v5285_v15, %v4571_v29 }
 0x319   : > { %v5307_v41 = vpop.permute.xlu1 %1225  ;;  %v7088_v44 = vrot.slane %v5181_v22, 1 }
 0x31a   : > { %7082 = vst [vmem:[#allocation103_spill] sm:$0xff] %v5307_v41  ;;  %v5309_v1 = vpop.permute.xlu0 %1223  ;;  %v1583_v36 = vsel %vm833_vm14, %v1581_v51, %v1582_v3  ;;  %v7089_v41 = vrot.slane %v5185_v7, 1  ;;  %v1654_v15 = vrot.slane %v1642_v50, 1  ;;  %v1784_v7 = vmul.f32 %v4918_v58, %v4575_v31 }
 0x31b   : > { %7083 = vst [vmem:[#allocation104_spill] sm:$0xff] %v5309_v1  ;;  %2036 = vrot.lane.b32.xlu1 %v2025_v35, %s4087_s26  ;;  %v1645_v1 = vmul.f32 %v4920_v53, %v4571_v29  ;;  %v1585_v51 = vsel %vm833_vm14, %v1579_v62, %v7088_v44  ;;  %v1785_v62 = vmul.f32 %v4920_v53, %v4575_v31 }
 0x31c   : > { %2034 = vrot.lane.b32.xlu0 %v2024_v45, %s4087_s26  ;;  %v1644_v45 = vmul.f32 %v4918_v58, %v4571_v29  ;;  %v1587_v29 = vsel %vm833_vm14, %v1582_v3, %v7089_v41  ;;  %v866_v41 = vmul.f32 %v4567_v26, %v4670_v12 }
 0x31d   : > { %v5317_v30 = vpop.permute.xlu1 %1229 }
 0x31e   : > { %7084 = vst [vmem:[#allocation105_spill] sm:$0xff] %v5317_v30  ;;  %v5319_v0 = vpop.permute.xlu0 %1227  ;;  %v5342_v30 = vld [vmem:[#allocation3] sm:$0xf8] }
 0x31f   : > { %7085 = vst [vmem:[#allocation106_spill] sm:$0xff] %v5319_v0  ;;  %1588 = vrot.lane.b32.xlu1 %v1580_v38, %s4084_s14  ;;  %v1657_v0 = vrot.slane %v1643_v56, 1  ;;  %v1658_v38 = vrot.slane %v1645_v1, 1  ;;  %v1782_v22 = vmul.f32 %v5342_v30, %v4575_v31  ;;  %v867_v56 = vmul.f32 %v4567_v26, %v4672_v13 }
 0x320   : > { %1590 = vrot.lane.b32.xlu0 %v1583_v36, %s4084_s14  ;;  %v1655_v36 = vrot.slane %v1644_v45, 1 }
 0x321   : > { %v5335_v27 = vpop.permute.xlu1 %1343  ;;  %v1659_v50 = vsel %vm833_vm14, %v1657_v0, %v1658_v38  ;;  %v660_v0 = vmul.f32 %v4565_v25, %v4672_v13 }
 0x322   : > { %7086 = vst [vmem:[#allocation107_spill] sm:$0xff] %v5335_v27  ;;  %v5337_v35 = vpop.permute.xlu0 %1345  ;;  %v1783_v27 = vmul.f32 %v5333_v21, %v4575_v31  ;;  %v1656_v45 = vsel %vm833_vm14, %v1654_v15, %v1655_v36  ;;  %v1798_v31 = vrot.slane %v1785_v62, 2  ;;  %v657_v15 = vmul.f32 %v4565_v25, %v4660_v11 }
 0x323   : > { %7087 = vst [vmem:[#allocation108_spill] sm:$0xff] %v5337_v35  ;;  %1592 = vrot.lane.b32.xlu1 %v1585_v51, %s4084_s14  ;;  %v864_v51 = vmul.f32 %v4567_v26, %v4820_v14  ;;  %v1795_v35 = vrot.slane %v1784_v7, 2  ;;  %v877_v62 = vrot.slane %v866_v41, 1  ;;  %v880_v14 = vrot.slane %v867_v56, 1 }
 0x324   : > { %1594 = vrot.lane.b32.xlu0 %v1587_v29, %s4084_s14  ;;  %v1797_v44 = vrot.slane %v1783_v27, 2  ;;  %v865_v29 = vmul.f32 %v4567_v26, %v4818_v28  ;;  %v1858_v11 = vmul.f32 %v5342_v30, %v4581_v34  ;;  %v1860_v7 = vmul.f32 %v4918_v58, %v4581_v34 }
 0x325   : > { %v5357_v3 = vpop.permute.xlu1 %1347 }
 0x326   : > { %7090 = vst [vmem:[#allocation109_spill] sm:$0xff] %v5357_v3  ;;  %v5359_v1 = vpop.permute.xlu0 %1349  ;;  %v658_v3 = vmul.f32 %v4565_v25, %v4658_v10  ;;  %v7095_v10 = vrot.slane %v5201_v61, 1  ;;  %v879_v41 = vrot.slane %v865_v29, 1 }
 0x327   : > { %7091 = vst [vmem:[#allocation110_spill] sm:$0xff] %v5359_v1  ;;  %1666 = vrot.lane.b32.xlu1 %v1659_v50, %s4085_s25  ;;  %v1794_v1 = vrot.slane %v1782_v22, 2 }
 0x328   : > { %1664 = vrot.lane.b32.xlu0 %v1656_v45, %s4085_s25  ;;  %v7094_v45 = vrot.slane %v5197_v57, 1  ;;  %v1661_v22 = vsel %vm833_vm14, %v1655_v36, %v7095_v10  ;;  %v1799_v57 = vsel %vm1074_vm15, %v1797_v44, %v1798_v31  ;;  %v7096_v36 = vrot.slane %v5221_v49, 2 }
 0x329   : > { %v5379_v50 = vpop.permute.xlu1 %1390  ;;  %v1796_v61 = vsel %vm1074_vm15, %v1794_v1, %v1795_v35  ;;  %v7098_v1 = vrot.slane %v5112_v9, 1  ;;  %v2073_v9 = vmul.f32 %v4587_v37, %v4908_v8 }
 0x32a   : > { %7092 = vst [vmem:[#allocation111_spill] sm:$0xff] %v5379_v50  ;;  %v5381_v27 = vpop.permute.xlu0 %1392  ;;  %v1663_v28 = vsel %vm833_vm14, %v1658_v38, %v7094_v45  ;;  %v659_v50 = vmul.f32 %v4565_v25, %v4670_v12  ;;  %v876_v38 = vrot.slane %v864_v51, 1  ;;  %v1803_v56 = vsel %vm1074_vm15, %v1798_v31, %v7096_v36 }
 0x32b   : > { %7093 = vst [vmem:[#allocation112_spill] sm:$0xff] %v5381_v27  ;;  %1670 = vrot.lane.b32.xlu1 %v1663_v28, %s4085_s25  ;;  %v7097_v45 = vrot.slane %v5225_v24, 2  ;;  %v1859_v27 = vmul.f32 %v5333_v21, %v4581_v34  ;;  %v881_v51 = vsel %vm833_vm14, %v879_v41, %v880_v14  ;;  %v5416_v49 = vsel %vm833_vm14, %v877_v62, %v7098_v1 }
 0x32c   : > { %1668 = vrot.lane.b32.xlu0 %v1661_v22, %s4085_s25  ;;  %v878_v44 = vsel %vm833_vm14, %v876_v38, %v877_v62  ;;  %v1861_v24 = vmul.f32 %v4920_v53, %v4581_v34  ;;  %v7099_v31 = vrot.slane %v5108_v2, 1  ;;  %v1870_v36 = vrot.slane %v1858_v11, 2 }
 0x32d   : > { %v1801_v10 = vsel %vm1074_vm15, %v1795_v35, %v7097_v45  ;;  %v5407_v28 = vpop.permute.xlu1 %1458  ;;  %v735_v35 = vsel %vm687_vm1, %v5069_v20, %v5067_v55  ;;  %v1871_v38 = vrot.slane %v1860_v7, 2  ;;  %v5432_v34 = vmul.f32 %v4587_v37, %v4920_v53 }
 0x32e   : > { %v5409_v22 = vpop.permute.xlu0 %1456  ;;  %v885_v29 = vsel %vm833_vm14, %v880_v14, %v7099_v31  ;;  %v5436_v20 = vmul.f32 %v4587_v37, %v4906_v19  ;;  %v745_v2 = vadd.f32 %v5067_v55, %v658_v3  ;;  %v810_v62 = vsel %vm762_vm2, %v5077_v52, %v5079_v43 }
 0x32f   : > { %1806 = vrot.lane.b32.xlu1 %v1799_v57, %s4084_s14  ;;  %v1873_v14 = vrot.slane %v1859_v27, 2  ;;  %v5444_v11 = vmul.f32 %v4587_v37, %v4918_v58  ;;  %v744_v7 = vadd.f32 %v735_v35, %v657_v15  ;;  %v1106_v45 = vmul.f32 %v4577_v32, %v4862_v6 }
 0x330   : > { %1804 = vrot.lane.b32.xlu0 %v1796_v61, %s4084_s14  ;;  %v1874_v61 = vrot.slane %v1861_v24, 2  ;;  %v5450_v1 = vmul.f32 %v4577_v32, %v4672_v13  ;;  %v820_v55 = vadd.f32 %v5079_v43, %v745_v2  ;;  %v736_v52 = vsel %vm687_vm1, %v5089_v5, %v5087_v54 }
 0x331   : > { %v956_v57 = vpop.permute.xlu1 %955  ;;  %v1872_v3 = vsel %vm1074_vm15, %v1870_v36, %v1871_v38  ;;  %v7100_v15 = vrot.slane %v5245_v46, 2  ;;  %v819_v24 = vadd.f32 %v810_v62, %v744_v7  ;;  %v2087_v6 = vrot.slane %v2073_v9, 1 }
 0x332   : > { %v958_v41 = vpop.permute.xlu0 %957  ;;  %v2088_v13 = vrot.slane %v5432_v34, 1  ;;  %v2084_v43 = vrot.slane %v5436_v20, 1  ;;  %v747_v35 = vadd.f32 %v5087_v54, %v660_v0  ;;  %v811_v5 = vsel %vm762_vm2, %v5114_v4, %v5116_v48 }
 0x333   : > { %v1877_v27 = vsel %vm1074_vm15, %v1871_v38, %v7100_v15  ;;  %1810 = vrot.lane.b32.xlu1 %v1803_v56, %s4084_s14  ;;  %v1105_v46 = vmul.f32 %v4577_v32, %v4860_v18  ;;  %v1107_v31 = vmul.f32 %v4577_v32, %v4670_v12  ;;  %v746_v56 = vadd.f32 %v736_v52, %v659_v50 }
 0x334   : > { %1808 = vrot.lane.b32.xlu0 %v1801_v10, %s4084_s14  ;;  %v1875_v38 = vsel %vm1074_vm15, %v1873_v14, %v1874_v61  ;;  %v2085_v9 = vrot.slane %v5444_v11, 1  ;;  %v1121_v20 = vrot.slane %v5450_v1, 2  ;;  %v822_v54 = vadd.f32 %v5116_v48, %v747_v35 }
 0x335   : > { %v960_v36 = vpop.permute.xlu1 %959  ;;  %v893_v0 = vadd.f32 %v881_v51, %v820_v55  ;;  %v967_v4 = vsel %vm687_vm1, %v956_v57, %v958_v41  ;;  %v7101_v2 = vrot.slane %v5241_v59, 2  ;;  %v821_v62 = vadd.f32 %v811_v5, %v746_v56 }
 0x336   : > { %v962_v10 = vpop.permute.xlu0 %961  ;;  %v892_v12 = vadd.f32 %v878_v44, %v819_v24  ;;  %v2089_v50 = vsel %vm833_vm14, %v2087_v6, %v2088_v13  ;;  %v1120_v14 = vrot.slane %v1106_v45, 2  ;;  %v1117_v48 = vrot.slane %v1105_v46, 2 }
 0x337   : > { %v1879_v18 = vsel %vm1074_vm15, %v1874_v61, %v7101_v2  ;;  %1880 = vrot.lane.b32.xlu1 %v1872_v3, %s4085_s25  ;;  %v977_v7 = vadd.f32 %v958_v41, %v893_v0  ;;  %v1118_v51 = vrot.slane %v1107_v31, 2  ;;  %v2077_v57 = vmul.f32 %v4587_v37, %v4824_v23 }
 0x338   : > { %1882 = vrot.lane.b32.xlu0 %v1875_v38, %s4085_s25  ;;  %v976_v59 = vadd.f32 %v967_v4, %v892_v12  ;;  %v1122_v44 = vsel %vm1074_vm15, %v1120_v14, %v1121_v20  ;;  %v2076_v55 = vmul.f32 %v4587_v37, %v4822_v47  ;;  %v2117_v52 = vmul.f32 %v4593_v40, %v4908_v8 }
 0x339   : > { %v1042_v1 = vpop.permute.xlu1 %1041  ;;  %v895_v3 = vadd.f32 %v885_v29, %v822_v54  ;;  %v968_v45 = vsel %vm687_vm1, %v960_v36, %v962_v10  ;;  %v894_v24 = vadd.f32 %v5416_v49, %v821_v62  ;;  %v2119_v35 = vmul.f32 %v4593_v40, %v4920_v53 }
 0x33a   : > { %v1040_v61 = vpop.permute.xlu0 %1039  ;;  %v1061_v41 = vadd.f32 %v1042_v1, %v977_v7  ;;  %v1119_v46 = vsel %vm1074_vm15, %v1117_v48, %v1118_v51  ;;  %v2116_v29 = vmul.f32 %v4593_v40, %v4906_v19  ;;  %v2086_v49 = vsel %vm833_vm14, %v2084_v43, %v2085_v9 }
 0x33b   : > { %v1051_v15 = vsel %vm762_vm2, %v1040_v61, %v1042_v1  ;;  %1884 = vrot.lane.b32.xlu1 %v1877_v27, %s4085_s25  ;;  %v979_v37 = vadd.f32 %v962_v10, %v895_v3  ;;  %v978_v31 = vadd.f32 %v968_v45, %v894_v24  ;;  %v2118_v38 = vmul.f32 %v4593_v40, %v4918_v58 }
 0x33c   : > { %v1060_v6 = vadd.f32 %v1051_v15, %v976_v59  ;;  %1886 = vrot.lane.b32.xlu0 %v1879_v18, %s4085_s25  ;;  %v1134_v5 = vadd.f32 %v1122_v44, %v1061_v41  ;;  %v2092_v0 = vrot.slane %v2077_v57, 1  ;;  %v7102_v4 = vrot.slane %v5132_v42, 2 }
 0x33d   : > { %v1046_v56 = vpop.permute.xlu1 %1045  ;;  %v2090_v62 = vrot.slane %v2076_v55, 1  ;;  %v7103_v43 = vrot.slane %v5140_v17, 2  ;;  %v2131_v14 = vrot.slane %v2117_v52, 1  ;;  %v2132_v48 = vrot.slane %v2119_v35, 1 }
 0x33e   : > { %v1044_v36 = vpop.permute.xlu0 %1043  ;;  %v1133_v27 = vadd.f32 %v1119_v46, %v1060_v6  ;;  %v1063_v54 = vadd.f32 %v1046_v56, %v979_v37  ;;  %v1126_v2 = vsel %vm1074_vm15, %v1121_v20, %v7102_v4  ;;  %v2128_v59 = vrot.slane %v2116_v29, 1 }
 0x33f   : > { %v1052_v10 = vsel %vm762_vm2, %v1044_v36, %v1046_v56  ;;  %2096 = vrot.lane.b32.xlu1 %v2089_v50, %s4084_s14  ;;  %v1124_v12 = vsel %vm1074_vm15, %v1118_v51, %v7103_v43  ;;  %v2121_v57 = vmul.f32 %v4593_v40, %v4824_v23  ;;  %v2129_v61 = vrot.slane %v2118_v38, 1  ;;  %v7104_v56 = vld [vmem:[#allocation85_spill] sm:$0xff]  ;;  %v7105_v36 = vld [vmem:[#allocation84_spill] sm:$0xff] }
 0x340   : > { %v1062_v18 = vadd.f32 %v1052_v10, %v978_v31  ;;  %2094 = vrot.lane.b32.xlu0 %v2086_v49, %s4084_s14  ;;  %v1136_v7 = vadd.f32 %v1126_v2, %v1063_v54  ;;  %v2120_v50 = vmul.f32 %v4593_v40, %v4822_v47  ;;  %v2161_v44 = vmul.f32 %v4591_v39, %v4908_v8  ;;  %v7106_v10 = vld [vmem:[#allocation81_spill] sm:$0xff] }
 0x341   : > { %v1199_v42 = vpop.permute.xlu1 %1198  ;;  %v2093_v17 = vsel %vm833_vm14, %v2088_v13, %v2092_v0  ;;  %v2091_v51 = vsel %vm833_vm14, %v2085_v9, %v2090_v62  ;;  %v5530_v55 = vmul.f32 %v4591_v39, %v4920_v53  ;;  %v2160_v40 = vmul.f32 %v4591_v39, %v4906_v19  ;;  %v7107_v62 = vld [vmem:[#allocation31_spill] sm:$0xff] }
 0x342   : > { %v1197_v1 = vpop.permute.xlu0 %1196  ;;  %v1135_v20 = vadd.f32 %v1124_v12, %v1062_v18  ;;  %v5538_v34 = vmul.f32 %v4591_v39, %v4918_v58  ;;  %v2136_v13 = vrot.slane %v2121_v57, 1  ;;  %v2133_v9 = vsel %vm833_vm14, %v2131_v14, %v2132_v48 }
 0x343   : > { %2100 = vrot.lane.b32.xlu1 %v2093_v17, %s4084_s14  ;;  %v2130_v3 = vsel %vm833_vm14, %v2128_v59, %v2129_v61  ;;  %v2134_v45 = vrot.slane %v2120_v50, 1  ;;  %v2175_v41 = vrot.slane %v2161_v44, 1  ;;  %v1210_v15 = vsel %vm687_vm1, %v5159_v63, %v5153_v16  ;;  %v7108_v17 = vld [vmem:[#allocation45_spill] sm:$0xff] }
 0x344   : > { %2098 = vrot.lane.b32.xlu0 %v2091_v51, %s4084_s14  ;;  %v1208_v24 = vsel %vm687_vm1, %v1197_v1, %v1199_v42  ;;  %v2137_v6 = vsel %vm833_vm14, %v2132_v48, %v2136_v13  ;;  %v2176_v35 = vrot.slane %v5530_v55, 1  ;;  %v2172_v46 = vrot.slane %v2160_v40, 1  ;;  %v7109_v55 = vld [vmem:[#allocation43_spill] sm:$0xff] }
 0x345   : > { %v1203_v52 = vpop.permute.xlu1 %1202  ;;  %v2135_v37 = vsel %vm833_vm14, %v2129_v61, %v2134_v45  ;;  %v2173_v29 = vrot.slane %v5538_v34, 1  ;;  %v2165_v31 = vmul.f32 %v4591_v39, %v4824_v23  ;;  %v1222_v63 = vadd.f32 %v5153_v16, %v5151_v60 }
 0x346   : > { %v1201_v11 = vpop.permute.xlu0 %1200  ;;  %v1294_v49 = vsel %vm762_vm2, %v7105_v36, %v7104_v56  ;;  %v1218_v38 = vadd.f32 %v1199_v42, %v1134_v5  ;;  %v2164_v54 = vmul.f32 %v4591_v39, %v4822_v47  ;;  %v1221_v0 = vadd.f32 %v1210_v15, %v7106_v10  ;;  %v7111_v10 = vld [vmem:[#allocation33_spill] sm:$0xff] }
 0x347   : > { %2140 = vrot.lane.b32.xlu1 %v2133_v9, %s4085_s25  ;;  %v1217_v4 = vadd.f32 %v1208_v24, %v1133_v27  ;;  %v2205_v43 = vmul.f32 %v7107_v62, %v4908_v8  ;;  %v5566_v23 = vmul.f32 %v7107_v62, %v4920_v53  ;;  %v1306_v60 = vadd.f32 %v7104_v56, %v1222_v63 }
 0x348   : > { %2138 = vrot.lane.b32.xlu0 %v2130_v3, %s4085_s25  ;;  %v1209_v16 = vsel %vm687_vm1, %v1201_v11, %v1203_v52  ;;  %v1305_v39 = vadd.f32 %v1294_v49, %v1221_v0  ;;  %v2177_v27 = vsel %vm833_vm14, %v2175_v41, %v2176_v35  ;;  %v1220_v8 = vadd.f32 %v1203_v52, %v1136_v7  ;;  %v7110_v11 = vld [vmem:[#allocation46_spill] sm:$0xff] }
 0x349   : > { %v1281_v2 = vpop.permute.xlu1 %1280  ;;  %v2174_v14 = vsel %vm833_vm14, %v2172_v46, %v2173_v29  ;;  %v2180_v48 = vrot.slane %v2165_v31, 1  ;;  %v2204_v59 = vmul.f32 %v7107_v62, %v4906_v19  ;;  %v1219_v57 = vadd.f32 %v1209_v16, %v1135_v20 }
 0x34a   : > { %v1283_v18 = vpop.permute.xlu0 %1282  ;;  %v2219_v61 = vrot.slane %v2205_v43, 1  ;;  %v2220_v50 = vrot.slane %v5566_v23, 1  ;;  %v2206_v44 = vmul.f32 %v7107_v62, %v4918_v58  ;;  %v2853_v51 = vadd.f32 %v7108_v17, %v1306_v60 }
 0x34b   : > { %v1292_v5 = vsel %vm762_vm2, %v1281_v2, %v1283_v18  ;;  %v1302_v12 = vadd.f32 %v1283_v18, %v1218_v38  ;;  %2144 = vrot.lane.b32.xlu1 %v2137_v6, %s4085_s25  ;;  %v2852_v13 = vadd.f32 %v7108_v17, %v1305_v39  ;;  %v2178_v52 = vrot.slane %v2164_v54, 1  ;;  %v5629_v39 = vld [vmem:[#allocation3 + $0x10] sm:$0xff] }
 0x34c   : > { %v1301_v47 = vadd.f32 %v1292_v5, %v1217_v4  ;;  %2142 = vrot.lane.b32.xlu0 %v2135_v37, %s4085_s25  ;;  %v2181_v58 = vsel %vm833_vm14, %v2176_v35, %v2180_v48  ;;  %v2216_v24 = vrot.slane %v2204_v59, 1  ;;  %v2217_v6 = vrot.slane %v2206_v44, 1  ;;  %v5598_v35 = vld [vmem:[#allocation3 + $0x28] sm:$0x1]  ;;  %v7116_v5 = vld [vmem:[#allocation100_spill] sm:$0xff]  ;;  %7117 = vst [vmem:[#allocation33_spill] sm:$0xff] %v5629_v39 }
 0x34d   : > { %v1285_v42 = vpop.permute.xlu1 %1284  ;;  %v2849_v40 = vadd.f32 %v7109_v55, %v1302_v12  ;;  %v2179_v15 = vsel %vm833_vm14, %v2173_v29, %v2178_v52  ;;  %v2878_v37 = vrot.slane %v2853_v51, 1  ;;  %v2221_v63 = vsel %vm833_vm14, %v2219_v61, %v2220_v50  ;;  %v5602_v29 = vld [vmem:[#allocation3 + $0x20] sm:$0x1]  ;;  %v7124_v52 = vld [vmem:[#allocation30_spill] sm:$0xff] }
 0x34e   : > { %v1287_v1 = vpop.permute.xlu0 %1286  ;;  %v2848_v19 = vadd.f32 %v7109_v55, %v1301_v47  ;;  %v2876_v56 = vrot.slane %v2852_v13, 1  ;;  %v2209_v38 = vmul.f32 %v5598_v35, %v7107_v62  ;;  %v2208_v54 = vmul.f32 %v5602_v29, %v7107_v62 }
 0x34f   : > { %v1293_v7 = vsel %vm762_vm2, %v1285_v42, %v1287_v1  ;;  %v1304_v34 = vadd.f32 %v1287_v1, %v1220_v8  ;;  %2184 = vrot.lane.b32.xlu1 %v2177_v27, %s4086_s19  ;;  %v2873_v46 = vrot.slane %v2849_v40, 1  ;;  %v2268_v0 = vmul.f32 %v7111_v10, %v5287_v33  ;;  %v7120_v40 = vld [vmem:[#allocation83_spill] sm:$0xff] }
 0x350   : > { %v1303_v20 = vadd.f32 %v1293_v7, %v1219_v57  ;;  %2182 = vrot.lane.b32.xlu0 %v2174_v14, %s4086_s19  ;;  %v2870_v36 = vrot.slane %v2848_v19, 1  ;;  %v2218_v23 = vsel %vm833_vm14, %v2216_v24, %v2217_v6  ;;  %v2270_v60 = vmul.f32 %v7111_v10, %v4920_v53 }
 0x351   : > { %v2851_v9 = vadd.f32 %v7110_v11, %v1304_v34  ;;  %v5590_v45 = vpop.permute.xlu1 %1382  ;;  %v2267_v12 = vmul.f32 %v7111_v10, %v7116_v5  ;;  %v2269_v47 = vmul.f32 %v5629_v39, %v7111_v10  ;;  %v2224_v8 = vrot.slane %v2209_v38, 1  ;;  %v7121_v34 = vld [vmem:[#allocation82_spill] sm:$0xff] }
 0x352   : > { %v2850_v3 = vadd.f32 %v7110_v11, %v1303_v20  ;;  %v5592_v41 = vpop.permute.xlu0 %1384  ;;  %v2222_v14 = vrot.slane %v2208_v54, 1  ;;  %v2282_v57 = vrot.slane %v2268_v0, 2  ;;  %v2283_v42 = vrot.slane %v2270_v60, 2  ;;  %v5920_v11 = vld [vmem:[#allocation3 + $0x28] sm:$0x7] }
 0x353   : > { %v2874_v31 = vrot.slane %v2851_v9, 1  ;;  %2188 = vrot.lane.b32.xlu1 %v2181_v58, %s4086_s19  ;;  %v2225_v1 = vsel %vm833_vm14, %v2220_v50, %v2224_v8  ;;  %v2279_v44 = vrot.slane %v2267_v12, 2  ;;  %v2280_v51 = vrot.slane %v2269_v47, 2  ;;  %v7129_v47 = vld [vmem:[#allocation35_spill] sm:$0xff]  ;;  %7157 = vst [vmem:[#allocation126_spill] sm:$0xff] %v5920_v11 }
 0x354   : > { %v2871_v49 = vrot.slane %v2850_v3, 1  ;;  %2186 = vrot.lane.b32.xlu0 %v2179_v15, %s4086_s19  ;;  %v2223_v61 = vsel %vm833_vm14, %v2217_v6, %v2222_v14  ;;  %v2272_v7 = vmul.f32 %v7111_v10, %v7120_v40  ;;  %v2271_v13 = vmul.f32 %v7111_v10, %v7121_v34  ;;  %v5659_v3 = vld [vmem:[#allocation3 + $0x18] sm:$0xff] }
 0x355   : > { %v5609_v4 = vsel %vm833_vm14, %v2874_v31, %v2878_v37  ;;  %v5612_v2 = vsel %vm833_vm14, %v2873_v46, %v2874_v31  ;;  %v5614_v18 = vpop.permute.xlu1 %1450  ;;  %v2284_v50 = vsel %vm1074_vm15, %v2282_v57, %v2283_v42  ;;  %v2312_v9 = vmul.f32 %v7124_v52, %v5287_v33 }
 0x356   : > { %7112 = vst [vmem:[#allocation85_spill] sm:$0xff] %v5609_v4  ;;  %7113 = vst [vmem:[#allocation84_spill] sm:$0xff] %v5612_v2  ;;  %v5616_v43 = vpop.permute.xlu0 %1448  ;;  %v5622_v62 = vsel %vm833_vm14, %v2871_v49, %v2876_v56  ;;  %v5625_v16 = vsel %vm833_vm14, %v2870_v36, %v2871_v49  ;;  %v2281_v58 = vsel %vm1074_vm15, %v2279_v44, %v2280_v51  ;;  %v2287_v37 = vrot.slane %v2272_v7, 2 }
 0x357   : > { %7114 = vst [vmem:[#allocation81_spill] sm:$0xff] %v5622_v62  ;;  %7115 = vst [vmem:[#allocation31_spill] sm:$0xff] %v5625_v16  ;;  %2228 = vrot.lane.b32.xlu1 %v2221_v63, %s4087_s26  ;;  %v2314_v15 = vmul.f32 %v5659_v3, %v7124_v52  ;;  %v2311_v24 = vmul.f32 %v7124_v52, %v7116_v5  ;;  %v2313_v6 = vmul.f32 %v5629_v39, %v7124_v52 }
 0x358   : > { %2226 = vrot.lane.b32.xlu0 %v2218_v23, %s4087_s26  ;;  %v2285_v46 = vrot.slane %v2271_v13, 2  ;;  %v2288_v56 = vsel %vm1074_vm15, %v2283_v42, %v2287_v37  ;;  %v2326_v36 = vrot.slane %v2312_v9, 2  ;;  %v2316_v0 = vmul.f32 %v7124_v52, %v7120_v40 }
 0x359   : > { %v5639_v48 = vpop.permute.xlu1 %1941  ;;  %v2327_v38 = vrot.slane %v2314_v15, 2  ;;  %v2323_v54 = vrot.slane %v2311_v24, 2  ;;  %v2324_v10 = vrot.slane %v2313_v6, 2  ;;  %v2315_v23 = vmul.f32 %v7124_v52, %v7121_v34 }
 0x35a   : > { %7118 = vst [vmem:[#allocation100_spill] sm:$0xff] %v5639_v48  ;;  %v5641_v59 = vpop.permute.xlu0 %1939  ;;  %v2286_v49 = vsel %vm1074_vm15, %v2280_v51, %v2285_v46  ;;  %v2356_v8 = vmul.f32 %v7129_v47, %v5287_v33  ;;  %v2358_v14 = vmul.f32 %v5659_v3, %v7129_v47  ;;  %v2331_v44 = vrot.slane %v2316_v0, 2 }
 0x35b   : > { %7119 = vst [vmem:[#allocation113_spill] sm:$0xff] %v5641_v59  ;;  %2232 = vrot.lane.b32.xlu1 %v2225_v1, %s4087_s26  ;;  %v2328_v57 = vsel %vm1074_vm15, %v2326_v36, %v2327_v38  ;;  %v2325_v42 = vsel %vm1074_vm15, %v2323_v54, %v2324_v10  ;;  %v2355_v1 = vmul.f32 %v7129_v47, %v7116_v5  ;;  %v2329_v51 = vrot.slane %v2315_v23, 2 }
 0x35c   : > { %2230 = vrot.lane.b32.xlu0 %v2223_v61, %s4087_s26  ;;  %v2357_v61 = vmul.f32 %v5629_v39, %v7129_v47  ;;  %v2371_v52 = vrot.slane %v2358_v14, 2  ;;  %v2332_v9 = vsel %vm1074_vm15, %v2327_v38, %v2331_v44  ;;  %v2360_v6 = vmul.f32 %v7129_v47, %v7120_v40 }
 0x35d   : > { %v5651_v19 = vpop.permute.xlu1 %1971  ;;  %v2367_v15 = vrot.slane %v2355_v1, 2  ;;  %v2359_v37 = vmul.f32 %v7129_v47, %v7121_v34  ;;  %v1506_v4 = vmul.f32 %v5287_v33, %v4567_v26  ;;  %v1508_v55 = vmul.f32 %v5659_v3, %v4567_v26 }
 0x35e   : > { %7122 = vst [vmem:[#allocation83_spill] sm:$0xff] %v5651_v19  ;;  %v5653_v20 = vpop.permute.xlu0 %1969  ;;  %v2368_v24 = vrot.slane %v2357_v61, 2  ;;  %v2375_v47 = vrot.slane %v2360_v6, 2 }
 0x35f   : > { %7123 = vst [vmem:[#allocation82_spill] sm:$0xff] %v5653_v20  ;;  %2291 = vrot.lane.b32.xlu1 %v2284_v50, %s4084_s14  ;;  %v2370_v50 = vrot.slane %v2356_v8, 2  ;;  %v2373_v8 = vrot.slane %v2359_v37, 2  ;;  %v7133_v37 = vld [vmem:[#allocation34_spill] sm:$0xff] }
 0x360   : > { %2289 = vrot.lane.b32.xlu0 %v2281_v58, %s4084_s14  ;;  %v2330_v58 = vsel %vm1074_vm15, %v2324_v10, %v2329_v51  ;;  %v2369_v54 = vsel %vm1074_vm15, %v2367_v15, %v2368_v24  ;;  %v1507_v15 = vmul.f32 %v5629_v39, %v4567_v26 }
 0x361   : > { %v5669_v31 = vpop.permute.xlu1 %2001  ;;  %v2372_v36 = vsel %vm1074_vm15, %v2370_v50, %v2371_v52  ;;  %v2374_v61 = vsel %vm1074_vm15, %v2368_v24, %v2373_v8 }
 0x362   : > { %7125 = vst [vmem:[#allocation30_spill] sm:$0xff] %v5669_v31  ;;  %v5671_v63 = vpop.permute.xlu0 %1999 }
 0x363   : > { %7126 = vst [vmem:[#allocation114_spill] sm:$0xff] %v5671_v63  ;;  %2295 = vrot.lane.b32.xlu1 %v2288_v56, %s4084_s14  ;;  %v7145_v63 = vld [vmem:[#allocation36_spill] sm:$0xff] }
 0x364   : > { %2293 = vrot.lane.b32.xlu0 %v2286_v49, %s4084_s14  ;;  %v7130_v49 = vld [vmem:[#allocation32_spill] sm:$0xff] }
 0x365   : > { %v5681_v60 = vpop.permute.xlu1 %2032  ;;  %v2400_v38 = vmul.f32 %v7130_v49, %v5287_v33  ;;  %v2402_v10 = vmul.f32 %v5659_v3, %v7130_v49  ;;  %v2399_v0 = vmul.f32 %v7130_v49, %v7116_v5  ;;  %v2401_v23 = vmul.f32 %v5629_v39, %v7130_v49 }
 0x366   : > { %7127 = vst [vmem:[#allocation115_spill] sm:$0xff] %v5681_v60  ;;  %v5683_v12 = vpop.permute.xlu0 %2030  ;;  %v5787_v60 = vld [vmem:[#allocation3] sm:$0xfe] }
 0x367   : > { %7128 = vst [vmem:[#allocation116_spill] sm:$0xff] %v5683_v12  ;;  %2335 = vrot.lane.b32.xlu1 %v2328_v57, %s4085_s25  ;;  %v2414_v1 = vrot.slane %v2400_v38, 2  ;;  %v2415_v44 = vrot.slane %v2402_v10, 2  ;;  %v2411_v51 = vrot.slane %v2399_v0, 2  ;;  %v2412_v50 = vrot.slane %v2401_v23, 2 }
 0x368   : > { %2333 = vrot.lane.b32.xlu0 %v2325_v42, %s4085_s25  ;;  %v2376_v42 = vsel %vm1074_vm15, %v2371_v52, %v2375_v47  ;;  %v2403_v52 = vmul.f32 %v7130_v49, %v7121_v34  ;;  %v5749_v38 = vmul.f32 %v5659_v3, %v7133_v37  ;;  %v5759_v0 = vmul.f32 %v5602_v29, %v4565_v25 }
 0x369   : > { %v5697_v7 = vpop.permute.xlu1 %1386  ;;  %v2413_v10 = vsel %vm1074_vm15, %v2411_v51, %v2412_v50  ;;  %v5763_v23 = vmul.f32 %v5598_v35, %v4565_v25  ;;  %v5767_v47 = vmul.f32 %v7121_v34, %v4567_v26 }
 0x36a   : > { %v5699_v13 = vpop.permute.xlu0 %1388  ;;  %v2417_v29 = vrot.slane %v2403_v52, 2  ;;  %v2479_v27 = vrot.slane %v5749_v38, 3 }
 0x36b   : > { %2339 = vrot.lane.b32.xlu1 %v2332_v9, %s4085_s25  ;;  %v2404_v9 = vmul.f32 %v7130_v49, %v7120_v40  ;;  %v2465_v49 = vmul.f32 %v5629_v39, %v7133_v37 }
 0x36c   : > { %2337 = vrot.lane.b32.xlu0 %v2330_v58, %s4085_s25  ;;  %v1505_v58 = vmul.f32 %v7116_v5, %v4567_v26  ;;  %v2463_v5 = vmul.f32 %v7133_v37, %v5342_v30 }
 0x36d   : > { %v5709_v46 = vpop.permute.xlu1 %1454  ;;  %v2419_v8 = vrot.slane %v2404_v9, 2  ;;  %v2476_v9 = vrot.slane %v2465_v49, 3  ;;  %v5808_v49 = vmul.f32 %v5629_v39, %v4565_v25 }
 0x36e   : > { %v5711_v56 = vpop.permute.xlu0 %1452 }
 0x36f   : > { %2379 = vrot.lane.b32.xlu1 %v2372_v36, %s4086_s19  ;;  %v2464_v36 = vmul.f32 %v7133_v37, %v5333_v21  ;;  %v2420_v53 = vsel %vm1074_vm15, %v2415_v44, %v2419_v8  ;;  %v5812_v8 = vmul.f32 %v5659_v3, %v4565_v25 }
 0x370   : > { %2377 = vrot.lane.b32.xlu0 %v2369_v54, %s4086_s19  ;;  %v2416_v54 = vsel %vm1074_vm15, %v2414_v1, %v2415_v44  ;;  %v1518_v1 = vrot.slane %v1507_v15, 1  ;;  %v5791_v44 = vmul.f32 %v5787_v60, %v4565_v25 }
 0x371   : > { %v5725_v14 = vpop.permute.xlu1 %1596  ;;  %v2478_v34 = vrot.slane %v2464_v36, 3  ;;  %v5793_v36 = vld [vmem:[#allocation3 + $0x8] sm:$0xfe] }
 0x372   : > { %v5727_v57 = vpop.permute.xlu0 %1598 }
 0x373   : > { %2383 = vrot.lane.b32.xlu1 %v2376_v42, %s4086_s19  ;;  %v1517_v42 = vrot.slane %v1505_v58, 1  ;;  %v7136_v58 = vld [vmem:[#allocation88_spill] sm:$0xff]  ;;  %v2480_v19 = vsel %vm2445_vm3, %v2478_v34, %v2479_v27 }
 0x374   : > { %2381 = vrot.lane.b32.xlu0 %v2374_v61, %s4086_s19  ;;  %v5773_v61 = vmul.f32 %v7120_v40, %v4567_v26  ;;  %v2468_v15 = vmul.f32 %v7133_v37, %v7136_v58  ;;  %v7137_v40 = vld [vmem:[#allocation37_spill] sm:$0xff]  ;;  %7138 = vst [vmem:[#allocation88_spill] sm:$0xff] %v5787_v60  ;;  %v2552_v60 = vmul.f32 %v7145_v63, %v5333_v21 }
 0x375   : > { %v5741_v24 = vpop.permute.xlu1 %1674  ;;  %v2508_v12 = vmul.f32 %v7137_v40, %v5333_v21  ;;  %7139 = vst [vmem:[#allocation37_spill] sm:$0xff] %v5793_v36  ;;  %v2510_v38 = vmul.f32 %v5659_v3, %v7137_v40  ;;  %v2507_v20 = vmul.f32 %v7137_v40, %v5342_v30  ;;  %v2556_v33 = vmul.f32 %v7145_v63, %v7136_v58 }
 0x376   : > { %7131 = vst [vmem:[#allocation35_spill] sm:$0xff] %v5741_v24  ;;  %v5743_v6 = vpop.permute.xlu0 %1672  ;;  %v2483_v59 = vrot.slane %v2468_v15, 3  ;;  %v5852_v15 = vmul.f32 %v7136_v58, %v4577_v32 }
 0x377   : > { %7132 = vst [vmem:[#allocation32_spill] sm:$0xff] %v5743_v6  ;;  %2423 = vrot.lane.b32.xlu1 %v2416_v54, %s4087_s26  ;;  %v2475_v54 = vrot.slane %v2463_v5, 3  ;;  %v5804_v5 = vsel %vm833_vm14, %v1517_v42, %v1518_v1  ;;  %v2522_v48 = vrot.slane %v2508_v12, 3  ;;  %v5848_v12 = vmul.f32 %v5629_v39, %v7145_v63 }
 0x378   : > { %2421 = vrot.lane.b32.xlu0 %v2413_v10, %s4087_s26  ;;  %v2418_v10 = vsel %vm1074_vm15, %v2412_v50, %v2417_v29  ;;  %v5797_v50 = vmul.f32 %v5793_v36, %v4565_v25  ;;  %v7140_v29 = vld [vmem:[#allocation89_spill] sm:$0xff]  ;;  %v2509_v25 = vmul.f32 %v5629_v39, %v7137_v40  ;;  %v5840_v36 = vmul.f32 %v5659_v3, %v7145_v63 }
 0x379   : > { %v5775_v51 = vpop.permute.xlu1 %1814  ;;  %v2467_v52 = vmul.f32 %v7133_v37, %v7140_v29  ;;  %v2477_v37 = vsel %vm2445_vm3, %v2475_v54, %v2476_v9  ;;  %v2511_v54 = vmul.f32 %v7137_v40, %v7140_v29  ;;  %7146 = vst [vmem:[#allocation36_spill] sm:$0xff] %v5852_v15  ;;  %v2484_v2 = vsel %vm2445_vm3, %v2479_v27, %v2483_v59 }
 0x37a   : > { %7134 = vst [vmem:[#allocation34_spill] sm:$0xff] %v5775_v51  ;;  %v5777_v35 = vpop.permute.xlu0 %1812  ;;  %v2520_v16 = vrot.slane %v2509_v25, 3  ;;  %v2564_v59 = vrot.slane %v5848_v12, 3  ;;  %v5909_v12 = vld [vmem:[#allocation3] sm:$0xf0]  ;;  %v1722_v51 = vmul.f32 %v5333_v21, %v4577_v32  ;;  %v7169_v6 = vrot.slane %v5852_v15, 2 }
 0x37b   : > { %7135 = vst [vmem:[#allocation117_spill] sm:$0xff] %v5777_v35  ;;  %2427 = vrot.lane.b32.xlu1 %v2420_v53, %s4087_s26  ;;  %v7141_v53 = vrot.slane %v5767_v47, 1  ;;  %v2481_v34 = vrot.slane %v2467_v52, 3  ;;  %v2525_v25 = vrot.slane %v2511_v54, 3  ;;  %v1520_v54 = vrot.slane %v1506_v4, 1  ;;  %7156 = vst [vmem:[#allocation125_spill] sm:$0xff] %v5909_v12 }
 0x37c   : > { %2425 = vrot.lane.b32.xlu0 %v2418_v10, %s4087_s26 }
 0x37d   : > { %v5819_v10 = vsel %vm833_vm14, %v1518_v1, %v7141_v53  ;;  %v5822_v42 = vpop.permute.xlu1 %1890  ;;  %v2523_v1 = vrot.slane %v2510_v38, 3  ;;  %v2512_v53 = vmul.f32 %v7137_v40, %v7136_v58  ;;  %v5856_v38 = vmul.f32 %v7140_v29, %v4577_v32 }
 0x37e   : > { %7142 = vst [vmem:[#allocation89_spill] sm:$0xff] %v5819_v10  ;;  %7143 = vst [vmem:[#allocation118_spill] sm:$0xff] %v5822_v42  ;;  %v5824_v31 = vpop.permute.xlu0 %1888  ;;  %v2519_v40 = vrot.slane %v2507_v20, 3  ;;  %v2482_v62 = vsel %vm2445_vm3, %v2476_v9, %v2481_v34  ;;  %v2567_v20 = vrot.slane %v5840_v36, 3  ;;  %v2526_v34 = vsel %vm2445_vm3, %v2520_v16, %v2525_v25 }
 0x37f   : > { %7144 = vst [vmem:[#allocation119_spill] sm:$0xff] %v5824_v31  ;;  %2487 = vrot.lane.b32.xlu1 %v2480_v19, %s4084_s14  ;;  %v2551_v19 = vmul.f32 %v7145_v63, %v5342_v30  ;;  %7147 = vst [vmem:[#allocation120_spill] sm:$0xff] %v5856_v38  ;;  %v2527_v17 = vrot.slane %v2512_v53, 3  ;;  %v5885_v53 = vld [vmem:[#allocation3 + $0x8] sm:$0xf0]  ;;  %v1521_v58 = vrot.slane %v1508_v55, 1 }
 0x380   : > { %2485 = vrot.lane.b32.xlu0 %v2477_v37, %s4084_s14  ;;  %v2571_v55 = vrot.slane %v2556_v33, 3 }
 0x381   : > { %v5858_v37 = vpop.permute.xlu1 %1945  ;;  %v2563_v27 = vrot.slane %v2551_v19, 3  ;;  %v5918_v33 = vsel %vm833_vm14, %v1520_v54, %v1521_v58  ;;  %v7159_v54 = vrot.slane %v5773_v61, 1 }
 0x382   : > { %7148 = vst [vmem:[#allocation121_spill] sm:$0xff] %v5858_v37  ;;  %v5860_v52 = vpop.permute.xlu0 %1943  ;;  %v2524_v37 = vsel %vm2445_vm3, %v2522_v48, %v2523_v1  ;;  %v2555_v48 = vmul.f32 %v7145_v63, %v7140_v29 }
 0x383   : > { %7149 = vst [vmem:[#allocation122_spill] sm:$0xff] %v5860_v52  ;;  %2491 = vrot.lane.b32.xlu1 %v2484_v2, %s4084_s14  ;;  %v2566_v52 = vrot.slane %v2552_v60, 3  ;;  %v2521_v2 = vsel %vm2445_vm3, %v2519_v40, %v2520_v16  ;;  %v7152_v60 = vld [vmem:[#allocation40_spill] sm:$0xff]  ;;  %v2565_v4 = vsel %vm2445_vm3, %v2563_v27, %v2564_v59  ;;  %v7153_v16 = vld [vmem:[#allocation39_spill] sm:$0xff] }
 0x384   : > { %2489 = vrot.lane.b32.xlu0 %v2482_v62, %s4084_s14  ;;  %v2528_v62 = vsel %vm2445_vm3, %v2523_v1, %v2527_v17  ;;  %v2596_v36 = vmul.f32 %v7152_v60, %v5333_v21  ;;  %v2598_v19 = vmul.f32 %v5659_v3, %v7152_v60  ;;  %v2595_v63 = vmul.f32 %v7152_v60, %v5342_v30 }
 0x385   : > { %v5875_v9 = vpop.permute.xlu1 %1975  ;;  %v2568_v17 = vsel %vm2445_vm3, %v2566_v52, %v2567_v20  ;;  %v2597_v29 = vmul.f32 %v5629_v39, %v7152_v60  ;;  %v2664_v1 = vmul.f32 %v7153_v16, %v5885_v53  ;;  %v5903_v40 = vmul.f32 %v5659_v3, %v7153_v16 }
 0x386   : > { %7150 = vst [vmem:[#allocation123_spill] sm:$0xff] %v5875_v9  ;;  %v5877_v26 = vpop.permute.xlu0 %1973  ;;  %v2569_v52 = vrot.slane %v2555_v48, 3  ;;  %v5915_v27 = vmul.f32 %v5629_v39, %v7153_v16  ;;  %v2611_v9 = vrot.slane %v2598_v19, 3  ;;  %v5924_v48 = vld [vmem:[#allocation3 + $0x20] sm:$0x7]  ;;  %v5934_v19 = vsel %vm833_vm14, %v1521_v58, %v7159_v54 }
 0x387   : > { %7151 = vst [vmem:[#allocation124_spill] sm:$0xff] %v5877_v26  ;;  %2531 = vrot.lane.b32.xlu1 %v2524_v37, %s4085_s25  ;;  %v2663_v26 = vmul.f32 %v5909_v12, %v7153_v16  ;;  %7158 = vst [vmem:[#allocation127_spill] sm:$0xff] %v5924_v48  ;;  %v2607_v31 = vrot.slane %v2595_v63, 3  ;;  %v2608_v42 = vrot.slane %v2597_v29, 3  ;;  %v2678_v35 = vrot.slane %v2664_v1, 4 }
 0x388   : > { %2529 = vrot.lane.b32.xlu0 %v2521_v2, %s4085_s25  ;;  %v2610_v2 = vrot.slane %v2596_v36, 3  ;;  %v2599_v36 = vmul.f32 %v5924_v48, %v7152_v60  ;;  %7160 = vst [vmem:[#allocation128_spill] sm:$0xff] %v5934_v19  ;;  %v2676_v58 = vrot.slane %v5915_v27, 4  ;;  %v1721_v63 = vmul.f32 %v5342_v30, %v4577_v32  ;;  %v5960_v27 = vld [vmem:[#allocation3 + $0x20] sm:$0xf] }
 0x389   : > { %v5905_v37 = vpop.permute.xlu1 %2005  ;;  %v1723_v29 = vmul.f32 %v5629_v39, %v4577_v32  ;;  %v2570_v21 = vsel %vm2445_vm3, %v2564_v59, %v2569_v52  ;;  %v1736_v52 = vrot.slane %v1722_v51, 2 }
 0x38a   : > { %7154 = vst [vmem:[#allocation40_spill] sm:$0xff] %v5905_v37  ;;  %v5907_v25 = vpop.permute.xlu0 %2003  ;;  %v2572_v37 = vsel %vm2445_vm3, %v2567_v20, %v2571_v55  ;;  %v2675_v55 = vrot.slane %v2663_v26, 4  ;;  %v2612_v1 = vsel %vm2445_vm3, %v2610_v2, %v2611_v9  ;;  %v2613_v54 = vrot.slane %v2599_v36, 3 }
 0x38b   : > { %7155 = vst [vmem:[#allocation39_spill] sm:$0xff] %v5907_v25  ;;  %v2600_v25 = vmul.f32 %v5920_v11, %v7152_v60  ;;  %2535 = vrot.lane.b32.xlu1 %v2528_v62, %s4085_s25  ;;  %v2679_v11 = vrot.slane %v5903_v40, 4  ;;  %v1724_v62 = vmul.f32 %v5659_v3, %v4577_v32  ;;  %v5941_v60 = vld [vmem:[#allocation3 + $0x28] sm:$0xf]  ;;  %v2609_v26 = vsel %vm2445_vm3, %v2607_v31, %v2608_v42 }
 0x38c   : > { %2533 = vrot.lane.b32.xlu0 %v2526_v34, %s4085_s25  ;;  %v2668_v30 = vmul.f32 %v7153_v16, %v5941_v60  ;;  %v2667_v32 = vmul.f32 %v5960_v27, %v7153_v16  ;;  %v5978_v36 = vsel %vm2643_vm0, %v2675_v55, %v2676_v58  ;;  %v1733_v48 = vrot.slane %v1721_v63, 2  ;;  %v7166_v63 = vld [vmem:[#allocation41_spill] sm:$0xff] }
 0x38d   : > { %v5943_v34 = vpop.permute.xlu1 %2036  ;;  %v2615_v40 = vrot.slane %v2600_v25, 3  ;;  %v5968_v25 = vsel %vm2445_vm3, %v2608_v42, %v2613_v54  ;;  %v5975_v31 = vsel %vm2643_vm0, %v2678_v35, %v2679_v11  ;;  %v1734_v16 = vrot.slane %v1723_v29, 2 }
 0x38e   : > { %7161 = vst [vmem:[#allocation129_spill] sm:$0xff] %v5943_v34  ;;  %v5945_v20 = vpop.permute.xlu0 %2034  ;;  %v2683_v35 = vrot.slane %v2668_v30, 4  ;;  %v2681_v55 = vrot.slane %v2667_v32, 4  ;;  %v2752_v29 = vmul.f32 %v7166_v63, %v5885_v53  ;;  %v5994_v54 = vmul.f32 %v5659_v3, %v7166_v63  ;;  %v3026_v34 = vld [vmem:[#allocation15 + $0x8] sm:$0xff] }
 0x38f   : > { %7162 = vst [vmem:[#allocation130_spill] sm:$0xff] %v5945_v20  ;;  %2575 = vrot.lane.b32.xlu1 %v2568_v17, %s4086_s19  ;;  %v5965_v59 = vsel %vm2445_vm3, %v2611_v9, %v2615_v40  ;;  %v1737_v17 = vrot.slane %v1724_v62, 2  ;;  %v7165_v9 = vld [vmem:[#allocation42_spill] sm:$0xff]  ;;  %v6008_v19 = vsel %vm1074_vm15, %v1733_v48, %v1734_v16 }
 0x390   : > { %2573 = vrot.lane.b32.xlu0 %v2565_v4, %s4086_s19  ;;  %v2708_v40 = vmul.f32 %v7165_v9, %v5885_v53  ;;  %v2710_v42 = vmul.f32 %v5659_v3, %v7165_v9  ;;  %v2707_v51 = vmul.f32 %v5909_v12, %v7165_v9  ;;  %v2709_v62 = vmul.f32 %v5629_v39, %v7165_v9  ;;  %v3025_v20 = vld [vmem:[#allocation15] sm:$0xff] }
 0x391   : > { %v5970_v2 = vpop.permute.xlu1 %1588  ;;  %7168 = vst [vmem:[#allocation41_spill] sm:$0xff] %v6008_v19  ;;  %v6013_v24 = vsel %vm1074_vm15, %v1737_v17, %v7169_v6  ;;  %v6024_v48 = vsel %vm2643_vm0, %v2679_v11, %v2683_v35  ;;  %v6027_v6 = vsel %vm2643_vm0, %v2676_v58, %v2681_v55  ;;  %v3028_v11 = vld [vmem:[#allocation15 + $0x18] sm:$0xff]  ;;  %v7172_v35 = vld [vmem:[#allocation112_spill] sm:$0xff] }
 0x392   : > { %7163 = vst [vmem:[#allocation131_spill] sm:$0xff] %v5970_v2  ;;  %v5972_v4 = vpop.permute.xlu0 %1590  ;;  %v5997_v2 = vsel %vm1074_vm15, %v1736_v52, %v1737_v17  ;;  %7170 = vst [vmem:[#allocation133_spill] sm:$0xff] %v6013_v24  ;;  %v2751_v52 = vmul.f32 %v5909_v12, %v7166_v63  ;;  %v2720_v10 = vrot.slane %v2709_v62, 4  ;;  %v2766_v17 = vrot.slane %v2752_v29, 4  ;;  %v2896_v24 = vld [vmem:[#allocation12] sm:$0xff]  ;;  %v7173_v12 = vld [vmem:[#allocation111_spill] sm:$0xff] }
 0x393   : > { %7164 = vst [vmem:[#allocation132_spill] sm:$0xff] %v5972_v4  ;;  %2579 = vrot.lane.b32.xlu1 %v2572_v37, %s4086_s19  ;;  %7167 = vst [vmem:[#allocation42_spill] sm:$0xff] %v5997_v2  ;;  %v2712_v4 = vmul.f32 %v7165_v9, %v5941_v60  ;;  %v2711_v37 = vmul.f32 %v5960_v27, %v7165_v9  ;;  %v6019_v2 = vmul.f32 %v5629_v39, %v7166_v63  ;;  %v2897_v39 = vld [vmem:[#allocation12 + $0x8] sm:$0xff] }
 0x394   : > { %2577 = vrot.lane.b32.xlu0 %v2570_v21, %s4086_s19  ;;  %v3588_v21 = vpack.c.bf16 %v3026_v34, %v3025_v20  ;;  %v2722_v34 = vrot.slane %v2708_v40, 4  ;;  %v2723_v20 = vrot.slane %v2710_v42, 4  ;;  %v2719_v9 = vrot.slane %v2707_v51, 4  ;;  %v3027_v40 = vld [vmem:[#allocation15 + $0x10] sm:$0xff] }
 0x395   : > { %v6003_v30 = vpop.permute.xlu1 %1592  ;;  %v7171_v42 = vrot.slane %v5856_v38, 2  ;;  %v2725_v62 = vrot.slane %v2711_v37, 4  ;;  %v1396_v58 = vsel %vm687_vm1, %v7173_v12, %v7172_v35  ;;  %v2763_v19 = vrot.slane %v2751_v52, 4 }
 0x396   : > { %v6005_v32 = vpop.permute.xlu0 %1594  ;;  %3589 = vmatprep.subr.bf16.mxu0 %v3588_v21  ;;  %v2764_v15 = vrot.slane %v6019_v2, 4  ;;  %v3592_v38 = vpack.c.bf16 %v3028_v11, %v3027_v40  ;;  %v1408_v12 = vadd.f32 %v7172_v35, %v5763_v23  ;;  %v1462_v37 = vsel %vm762_vm2, %v5409_v22, %v5407_v28 }
 0x397   : > { %2619 = vrot.lane.b32.xlu1 %v2612_v1, %s4087_s26  ;;  %v6033_v51 = vsel %vm1074_vm15, %v1734_v16, %v7171_v42  ;;  %v2727_v1 = vrot.slane %v2712_v4, 4  ;;  %3591 = vmatpush3.bf16.msra.mxu0 %v3588_v21  ;;  %v6044_v16 = vsel %vm2643_vm0, %v2722_v34, %v2723_v20  ;;  %v6047_v4 = vsel %vm2643_vm0, %v2719_v9, %v2720_v10  ;;  %v2899_v34 = vld [vmem:[#allocation12 + $0x18] sm:$0xff]  ;;  %v3030_v9 = vld [vmem:[#allocation15 + $0x28] sm:$0xff] }
 0x398   : > { %2617 = vrot.lane.b32.xlu0 %v2609_v26, %s4087_s26  ;;  %v3556_v26 = vpack.c.bf16 %v2897_v39, %v2896_v24  ;;  %v6053_v24 = vsel %vm2643_vm0, %v2720_v10, %v2725_v62  ;;  %v7174_v21 = vrot.slane %v5994_v54, 4  ;;  %v2898_v10 = vld [vmem:[#allocation12 + $0x10] sm:$0xff]  ;;  %v1407_v23 = vadd.f32 %v1396_v58, %v5759_v0  ;;  %3593 = vmatprep.subr.bf16.mxu0 %v3592_v38 }
 0x399   : > { %v6038_v55 = vpop.permute.xlu1 %1666  ;;  %v6050_v39 = vsel %vm2643_vm0, %v2723_v20, %v2727_v1  ;;  %v3029_v20 = vld [vmem:[#allocation15 + $0x20] sm:$0xff]  ;;  %v1394_v22 = vsel %vm687_vm1, %v5590_v45, %v5592_v41  ;;  %v6083_v0 = vsel %vm2643_vm0, %v2763_v19, %v2764_v15  ;;  %v2756_v45 = vmul.f32 %v7166_v63, %v5941_v60 }
 0x39a   : > { %v6040_v29 = vpop.permute.xlu0 %1664  ;;  %3557 = vmatprep.subr.bf16.mxu1 %v3556_v26  ;;  %v6067_v52 = vsel %vm2643_vm0, %v2766_v17, %v7174_v21  ;;  %v3596_v42 = vpack.c.bf16 %v3030_v9, %v3029_v20  ;;  %v1474_v1 = vadd.f32 %v5407_v28, %v1408_v12  ;;  %v1473_v62 = vadd.f32 %v1462_v37, %v1407_v23  ;;  %v2900_v28 = vld [vmem:[#allocation12 + $0x20] sm:$0xff] }
 0x39b   : > { %2623 = vrot.lane.b32.xlu1 %v5965_v59, %s4087_s26  ;;  %3559 = vmatpush3.bf16.msra.mxu1 %v3556_v26  ;;  %v3560_v59 = vpack.c.bf16 %v2899_v34, %v2898_v10  ;;  %v6093_v26 = vmul.f32 %v5960_v27, %v7166_v63  ;;  %v1403_v19 = vadd.f32 %v1394_v22, %v5791_v44  ;;  %v3031_v63 = vld [vmem:[#allocation15 + $0x30] sm:$0xff]  ;;  %v7175_v10 = vrot.slane %v5773_v61, 1  ;;  %v2903_v22 = vld [vmem:[#allocation12 + $0x38] sm:$0xff] }
 0x39c   : > { %2621 = vrot.lane.b32.xlu0 %v5968_v25, %s4087_s26  ;;  %v1395_v25 = vsel %vm687_vm1, %v5697_v7, %v5699_v13  ;;  %3595 = vmatpush3.bf16.msra.mxu0 %v3592_v38  ;;  %v1460_v7 = vsel %vm762_vm2, %v5616_v43, %v5614_v18  ;;  %v1404_v11 = vadd.f32 %v5592_v41, %v5797_v50  ;;  %v2901_v43 = vld [vmem:[#allocation12 + $0x28] sm:$0xff]  ;;  %v3032_v50 = vld [vmem:[#allocation15 + $0x38] sm:$0xff] }
 0x39d   : > { %v6076_v40 = vpop.permute.xlu1 %1670  ;;  %3561 = vmatprep.subr.bf16.mxu1 %v3560_v59  ;;  %v1461_v38 = vsel %vm762_vm2, %v5711_v56, %v5709_v46  ;;  %v1405_v35 = vadd.f32 %v1395_v25, %v5808_v49  ;;  %v1406_v44 = vadd.f32 %v5699_v13, %v5812_v8  ;;  %3597 = vmatprep.subr.bf16.mxu0 %v3596_v42  ;;  %v7176_v8 = vld [vmem:[#allocation44_spill] sm:$0xff] }
 0x39e   : > { %v6078_v17 = vpop.permute.xlu0 %1668  ;;  %v3564_v41 = vpack.c.bf16 %v2901_v43, %v2900_v28  ;;  %v1470_v56 = vadd.f32 %v5614_v18, %v1404_v11  ;;  %v1469_v58 = vadd.f32 %v1460_v7, %v1403_v19  ;;  %v3600_v37 = vpack.c.bf16 %v3032_v50, %v3031_v63  ;;  %v7181_v11 = vld [vmem:[#allocation32_spill] sm:$0xff]  ;;  %v7184_v63 = vld [vmem:[#allocation131_spill] sm:$0xff] }
 0x39f   : > { %2687 = vrot.lane.b32.xlu1 %v5975_v31, %s4084_s14  ;;  %3563 = vmatpush3.bf16.msra.mxu1 %v3560_v59  ;;  %v1472_v21 = vadd.f32 %v5709_v46, %v1406_v44  ;;  %v1471_v49 = vadd.f32 %v1461_v38, %v1405_v35  ;;  %v1538_v13 = vadd.f32 %v7175_v10, %v1474_v1  ;;  %v7177_v18 = vrot.slane %v5767_v47, 1  ;;  %v3033_v59 = vld [vmem:[#allocation15 + $0x40] sm:$0xff]  ;;  %v7183_v43 = vld [vmem:[#allocation132_spill] sm:$0xff] }
 0x3a0   : > { %2685 = vrot.lane.b32.xlu0 %v5978_v36, %s4084_s14  ;;  %v2771_v36 = vrot.slane %v2756_v45, 4  ;;  %3599 = vmatpush3.bf16.msra.mxu0 %v3596_v42  ;;  %v6118_v34 = vmul.f32 %v7176_v8, %v5885_v53  ;;  %v7178_v46 = vrot.slane %v5994_v54, 4  ;;  %v6133_v61 = vmul.f32 %v5659_v3, %v7176_v8  ;;  %v2902_v53 = vld [vmem:[#allocation12 + $0x30] sm:$0xff]  ;;  %v3034_v54 = vld [vmem:[#allocation15 + $0x48] sm:$0xff]  ;;  %v2904_v44 = vld [vmem:[#allocation12 + $0x40] sm:$0xff] }
 0x3a1   : > { %v6109_v12 = vpop.permute.xlu1 %1806  ;;  %3565 = vmatprep.subr.bf16.mxu1 %v3564_v41  ;;  %v1537_v20 = vadd.f32 %v7177_v18, %v1473_v62  ;;  %v1602_v47 = vsel %vm687_vm1, %v5725_v14, %v5727_v57  ;;  %3601 = vmatprep.subr.bf16.mxu0 %v3600_v37  ;;  %v1533_v9 = vadd.f32 %v5804_v5, %v1469_v58  ;;  %v7179_v14 = vld [vmem:[#allocation89_spill] sm:$0xff]  ;;  %v7182_v5 = vld [vmem:[#allocation128_spill] sm:$0xff] }
 0x3a2   : > { %v6111_v31 = vpop.permute.xlu0 %1804  ;;  %v6129_v23 = vsel %vm2643_vm0, %v7178_v46, %v2771_v36  ;;  %v1534_v25 = vadd.f32 %v5918_v33, %v1470_v56  ;;  %v1601_v45 = vsel %vm687_vm1, %v6003_v30, %v6005_v32  ;;  %v3604_v62 = vpack.c.bf16 %v3034_v54, %v3033_v59  ;;  %v3035_v50 = vld [vmem:[#allocation15 + $0x50] sm:$0xff]  ;;  %v3037_v54 = vld [vmem:[#allocation15 + $0x60] sm:$0xff] }
 0x3a3   : > { %2691 = vrot.lane.b32.xlu1 %v6024_v48, %s4084_s14  ;;  %v1614_v48 = vadd.f32 %v5727_v57, %v1538_v13  ;;  %3567 = vmatpush3.bf16.msra.mxu1 %v3564_v41  ;;  %v1535_v7 = vadd.f32 %v7179_v14, %v1471_v49  ;;  %v7180_v57 = vld [vmem:[#allocation35_spill] sm:$0xff]  ;;  %v1536_v28 = vadd.f32 %v7182_v5, %v1472_v21  ;;  %v2769_v36 = vrot.slane %v6093_v26, 4  ;;  %v3036_v21 = vld [vmem:[#allocation15 + $0x58] sm:$0xff]  ;;  %v7185_v18 = vld [vmem:[#allocation36_spill] sm:$0xff] }
 0x3a4   : > { %2689 = vrot.lane.b32.xlu0 %v6027_v6, %s4084_s14  ;;  %v3568_v6 = vpack.c.bf16 %v2903_v22, %v2902_v53  ;;  %3603 = vmatpush3.bf16.msra.mxu0 %v3600_v37  ;;  %v1678_v38 = vsel %vm762_vm2, %v7181_v11, %v7180_v57  ;;  %v1613_v33 = vadd.f32 %v1602_v47, %v1537_v20  ;;  %v2905_v41 = vld [vmem:[#allocation12 + $0x48] sm:$0xff]  ;;  %v2810_v59 = vrot.slane %v6118_v34, 4  ;;  %v7187_v47 = vld [vmem:[#allocation125_spill] sm:$0xff] }
 0x3a5   : > { %v6144_v42 = vpop.permute.xlu1 %1810  ;;  %v1690_v19 = vadd.f32 %v7180_v57, %v1614_v48  ;;  %v1600_v30 = vsel %vm687_vm1, %v7184_v63, %v7183_v43  ;;  %v1677_v35 = vsel %vm762_vm2, %v6078_v17, %v6076_v40  ;;  %v1611_v56 = vadd.f32 %v1601_v45, %v1535_v7  ;;  %3605 = vmatprep.subr.bf16.mxu0 %v3604_v62  ;;  %v7199_v34 = vld [vmem:[#allocation45_spill] sm:$0xff] }
 0x3a6   : > { %v1809_v1 = vpop.permute.xlu0 %1808  ;;  %3569 = vmatprep.subr.bf16.mxu1 %v3568_v6  ;;  %v1612_v58 = vadd.f32 %v6005_v32, %v1536_v28  ;;  %v3572_v37 = vpack.c.bf16 %v2905_v41, %v2904_v44  ;;  %v1689_v49 = vadd.f32 %v1678_v38, %v1613_v33  ;;  %v1610_v17 = vadd.f32 %v7183_v43, %v1534_v25  ;;  %v7191_v38 = vld [vmem:[#allocation34_spill] sm:$0xff]  ;;  %v7192_v28 = vld [vmem:[#allocation117_spill] sm:$0xff] }
 0x3a7   : > { %2731 = vrot.lane.b32.xlu1 %v6044_v16, %s4085_s25  ;;  %3571 = vmatpush3.bf16.msra.mxu1 %v3568_v6  ;;  %v1676_v16 = vsel %vm762_vm2, %v6040_v29, %v6038_v55  ;;  %v3608_v13 = vpack.c.bf16 %v3036_v21, %v3035_v50  ;;  %v7186_v32 = vrot.slane %v7185_v18, 2  ;;  %v1609_v26 = vadd.f32 %v1600_v30, %v1533_v9  ;;  %v2907_v6 = vld [vmem:[#allocation12 + $0x58] sm:$0xff]  ;;  %v7197_v21 = vld [vmem:[#allocation119_spill] sm:$0xff]  ;;  %v3039_v18 = vld [vmem:[#allocation15 + $0x70] sm:$0xff] }
 0x3a8   : > { %2729 = vrot.lane.b32.xlu0 %v6047_v4, %s4085_s25  ;;  %3607 = vmatpush3.bf16.msra.mxu0 %v3604_v62  ;;  %v1688_v46 = vadd.f32 %v6076_v40, %v1612_v58  ;;  %v1687_v53 = vadd.f32 %v1677_v35, %v1611_v56  ;;  %v1686_v22 = vadd.f32 %v6038_v55, %v1610_v17  ;;  %v2906_v40 = vld [vmem:[#allocation12 + $0x50] sm:$0xff]  ;;  %v2811_v9 = vrot.slane %v6133_v61, 4  ;;  %v7193_v43 = vld [vmem:[#allocation133_spill] sm:$0xff] }
 0x3a9   : > { %v1881_v4 = vpop.permute.xlu1 %1880  ;;  %v1754_v20 = vadd.f32 %v7186_v32, %v1690_v19  ;;  %3573 = vmatprep.subr.bf16.mxu1 %v3572_v37  ;;  %v2770_v29 = vsel %vm2643_vm0, %v2764_v15, %v2769_v36  ;;  %v6184_v48 = vmul.f32 %v7187_v47, %v7176_v8  ;;  %v1685_v55 = vadd.f32 %v1676_v16, %v1609_v26  ;;  %v3038_v15 = vld [vmem:[#allocation15 + $0x68] sm:$0xff]  ;;  %v7195_v50 = vld [vmem:[#allocation41_spill] sm:$0xff] }
 0x3aa   : > { %v6168_v10 = vpop.permute.xlu0 %1882  ;;  %3609 = vmatprep.subr.bf16.mxu0 %v3608_v13  ;;  %v3576_v2 = vpack.c.bf16 %v2907_v6, %v2906_v40  ;;  %v1817_v14 = vsel %vm687_vm1, %v1809_v1, %v6144_v42  ;;  %v6197_v19 = vmul.f32 %v5960_v27, %v7176_v8  ;;  %v3612_v11 = vpack.c.bf16 %v3038_v15, %v3037_v54  ;;  %v7194_v1 = vld [vmem:[#allocation42_spill] sm:$0xff] }
 0x3ab   : > { %2735 = vrot.lane.b32.xlu1 %v6050_v39, %s4085_s25  ;;  %v7188_v39 = vld [vmem:[#allocation33_spill] sm:$0xff]  ;;  %3575 = vmatpush3.bf16.msra.mxu1 %v3572_v37  ;;  %v1830_v5 = vadd.f32 %v7191_v38, %v1754_v20  ;;  %v1818_v33 = vsel %vm687_vm1, %v7192_v28, %v7191_v38  ;;  %v1752_v63 = vadd.f32 %v7193_v43, %v1688_v46  ;;  %v2807_v41 = vrot.slane %v6184_v48, 4  ;;  %v7196_v37 = vld [vmem:[#allocation118_spill] sm:$0xff] }
 0x3ac   : > { %2733 = vrot.lane.b32.xlu0 %v6053_v24, %s4085_s25  ;;  %v6189_v25 = vmul.f32 %v7188_v39, %v7176_v8  ;;  %v7189_v24 = vld [vmem:[#allocation120_spill] sm:$0xff]  ;;  %3611 = vmatpush3.bf16.msra.mxu0 %v3608_v13  ;;  %v1751_v30 = vadd.f32 %v6033_v51, %v1687_v53  ;;  %v1750_v35 = vadd.f32 %v7194_v1, %v1686_v22  ;;  %v2909_v13 = vld [vmem:[#allocation12 + $0x68] sm:$0xff]  ;;  %v3040_v53 = vld [vmem:[#allocation15 + $0x78] sm:$0xff] }
 0x3ad   : > { %v7190_v45 = vrot.slane %v7189_v24, 2  ;;  %v1885_v7 = vpop.permute.xlu1 %1884  ;;  %3577 = vmatprep.subr.bf16.mxu1 %v3576_v2  ;;  %v1816_v27 = vsel %vm687_vm1, %v6111_v31, %v6109_v12  ;;  %v1749_v56 = vadd.f32 %v7195_v50, %v1685_v55  ;;  %v1828_v51 = vadd.f32 %v6144_v42, %v1752_v63  ;;  %3613 = vmatprep.subr.bf16.mxu0 %v3612_v11  ;;  %v2908_v42 = vld [vmem:[#allocation12 + $0x60] sm:$0xff]  ;;  %v2910_v22 = vld [vmem:[#allocation12 + $0x70] sm:$0xff]  ;;  %v2911_v48 = vld [vmem:[#allocation12 + $0x78] sm:$0xff] }
 0x3ae   : > { %v1887_v57 = vpop.permute.xlu0 %1886  ;;  %v1827_v58 = vadd.f32 %v1817_v14, %v1751_v30  ;;  %v2808_v36 = vrot.slane %v6189_v25, 4  ;;  %v3580_v46 = vpack.c.bf16 %v2909_v13, %v2908_v42  ;;  %v1906_v47 = vadd.f32 %v7196_v37, %v1830_v5  ;;  %v7207_v42 = vld [vmem:[#allocation22_spill] sm:$0xff] }
 0x3af   : > { %v1753_v62 = vadd.f32 %v7190_v45, %v1689_v49  ;;  %v1893_v44 = vsel %vm762_vm2, %v1885_v7, %v1887_v57  ;;  %2775 = vrot.lane.b32.xlu1 %v6067_v52, %s4086_s19  ;;  %3579 = vmatpush3.bf16.msra.mxu1 %v3576_v2  ;;  %v1894_v49 = vsel %vm762_vm2, %v7197_v21, %v7196_v37  ;;  %v2813_v2 = vrot.slane %v6197_v19, 4  ;;  %v7200_v45 = vld [vmem:[#allocation43_spill] sm:$0xff] }
 0x3b0   : > { %2773 = vrot.lane.b32.xlu0 %v6083_v0, %s4086_s19  ;;  %v1826_v52 = vadd.f32 %v6109_v12, %v1750_v35  ;;  %v1892_v0 = vsel %vm762_vm2, %v1881_v4, %v6168_v10  ;;  %3615 = vmatpush3.bf16.msra.mxu0 %v3612_v11  ;;  %v1825_v32 = vadd.f32 %v1816_v27, %v1749_v56  ;;  %v7204_v56 = vld [vmem:[#allocation84_spill] sm:$0xff] }
 0x3b1   : > { %v1829_v31 = vadd.f32 %v1818_v33, %v1753_v62  ;;  %v6224_v17 = vpop.permute.xlu1 %2096  ;;  %v1903_v20 = vadd.f32 %v1893_v44, %v1827_v58  ;;  %v1904_v26 = vadd.f32 %v1887_v57, %v1828_v51  ;;  %v2800_v12 = vmul.f32 %v7176_v8, %v5941_v60  ;;  %3581 = vmatprep.subr.bf16.mxu1 %v3580_v46  ;;  %v7198_v60 = vld [vmem:[#allocation46_spill] sm:$0xff]  ;;  %v7201_v44 = vld [vmem:[#allocation85_spill] sm:$0xff]  ;;  %v7205_v51 = vld [vmem:[#allocation31_spill] sm:$0xff] }
 0x3b2   : > { %v6226_v16 = vpop.permute.xlu0 %2094  ;;  %v3616_v4 = vpack.c.bf16 %v3040_v53, %v3039_v18  ;;  %v1901_v6 = vadd.f32 %v1892_v0, %v1825_v32  ;;  %v1902_v54 = vadd.f32 %v6168_v10, %v1826_v52  ;;  %v3584_v55 = vpack.c.bf16 %v2911_v48, %v2910_v22  ;;  %v3771_v0 = vld [vmem:[#allocation13] sm:$0xff]  ;;  %v7208_v18 = vld [vmem:[#allocation37_spill] sm:$0xff]  ;;  %v7209_v32 = vld [vmem:[#allocation88_spill] sm:$0xff] }
 0x3b3   : > { %2779 = vrot.lane.b32.xlu1 %v6129_v23, %s4086_s19  ;;  %v1905_v40 = vadd.f32 %v1894_v49, %v1829_v31  ;;  %v2812_v23 = vsel %vm2643_vm0, %v2810_v59, %v2811_v9  ;;  %3583 = vmatpush3.bf16.msra.mxu1 %v3580_v46  ;;  %v2856_v8 = vadd.f32 %v7198_v60, %v1903_v20  ;;  %v2815_v15 = vrot.slane %v2800_v12, 4  ;;  %v7210_v20 = vld [vmem:[#allocation24_spill] sm:$0xff] }
 0x3b4   : > { %2777 = vrot.lane.b32.xlu0 %v2770_v29, %s4086_s19  ;;  %3617 = vmatprep.subr.bf16.mxu0 %v3616_v4  ;;  %v2857_v29 = vadd.f32 %v7198_v60, %v1904_v26  ;;  %v2809_v10 = vsel %vm2643_vm0, %v2807_v41, %v2808_v36  ;;  %v2859_v24 = vadd.f32 %v7199_v34, %v1906_v47  ;;  %v7202_v41 = vld [vmem:[#allocation81_spill] sm:$0xff]  ;;  %v7211_v22 = vld [vmem:[#allocation100_spill] sm:$0xff] }
 0x3b5   : > { %v6235_v39 = vpop.permute.xlu1 %2100  ;;  %3619 = vmatpush3.bf16.msra.mxu0 %v3616_v4  ;;  %3585 = vmatprep.subr.bf16.mxu1 %v3584_v55  ;;  %v2858_v59 = vadd.f32 %v7199_v34, %v1905_v40  ;;  %v2854_v62 = vadd.f32 %v7200_v45, %v1901_v6  ;;  %v2855_v14 = vadd.f32 %v7200_v45, %v1902_v54  ;;  %v2887_v11 = vrot.slane %v2856_v8, 1  ;;  %v7212_v47 = vld [vmem:[#allocation113_spill] sm:$0xff]  ;;  %v3772_v4 = vld [vmem:[#allocation3] sm:$0xff]  ;;  %v6305_v40 = vld [vmem:[#allocation3 + $0x10] sm:$0xff] }
 0x3b6   : > { %v6237_v25 = vpop.permute.xlu0 %2098  ;;  %v2890_v38 = vrot.slane %v2857_v29, 1  ;;  %v2814_v5 = vsel %vm2643_vm0, %v2808_v36, %v2813_v2  ;;  %v2816_v19 = vsel %vm2643_vm0, %v2811_v9, %v2815_v15  ;;  %v2894_v28 = vrot.slane %v2859_v24, 1  ;;  %v7213_v6 = vld [vmem:[#allocation83_spill] sm:$0xff]  ;;  %v7214_v54 = vld [vmem:[#allocation82_spill] sm:$0xff]  ;;  %v3774_v60 = vld [vmem:[#allocation3 + $0x8] sm:$0xfc] }
 0x3b7   : > { %2819 = vrot.lane.b32.xlu1 %v2812_v23, %s4087_s26  ;;  %3587 = vmatpush3.bf16.msra.mxu1 %v3584_v55  ;;  %v2892_v33 = vrot.slane %v2858_v59, 1  ;;  %v2886_v43 = vrot.slane %v2854_v62, 1  ;;  %v2889_v63 = vrot.slane %v2855_v14, 1  ;;  %v7203_v50 = vpack.i.bf16 %v7201_v44, %v7202_v41  ;;  %v7215_v24 = vld [vmem:[#allocation30_spill] sm:$0xff]  ;;  %v7217_v62 = vld [vmem:[#allocation121_spill] sm:$0xff] }
 0x3b8   : > { %2817 = vrot.lane.b32.xlu0 %v2809_v10, %s4087_s26  ;;  %v2895_v27 = vsel %vm833_vm14, %v2890_v38, %v2894_v28  ;;  %v7206_v58 = vpack.i.bf16 %v7204_v56, %v7205_v51  ;;  %v1917_v13 = vrot.slane %v3771_v0, %v7207_v42  ;;  %v2048_v26 = vrot.slane %v3771_v0, %v7210_v20  ;;  %v7216_v59 = vld [vmem:[#allocation114_spill] sm:$0xff]  ;;  %v7223_v42 = vld [vmem:[#allocation40_spill] sm:$0xff]  ;;  %v3778_v20 = vld [vmem:[#allocation3 + $0x28] sm:$0x3] }
 0x3b9   : > { %v6254_v7 = vpop.permute.xlu1 %2140  ;;  %v2893_v35 = vsel %vm833_vm14, %v2887_v11, %v2892_v33  ;;  %v2888_v61 = vsel %vm833_vm14, %v2886_v43, %v2887_v11  ;;  %v2891_v9 = vsel %vm833_vm14, %v2889_v63, %v2890_v38  ;;  %v1947_v12 = vsel %vm687_vm1, %v7212_v47, %v7211_v22  ;;  %v7218_v14 = vld [vmem:[#allocation122_spill] sm:$0xff]  ;;  %v3775_v38 = vld [vmem:[#allocation3] sm:$0xfc]  ;;  %v6327_v43 = vld [vmem:[#allocation3 + $0x28] sm:$0x1] }
 0x3ba   : > { %v6256_v57 = vpop.permute.xlu0 %2138  ;;  %v3756_v37 = vpack.i.bf16 %v2895_v27, %v2893_v35  ;;  %v3751_v21 = vpack.i.bf16 %v2891_v9, %v2888_v61  ;;  %v1918_v48 = vmul.f32 %v3772_v4, %v1917_v13  ;;  %v1977_v55 = vsel %vm762_vm2, %v7214_v54, %v7213_v6  ;;  %v7219_v63 = vld [vmem:[#allocation115_spill] sm:$0xff]  ;;  %v7220_v35 = vld [vmem:[#allocation116_spill] sm:$0xff]  ;;  %v7226_v6 = vld [vmem:[#allocation130_spill] sm:$0xff] }
 0x3bb   : > { %2821 = vrot.lane.b32.xlu1 %v2814_v5, %s4087_s26  ;;  %v2049_v23 = vmul.f32 %v7209_v32, %v2048_v26  ;;  %v1486_v8 = vrot.slane %v3774_v60, 1  ;;  %v2050_v10 = vmul.f32 %v6305_v40, %v2048_v26  ;;  %v1487_v34 = vrot.slane %v5659_v3, 1  ;;  %v7221_v61 = vld [vmem:[#allocation123_spill] sm:$0xff]  ;;  %v7222_v9 = vld [vmem:[#allocation124_spill] sm:$0xff] }
 0x3bc   : > { %2823 = vrot.lane.b32.xlu0 %v2816_v19, %s4087_s26  ;;  %v1951_v29 = vadd.f32 %v1947_v12, %v1918_v48  ;;  %v2008_v45 = vsel %vm2007_vm4, %v7216_v59, %v7215_v24  ;;  %v1948_v11 = vsel %vm687_vm1, %v7218_v14, %v7217_v62  ;;  %v1483_v5 = vrot.slane %v3775_v38, 1  ;;  %v7225_v48 = vld [vmem:[#allocation129_spill] sm:$0xff]  ;;  %v3780_v24 = vld [vmem:[#allocation13 + $0x8] sm:$0xff]  ;;  %s3990_s26 = scalar_lea.vmem %s6792_s21, 1280 }
 0x3bd   : > { %v6264_v30 = vpop.permute.xlu1 %2144  ;;  %v1484_v19 = vrot.slane %v6305_v40, 1  ;;  %v1919_v33 = vmul.f32 %v6305_v40, %v1917_v13  ;;  %v2039_v27 = vsel %vm2038_vm5, %v7220_v35, %v7219_v63  ;;  %v1978_v44 = vsel %vm762_vm2, %v7222_v9, %v7221_v61  ;;  %v7224_v13 = vld [vmem:[#allocation39_spill] sm:$0xff]  ;;  %p3991_p6 = scmp.ne.s32.totalorder %s6792_s21, %s3990_s26  ;;  %p3998_p0 = scmp.lt.s32.totalorder %s3996_s20, %s3990_s26 }
 0x3be   : > { %v6266_v1 = vpop.permute.xlu0 %2142  ;;  %v1981_v28 = vadd.f32 %v1977_v55, %v1951_v29  ;;  %v2055_v41 = vrot.slane %v2049_v23, 1  ;;  %v6345_v0 = vsel %vm833_vm14, %v1486_v8, %v1487_v34  ;;  %v6353_v22 = vrot.slane %v3778_v20, 1  ;;  %v7227_v59 = vld [vmem:[#allocation23_spill] sm:$0xff] }
 0x3bf   : > { %3747 = vrot.lane.b32.xlu1 %v7203_v50, %s4084_s14  ;;  %v1952_v51 = vadd.f32 %v1948_v11, %v1919_v33  ;;  %v2040_v54 = vsel %vm2038_vm5, %v7226_v6, %v7225_v48  ;;  %p3992_p12 = pnand %p3991_p6, %p7311_p9  ;;  %p3999_p2 = por %p3998_p0, %p3997_p13 }
 0x3c0   : > { %3742 = vrot.lane.b32.xlu0 %v7206_v58, %s4084_s14  ;;  %v2012_v56 = vadd.f32 %v2008_v45, %v1981_v28  ;;  %v2056_v58 = vrot.slane %v2050_v10, 1  ;;  %v2102_v10 = vsel %vm687_vm1, %v6226_v16, %v6224_v17  ;;  %v2243_v45 = vrot.slane %v3780_v24, %v7227_v59 }
 0x3c1   : > { %v6280_v36 = vpop.permute.xlu1 %2184  ;;  %v1982_v4 = vadd.f32 %v1978_v44, %v1952_v51  ;;  %v6373_v62 = vsel %vm833_vm14, %v1487_v34, %v6353_v22  ;;  %v2146_v17 = vsel %vm762_vm2, %v6256_v57, %v6254_v7  ;;  %v2147_v7 = vsel %vm762_vm2, %v6266_v1, %v6264_v30  ;;  %v7228_v1 = vld [vmem:[#allocation25_spill] sm:$0xff]  ;;  %p3993_p1 = pneg %p3992_p12 }
 0x3c2   : > { %v6282_v31 = vpop.permute.xlu0 %2182  ;;  %v2043_v12 = vadd.f32 %v2039_v27, %v2012_v56  ;;  %v2057_v23 = vsel %vm833_vm14, %v2055_v41, %v2056_v58  ;;  %v2244_v35 = vmul.f32 %v3775_v38, %v2243_v45  ;;  %v2245_v27 = vmul.f32 %v6305_v40, %v2243_v45 }
 0x3c3   : > { %3757 = vrot.lane.b32.xlu1 %v3756_v37, %s4084_s14  ;;  %v2190_v63 = vsel %vm2007_vm4, %v6282_v31, %v6280_v36  ;;  %v1700_v59 = vrot.slane %v6305_v40, 2  ;;  %p4000_p8 = pnand %p3999_p2, %p3993_p1 }
 0x3c4   : > { %3752 = vrot.lane.b32.xlu0 %v3751_v21, %s4084_s14  ;;  %v2250_v41 = vrot.slane %v2244_v35, 2 }
 0x3c5   : > { %v6286_v49 = vpop.permute.xlu1 %2188 }
 0x3c6   : > { %v6288_v52 = vpop.permute.xlu0 %2186 }
 0x3c7   : > { %1411 = vrot.lane.b32.xlu1 %v7208_v18, %s4085_s25  ;;  %v2009_v18 = vsel %vm2007_vm4, %v7224_v13, %v7223_v42  ;;  %v2191_v44 = vsel %vm2007_vm4, %v6288_v52, %v6286_v49 }
 0x3c8   : > { %1409 = vrot.lane.b32.xlu0 %v7209_v32, %s4085_s25  ;;  %v6351_v32 = vsel %vm833_vm14, %v1483_v5, %v1484_v19  ;;  %v2013_v55 = vadd.f32 %v2009_v18, %v1982_v4  ;;  %v2062_v5 = vadd.f32 %v2057_v23, %v2043_v12 }
 0x3c9   : > { %v6296_v46 = vpop.permute.xlu1 %2228 }
 0x3ca   : > { %v6298_v53 = vpop.permute.xlu0 %2226  ;;  %v2044_v11 = vadd.f32 %v2040_v54, %v2013_v55  ;;  %v2106_v16 = vadd.f32 %v2102_v10, %v2062_v5  ;;  %v6425_v55 = vld [vmem:[#allocation3 + $0x18] sm:$0xff] }
 0x3cb   : > { %1415 = vrot.lane.b32.xlu1 %v5659_v3, %s4085_s25  ;;  %v6331_v3 = vld [vmem:[#allocation3 + $0x20] sm:$0x1]  ;;  %v1703_v23 = vrot.slane %v6425_v55, 2 }
 0x3cc   : > { %1413 = vrot.lane.b32.xlu0 %v6305_v40, %s4085_s25  ;;  %v2051_v50 = vmul.f32 %v6331_v3, %v2048_v26  ;;  %v3779_v26 = vld [vmem:[#allocation3 + $0x20] sm:$0x3]  ;;  %v2150_v9 = vadd.f32 %v2146_v17, %v2106_v16 }
 0x3cd   : > { %v6314_v2 = vpop.permute.xlu1 %2232  ;;  %v6355_v47 = vrot.slane %v3779_v26, 1  ;;  %v2246_v36 = vmul.f32 %v3779_v26, %v2243_v45 }
 0x3ce   : > { %v6316_v15 = vpop.permute.xlu0 %2230  ;;  %v2058_v60 = vrot.slane %v2051_v50, 1  ;;  %v2194_v57 = vadd.f32 %v2190_v63, %v2150_v9  ;;  %v2251_v50 = vrot.slane %v2245_v27, 2  ;;  %v7230_v63 = vld [vmem:[#allocation126_spill] sm:$0xff] }
 0x3cf   : > { %1419 = vrot.lane.b32.xlu1 %v6327_v43, %s4085_s25  ;;  %v6377_v14 = vsel %vm833_vm14, %v1484_v19, %v6355_v47  ;;  %v2103_v19 = vsel %vm687_vm1, %v6237_v25, %v6235_v39  ;;  %v2234_v39 = vsel %vm2038_vm5, %v6298_v53, %v6296_v46  ;;  %v2235_v30 = vsel %vm2038_vm5, %v6316_v15, %v6314_v2  ;;  %v3781_v15 = vld [vmem:[#allocation3] sm:$0xf8] }
 0x3d0   : > { %1417 = vrot.lane.b32.xlu0 %v6331_v3, %s4085_s25  ;;  %v2059_v34 = vsel %vm833_vm14, %v2056_v58, %v2058_v60  ;;  %v2238_v51 = vadd.f32 %v2234_v39, %v2194_v57  ;;  %v2438_v46 = vrot.slane %v3780_v24, %v7228_v1  ;;  %v2253_v58 = vrot.slane %v2246_v36, 2 }
 0x3d1   : > { %v6342_v37 = vpop.permute.xlu1 %2291  ;;  %v2063_v61 = vadd.f32 %v2059_v34, %v2044_v11  ;;  %v2252_v52 = vsel %vm1074_vm15, %v2250_v41, %v2251_v50  ;;  %v1699_v24 = vrot.slane %v3781_v15, 2  ;;  %v7229_v34 = vld [vmem:[#allocation127_spill] sm:$0xff]  ;;  %v6439_v35 = vrot.slane %v7230_v63, 2 }
 0x3d2   : > { %v2290_v21 = vpop.permute.xlu0 %2289  ;;  %v2257_v20 = vadd.f32 %v2252_v52, %v2238_v51  ;;  %v2439_v26 = vmul.f32 %v3781_v15, %v2438_v46  ;;  %v2440_v12 = vmul.f32 %v6305_v40, %v2438_v46  ;;  %v2254_v48 = vsel %vm1074_vm15, %v2251_v50, %v2253_v58 }
 0x3d3   : > { %1541 = vrot.lane.b32.xlu1 %v6345_v0, %s4084_s14  ;;  %v2107_v25 = vadd.f32 %v2103_v19, %v2063_v61  ;;  %v2297_v13 = vsel %vm687_vm1, %v2290_v21, %v6342_v37  ;;  %v3782_v37 = vld [vmem:[#allocation3 + $0x8] sm:$0xf8]  ;;  %7231 = vst [vmem:[#allocation112_spill] sm:$0xff] %v6439_v35  ;;  %v6442_v27 = vrot.slane %v7229_v34, 2  ;;  %v6450_v39 = vsel %vm1074_vm15, %v1699_v24, %v1700_v59 }
 0x3d4   : > { %1539 = vrot.lane.b32.xlu0 %v6351_v32, %s4084_s14  ;;  %v2301_v4 = vadd.f32 %v2297_v13, %v2257_v20  ;;  %v1702_v21 = vrot.slane %v3782_v37, 2  ;;  %v2446_v17 = vrot.slane %v2439_v26, 3  ;;  %v2447_v16 = vrot.slane %v2440_v12, 3 }
 0x3d5   : > { %v6365_v8 = vpop.permute.xlu1 %2295  ;;  %v2151_v56 = vadd.f32 %v2147_v7, %v2107_v25  ;;  %7232 = vst [vmem:[#allocation111_spill] sm:$0xff] %v6442_v27  ;;  %v6460_v51 = vsel %vm1074_vm15, %v1703_v23, %v6439_v35 }
 0x3d6   : > { %v2294_v29 = vpop.permute.xlu0 %2293  ;;  %v6447_v7 = vsel %vm1074_vm15, %v1702_v21, %v1703_v23  ;;  %v2448_v36 = vsel %vm2445_vm3, %v2446_v17, %v2447_v16  ;;  %7233 = vst [vmem:[#allocation44_spill] sm:$0xff] %v6460_v51 }
 0x3d7   : > { %1545 = vrot.lane.b32.xlu1 %v6373_v62, %s4084_s14  ;;  %v2195_v53 = vadd.f32 %v2191_v44, %v2151_v56  ;;  %v2298_v60 = vsel %vm687_vm1, %v2294_v29, %v6365_v8 }
 0x3d8   : > { %1543 = vrot.lane.b32.xlu0 %v6377_v14, %s4084_s14 }
 0x3d9   : > { %v2336_v28 = vpop.permute.xlu1 %2335  ;;  %v2239_v18 = vadd.f32 %v2235_v30, %v2195_v53  ;;  %v6464_v30 = vsel %vm1074_vm15, %v1700_v59, %v6442_v27  ;;  %v7238_v59 = vld [vmem:[#allocation28_spill] sm:$0xff] }
 0x3da   : > { %v2334_v33 = vpop.permute.xlu0 %2333  ;;  %7234 = vst [vmem:[#allocation89_spill] sm:$0xff] %v6464_v30 }
 0x3db   : > { %1549 = vrot.lane.b32.xlu1 %v6353_v22, %s4084_s14  ;;  %v2341_v2 = vsel %vm762_vm2, %v2334_v33, %v2336_v28  ;;  %v2258_v45 = vadd.f32 %v2254_v48, %v2239_v18  ;;  %v2441_v28 = vmul.f32 %v7229_v34, %v2438_v46  ;;  %v7236_v48 = vld [vmem:[#allocation29_spill] sm:$0xff] }
 0x3dc   : > { %1547 = vrot.lane.b32.xlu0 %v6355_v47, %s4084_s14  ;;  %v2345_v11 = vadd.f32 %v2341_v2, %v2301_v4  ;;  %v7235_v4 = vld [vmem:[#allocation38_spill] sm:$0xff] }
 0x3dd   : > { %v2340_v31 = vpop.permute.xlu1 %2339  ;;  %v2302_v8 = vadd.f32 %v2298_v60, %v2258_v45  ;;  %v7239_v45 = vrot.slane %v7238_v59, 7 }
 0x3de   : > { %v2338_v38 = vpop.permute.xlu0 %2337 }
 0x3df   : > { %1617 = vrot.lane.b32.xlu1 %v6345_v0, %s4085_s25  ;;  %v2342_v5 = vsel %vm762_vm2, %v2338_v38, %v2340_v31  ;;  %v2449_v31 = vrot.slane %v2441_v28, 3 }
 0x3e0   : > { %1615 = vrot.lane.b32.xlu0 %v6351_v32, %s4085_s25  ;;  %v2346_v25 = vadd.f32 %v2342_v5, %v2302_v8 }
 0x3e1   : > { %v2380_v42 = vpop.permute.xlu1 %2379  ;;  %v2450_v46 = vsel %vm2445_vm3, %v2447_v16, %v2449_v31 }
 0x3e2   : > { %v2378_v49 = vpop.permute.xlu0 %2377 }
 0x3e3   : > { %1621 = vrot.lane.b32.xlu1 %v6373_v62, %s4085_s25  ;;  %v2385_v10 = vsel %vm2007_vm4, %v2378_v49, %v2380_v42 }
 0x3e4   : > { %1619 = vrot.lane.b32.xlu0 %v6377_v14, %s4085_s25  ;;  %v2389_v29 = vadd.f32 %v2385_v10, %v2345_v11 }
 0x3e5   : > { %v2384_v6 = vpop.permute.xlu1 %2383 }
 0x3e6   : > { %v2382_v54 = vpop.permute.xlu0 %2381 }
 0x3e7   : > { %1625 = vrot.lane.b32.xlu1 %v6353_v22, %s4085_s25  ;;  %v2386_v61 = vsel %vm2007_vm4, %v2382_v54, %v2384_v6  ;;  %v7237_v6 = vrot.slane %v7236_v48, 7 }
 0x3e8   : > { %1623 = vrot.lane.b32.xlu0 %v6355_v47, %s4085_s25  ;;  %v2390_v38 = vadd.f32 %v2386_v61, %v2346_v25 }
 0x3e9   : > { %v2424_v33 = vpop.permute.xlu1 %2423 }
 0x3ea   : > { %v2422_v19 = vpop.permute.xlu0 %2421 }
 0x3eb   : > { %v2429_v9 = vsel %vm2038_vm5, %v2422_v19, %v2424_v33  ;;  %1757 = vrot.lane.b32.xlu1 %v6447_v7, %s4084_s14 }
 0x3ec   : > { %v2433_v57 = vadd.f32 %v2429_v9, %v2389_v29  ;;  %1755 = vrot.lane.b32.xlu0 %v6450_v39, %s4084_s14  ;;  %v7240_v9 = vld [vmem:[#allocation79_spill] sm:$0xff] }
 0x3ed   : > { %v2428_v44 = vpop.permute.xlu1 %2427 }
 0x3ee   : > { %v2426_v41 = vpop.permute.xlu0 %2425  ;;  %v2453_v50 = vadd.f32 %v2448_v36, %v2433_v57 }
 0x3ef   : > { %v2430_v56 = vsel %vm2038_vm5, %v2426_v41, %v2428_v44  ;;  %1761 = vrot.lane.b32.xlu1 %v6460_v51, %s4084_s14  ;;  %v7241_v44 = vld [vmem:[#allocation80_spill] sm:$0xff] }
 0x3f0   : > { %v2434_v1 = vadd.f32 %v2430_v56, %v2390_v38  ;;  %1759 = vrot.lane.b32.xlu0 %v6464_v30, %s4084_s14 }
 0x3f1   : > { %v2488_v53 = vpop.permute.xlu1 %2487 }
 0x3f2   : > { %v2486_v58 = vpop.permute.xlu0 %2485  ;;  %v2454_v42 = vadd.f32 %v2450_v46, %v2434_v1 }
 0x3f3   : > { %1765 = vrot.lane.b32.xlu1 %v6439_v35, %s4084_s14  ;;  %v2493_v12 = vsel %vm687_vm1, %v2486_v58, %v2488_v53 }
 0x3f4   : > { %1763 = vrot.lane.b32.xlu0 %v6442_v27, %s4084_s14  ;;  %v2497_v37 = vadd.f32 %v2493_v12, %v2453_v50 }
 0x3f5   : > { %v2492_v49 = vpop.permute.xlu1 %2491 }
 0x3f6   : > { %v2490_v52 = vpop.permute.xlu0 %2489 }
 0x3f7   : > { %1833 = vrot.lane.b32.xlu1 %v6447_v7, %s4085_s25  ;;  %v2494_v60 = vsel %vm687_vm1, %v2490_v52, %v2492_v49 }
 0x3f8   : > { %1831 = vrot.lane.b32.xlu0 %v6450_v39, %s4085_s25  ;;  %v2498_v5 = vadd.f32 %v2494_v60, %v2454_v42  ;;  %v2860_v60 = vld [vmem:[%s6846_s7] sm:$0xff] }
 0x3f9   : > { %v2532_v13 = vpop.permute.xlu1 %2531 }
 0x3fa   : > { %v2530_v18 = vpop.permute.xlu0 %2529 }
 0x3fb   : > { %1837 = vrot.lane.b32.xlu1 %v6460_v51, %s4085_s25  ;;  %v2537_v54 = vsel %vm762_vm2, %v2530_v18, %v2532_v13 }
 0x3fc   : > { %1835 = vrot.lane.b32.xlu0 %v6464_v30, %s4085_s25  ;;  %v2541_v24 = vadd.f32 %v2537_v54, %v2497_v37 }
 0x3fd   : > { %v2536_v20 = vpop.permute.xlu1 %2535 }
 0x3fe   : > { %v2534_v2 = vpop.permute.xlu0 %2533 }
 0x3ff   : > { %1841 = vrot.lane.b32.xlu1 %v6439_v35, %s4085_s25  ;;  %v2538_v11 = vsel %vm762_vm2, %v2534_v2, %v2536_v20 }
 0x400   : > { %1839 = vrot.lane.b32.xlu0 %v6442_v27, %s4085_s25  ;;  %v2542_v29 = vadd.f32 %v2538_v11, %v2498_v5  ;;  %v7273_v27 = vld [vmem:[#allocation107_spill] sm:$0xff]  ;;  %s7310_s25 = sld [smem:[#allocation135_spill]] }
 0x401   : > { %v2576_v15 = vpop.permute.xlu1 %2575 }
 0x402   : > { %v2574_v26 = vpop.permute.xlu0 %2573 }
 0x403   : > { %3135 = vrot.lane.b32.xlu1 %v7235_v4, %s4080_s17  ;;  %v2581_v10 = vsel %vm2007_vm4, %v2574_v26, %v2576_v15 }
 0x404   : > { %3133 = vrot.lane.b32.xlu0 %v7237_v6, %s4080_s17  ;;  %v2585_v17 = vadd.f32 %v2581_v10, %v2541_v24 }
 0x405   : > { %v2580_v21 = vpop.permute.xlu1 %2579 }
 0x406   : > { %v2578_v23 = vpop.permute.xlu0 %2577  ;;  %s6790_s19 = scalar_lea.hbm %s7310_s25, %s3621_s23 }
 0x407   : > { %v2582_v28 = vsel %vm2007_vm4, %v2578_v23, %v2580_v21 }
 0x408   : > { %3137 = vrot.lane.b32.xlu0 %v7239_v45, %s4080_s17  ;;  %v2586_v19 = vadd.f32 %v2582_v28, %v2542_v29 }
 0x409   : > { %v2620_v16 = vpop.permute.xlu1 %2619 }
 0x40a   : > { %v2618_v34 = vpop.permute.xlu0 %2617 }
 0x40b   : > { %v2625_v8 = vsel %vm2038_vm5, %v2618_v34, %v2620_v16 }
 0x40c   : > { %v2629_v33 = vadd.f32 %v2625_v8, %v2585_v17  ;;  %v2861_v17 = vld [vmem:[%s6846_s7 + $0x8] sm:$0xff] }
 0x40d   : > { %v2624_v63 = vpop.permute.xlu1 %2623 }
 0x40e   : > { %v2622_v61 = vpop.permute.xlu0 %2621  ;;  %v2651_v25 = vadd.f32 %v7240_v9, %v2629_v33 }
 0x40f   : > { %v2626_v57 = vsel %vm2038_vm5, %v2622_v61, %v2624_v63 }
 0x410   : > { %v2630_v36 = vadd.f32 %v2626_v57, %v2586_v19 }
 0x411   : > { %v2688_v31 = vpop.permute.xlu1 %2687 }
 0x412   : > { %v2686_v38 = vpop.permute.xlu0 %2685  ;;  %v2652_v41 = vadd.f32 %v7241_v44, %v2630_v36 }
 0x413   : > { %v2693_v52 = vsel %vm687_vm1, %v2686_v38, %v2688_v31 }
 0x414   : > { %v2697_v18 = vadd.f32 %v2693_v52, %v2651_v25 }
 0x415   : > { %v2692_v50 = vpop.permute.xlu1 %2691 }
 0x416   : > { %v2690_v56 = vpop.permute.xlu0 %2689 }
 0x417   : > { %v2694_v15 = vsel %vm687_vm1, %v2690_v56, %v2692_v50 }
 0x418   : > { %v2698_v48 = vadd.f32 %v2694_v15, %v2652_v41 }
 0x419   : > { %v2732_v1 = vpop.permute.xlu1 %2731 }
 0x41a   : > { %v2730_v46 = vpop.permute.xlu0 %2729 }
 0x41b   : > { %v2737_v13 = vsel %vm762_vm2, %v2730_v46, %v2732_v1 }
 0x41c   : > { %v2741_v12 = vadd.f32 %v2737_v13, %v2697_v18 }
 0x41d   : > { %v2736_v53 = vpop.permute.xlu1 %2735 }
 0x41e   : > { %v2734_v58 = vpop.permute.xlu0 %2733 }
 0x41f   : > { %v2738_v4 = vsel %vm762_vm2, %v2734_v58, %v2736_v53 }
 0x420   : > { %v2742_v10 = vadd.f32 %v2738_v4, %v2698_v48 }
 0x421   : > { %v2776_v42 = vpop.permute.xlu1 %2775 }
 0x422   : > { %v2774_v49 = vpop.permute.xlu0 %2773 }
 0x423   : > { %v2781_v26 = vsel %vm2007_vm4, %v2774_v49, %v2776_v42 }
 0x424   : > { %v2785_v6 = vadd.f32 %v2781_v26, %v2741_v12  ;;  %v7242_v26 = vld [vmem:[#allocation59_spill] sm:$0xff]  ;;  %v7243_v12 = vld [vmem:[#allocation60_spill] sm:$0xff] }
 0x425   : > { %v2780_v20 = vpop.permute.xlu1 %2779  ;;  %v690_v4 = vsel %vm687_vm1, %v7243_v12, %v7242_v26 }
 0x426   : > { %v2778_v2 = vpop.permute.xlu0 %2777 }
 0x427   : > { %v2782_v21 = vsel %vm2007_vm4, %v2778_v2, %v2780_v20 }
 0x428   : > { %v2786_v59 = vadd.f32 %v2782_v21, %v2742_v10  ;;  %v3785_v10 = vld [vmem:[#allocation2 + $0x20] sm:$0x1] }
 0x429   : > { %v2820_v54 = vpop.permute.xlu1 %2819 }
 0x42a   : > { %v2818_v37 = vpop.permute.xlu0 %2817 }
 0x42b   : > { %v2825_v23 = vsel %vm2038_vm5, %v2818_v37, %v2820_v54  ;;  %v7244_v54 = vld [vmem:[#allocation62_spill] sm:$0xff]  ;;  %v7245_v37 = vld [vmem:[#allocation61_spill] sm:$0xff] }
 0x42c   : > { %v2829_v24 = vadd.f32 %v2825_v23, %v2785_v6  ;;  %v765_v21 = vsel %vm762_vm2, %v7245_v37, %v7244_v54  ;;  %v3784_v23 = vld [vmem:[#allocation2 + $0x28] sm:$0x1] }
 0x42d   : > { %v2822_v45 = vpop.permute.xlu1 %2821  ;;  %v7256_v37 = vld [vmem:[#allocation67_spill] sm:$0xff] }
 0x42e   : > { %v2824_v11 = vpop.permute.xlu0 %2823  ;;  %v2862_v5 = vadd.f32 %v2860_v60, %v2829_v24  ;;  %v702_v60 = vadd.f32 %v3784_v23, %v7242_v26  ;;  %v701_v24 = vadd.f32 %v3785_v10, %v690_v4  ;;  %v3786_v26 = vld [vmem:[#allocation2 + $0x8] sm:$0xfe]  ;;  %v3787_v4 = vld [vmem:[#allocation2] sm:$0xfe] }
 0x42f   : > { %v2826_v16 = vsel %vm2038_vm5, %v2822_v45, %v2824_v11 }
 0x430   : > { %v2830_v34 = vadd.f32 %v2826_v16, %v2786_v59  ;;  %3537 = vmatprep.mubr.f32.mxu0 %v2862_v5  ;;  %v776_v59 = vadd.f32 %v765_v21, %v701_v24  ;;  %v777_v45 = vadd.f32 %v7244_v54, %v702_v60  ;;  %v7247_v16 = vld [vmem:[#allocation71_spill] sm:$0xff]  ;;  %v7257_v21 = vld [vmem:[#allocation68_spill] sm:$0xff] }
 0x431   : > { %v3748_v8 = vpop.permute.xlu1 %3747  ;;  %v689_v23 = vsel %vm687_vm1, %v7257_v21, %v7256_v37 }
 0x432   : > { %v2863_v28 = vadd.f32 %v2861_v17, %v2830_v34  ;;  %v3743_v29 = vpop.permute.xlu0 %3742  ;;  %v3750_v33 = vunpack.i.h.bf16 %v3748_v8  ;;  %v3749_v19 = vunpack.i.l.bf16 %v3748_v8  ;;  %v7246_v17 = vld [vmem:[#allocation72_spill] sm:$0xff] }
 0x433   : > { %v3745_v63 = vunpack.i.h.bf16 %v3743_v29  ;;  %v3744_v61 = vunpack.i.l.bf16 %v3743_v29  ;;  %v912_v34 = vsel %vm687_vm1, %v7247_v16, %v7246_v17  ;;  %v7249_v8 = vld [vmem:[#allocation64_spill] sm:$0xff] }
 0x434   : > { %3538 = vmatmul.mubr.f32.vlgmr.msra.gmra.mrb[4].mxu0 %v2863_v28  ;;  %v2929_v25 = vsel %vm687_vm1, %v3749_v19, %v3750_v33  ;;  %v7248_v28 = vld [vmem:[#allocation63_spill] sm:$0xff] }
 0x435   : > { %v2928_v9 = vsel %vm687_vm1, %v3744_v61, %v3745_v63  ;;  %v3758_v57 = vpop.permute.xlu1 %3757  ;;  %v688_v29 = vsel %vm687_vm1, %v7249_v8, %v7248_v28  ;;  %v7250_v33 = vld [vmem:[#allocation47_spill] sm:$0xff]  ;;  %v7251_v63 = vld [vmem:[#allocation48_spill] sm:$0xff]  ;;  %v698_v12 = vadd.f32 %v3786_v26, %v7248_v28  ;;  %v7258_v28 = vld [vmem:[#allocation70_spill] sm:$0xff] }
 0x436   : > { %v3753_v36 = vpop.permute.xlu0 %3752  ;;  %3499 = vmatprep.mubr.f32.mxu1 %v2928_v9  ;;  %v3760_v31 = vunpack.i.h.bf16 %v3758_v57  ;;  %v3759_v38 = vunpack.i.l.bf16 %v3758_v57  ;;  %v854_v19 = vadd.f32 %v7250_v33, %v776_v59  ;;  %v855_v61 = vadd.f32 %v7251_v63, %v777_v45  ;;  %v7252_v57 = vld [vmem:[#allocation73_spill] sm:$0xff]  ;;  %v3789_v33 = vld [vmem:[#allocation2 + $0x10] sm:$0xff] }
 0x437   : > { %v3755_v44 = vunpack.i.h.bf16 %v3753_v36  ;;  %v3754_v41 = vunpack.i.l.bf16 %v3753_v36  ;;  %3500 = vmatmul.mubr.f32.vlgmr.msra.gmra.mrb[0].mxu1 %v2929_v25  ;;  %v7253_v36 = vld [vmem:[#allocation74_spill] sm:$0xff]  ;;  %v697_v54 = vadd.f32 %v3787_v4, %v688_v29  ;;  %v7259_v8 = vld [vmem:[#allocation69_spill] sm:$0xff]  ;;  %v7265_v4 = vld [vmem:[#allocation76_spill] sm:$0xff] }
 0x438   : > { %v2931_v56 = vsel %vm687_vm1, %v3759_v38, %v3760_v31  ;;  %v996_v31 = vsel %vm762_vm2, %v7253_v36, %v7252_v57  ;;  %v7254_v38 = vld [vmem:[#allocation66_spill] sm:$0xff]  ;;  %v764_v29 = vsel %vm762_vm2, %v7259_v8, %v7258_v28 }
 0x439   : > { %v2930_v50 = vsel %vm687_vm1, %v3754_v41, %v3755_v44  ;;  %v6523_v1 = vpop.permute.xlu1 %1411  ;;  %v7255_v44 = vld [vmem:[#allocation65_spill] sm:$0xff]  ;;  %v773_v16 = vadd.f32 %v7254_v38, %v698_v12  ;;  %v7264_v12 = vld [vmem:[#allocation75_spill] sm:$0xff] }
 0x43a   : > { %v6525_v46 = vpop.permute.xlu0 %1409  ;;  %3502 = vmatprep.mubr.f32.mxu1 %v2930_v50  ;;  %v763_v41 = vsel %vm762_vm2, %v7255_v44, %v7254_v38  ;;  %v923_v50 = vadd.f32 %v912_v34, %v854_v19  ;;  %v699_v19 = vadd.f32 %v3789_v33, %v689_v23  ;;  %v7267_v23 = vld [vmem:[#allocation52_spill] sm:$0xff] }
 0x43b   : > { %3503 = vmatmul.mubr.f32.gmra.mrb[2].mxu1 %v2931_v56  ;;  %v924_v56 = vadd.f32 %v7246_v17, %v855_v61  ;;  %v772_v45 = vadd.f32 %v763_v41, %v697_v54  ;;  %v3788_v17 = vld [vmem:[#allocation2 + $0x18] sm:$0xff]  ;;  %v7263_v41 = vld [vmem:[#allocation91_spill] sm:$0xff]  ;;  %v1153_v54 = vsel %vm687_vm1, %v7265_v4, %v7264_v12  ;;  %v7272_v4 = vld [vmem:[#allocation108_spill] sm:$0xff] }
 0x43c   : > { %v1007_v10 = vadd.f32 %v996_v31, %v923_v50  ;;  %v700_v34 = vadd.f32 %v3788_v17, %v7256_v37  ;;  %v774_v61 = vadd.f32 %v764_v29, %v699_v19  ;;  %v7261_v31 = vld [vmem:[#allocation50_spill] sm:$0xff]  ;;  %v7266_v37 = vld [vmem:[#allocation51_spill] sm:$0xff]  ;;  %v7270_v29 = vld [vmem:[#allocation53_spill] sm:$0xff] }
 0x43d   : > { %v6527_v53 = vpop.permute.xlu1 %1415  ;;  %v1008_v60 = vadd.f32 %v7252_v57, %v924_v56  ;;  %v7260_v57 = vld [vmem:[#allocation49_spill] sm:$0xff]  ;;  %v7262_v50 = vld [vmem:[#allocation90_spill] sm:$0xff]  ;;  %v851_v21 = vadd.f32 %v7266_v37, %v773_v16  ;;  %v850_v17 = vadd.f32 %v7267_v23, %v772_v45  ;;  %v1355_v16 = vsel %vm687_vm1, %v7273_v27, %v7272_v4  ;;  %v7276_v23 = vld [vmem:[#allocation92_spill] sm:$0xff] }
 0x43e   : > { %v6529_v58 = vpop.permute.xlu0 %1413  ;;  %v775_v63 = vadd.f32 %v7258_v28, %v700_v34  ;;  %v1095_v44 = vadd.f32 %v7261_v31, %v1007_v10  ;;  %v910_v38 = vsel %vm687_vm1, %v7263_v41, %v7262_v50  ;;  %v7268_v34 = vld [vmem:[#allocation95_spill] sm:$0xff]  ;;  %v7271_v31 = vld [vmem:[#allocation54_spill] sm:$0xff] }
 0x43f   : > { %v1096_v36 = vadd.f32 %v7260_v57, %v1008_v60  ;;  %v7269_v60 = vld [vmem:[#allocation94_spill] sm:$0xff]  ;;  %v920_v28 = vadd.f32 %v7262_v50, %v851_v21  ;;  %v919_v8 = vadd.f32 %v910_v38, %v850_v17  ;;  %v852_v41 = vadd.f32 %v7271_v31, %v774_v61  ;;  %v7277_v50 = vld [vmem:[#allocation93_spill] sm:$0xff] }
 0x440   : > { %v994_v10 = vsel %vm762_vm2, %v7269_v60, %v7268_v34  ;;  %v853_v33 = vadd.f32 %v7270_v29, %v775_v63  ;;  %v6617_v57 = vadd.f32 %v1153_v54, %v1095_v44  ;;  %v911_v63 = vsel %vm687_vm1, %v7277_v50, %v7276_v23  ;;  %v7278_v44 = vld [vmem:[#allocation78_spill] sm:$0xff]  ;;  %v7281_v54 = vld [vmem:[#allocation87_spill] sm:$0xff] }
 0x441   : > { %v6531_v42 = vpop.permute.xlu1 %1419  ;;  %v1165_v19 = vadd.f32 %v7264_v12, %v1096_v36  ;;  %v1003_v38 = vadd.f32 %v994_v10, %v919_v8  ;;  %v1004_v36 = vadd.f32 %v7268_v34, %v920_v28  ;;  %v7279_v12 = vld [vmem:[#allocation77_spill] sm:$0xff]  ;;  %v7282_v21 = vld [vmem:[#allocation86_spill] sm:$0xff]  ;;  %v1421_v29 = vsel %vm762_vm2, %v6525_v46, %v6523_v1  ;;  %v7284_v10 = vld [vmem:[#allocation96_spill] sm:$0xff] }
 0x442   : > { %v6533_v49 = vpop.permute.xlu0 %1417  ;;  %v922_v60 = vadd.f32 %v7276_v23, %v853_v33  ;;  %v6635_v61 = vsel %vm762_vm2, %v7279_v12, %v7278_v44  ;;  %v1357_v17 = vsel %vm687_vm1, %v7282_v21, %v7281_v54  ;;  %v7283_v33 = vld [vmem:[#allocation97_spill] sm:$0xff]  ;;  %v3790_v8 = vld [vmem:[#allocation3] sm:$0xfe]  ;;  %v1369_v50 = vadd.f32 %v6327_v43, %v7281_v54  ;;  %v7285_v12 = vld [vmem:[#allocation99_spill] sm:$0xff] }
 0x443   : > { %v6638_v27 = vadd.f32 %v7278_v44, %v1165_v19  ;;  %v995_v34 = vsel %vm762_vm2, %v7284_v10, %v7283_v33  ;;  %v1364_v31 = vadd.f32 %v3790_v8, %v1355_v16  ;;  %v3791_v23 = vld [vmem:[#allocation3 + $0x8] sm:$0xfe]  ;;  %v921_v44 = vadd.f32 %v911_v63, %v852_v41  ;;  %v7286_v21 = vld [vmem:[#allocation98_spill] sm:$0xff]  ;;  %v7290_v8 = vld [vmem:[#allocation56_spill] sm:$0xff] }
 0x444   : > { %v1006_v28 = vadd.f32 %v7283_v33, %v922_v60  ;;  %v1365_v19 = vadd.f32 %v3791_v23, %v7272_v4  ;;  %v7287_v46 = vld [vmem:[#allocation110_spill] sm:$0xff]  ;;  %v7289_v33 = vld [vmem:[#allocation55_spill] sm:$0xff]  ;;  %v1092_v35 = vadd.f32 %v7290_v8, %v1004_v36  ;;  %v1368_v43 = vadd.f32 %v6331_v3, %v1357_v17  ;;  %v7292_v54 = vld [vmem:[#allocation104_spill] sm:$0xff] }
 0x445   : > { %v6535_v52 = vpop.permute.xlu1 %1541  ;;  %7280 = vst [vmem:[#allocation128_spill] sm:$0xff] %v6638_v27  ;;  %v1151_v27 = vsel %vm687_vm1, %v7286_v21, %v7285_v12  ;;  %v1091_v16 = vadd.f32 %v7289_v33, %v1003_v38  ;;  %v1430_v23 = vadd.f32 %v1421_v29, %v1364_v31  ;;  %v1005_v41 = vadd.f32 %v995_v34, %v921_v44  ;;  %v7291_v63 = vld [vmem:[#allocation103_spill] sm:$0xff]  ;;  %v7293_v38 = vld [vmem:[#allocation58_spill] sm:$0xff]  ;;  %v7295_v29 = vld [vmem:[#allocation101_spill] sm:$0xff] }
 0x446   : > { %v6537_v13 = vpop.permute.xlu0 %1539  ;;  %v1431_v4 = vadd.f32 %v6523_v1, %v1365_v19  ;;  %v1235_v21 = vsel %vm762_vm2, %v7292_v54, %v7291_v63  ;;  %v1161_v30 = vadd.f32 %v7285_v12, %v1092_v35  ;;  %v1094_v33 = vadd.f32 %v7293_v38, %v1006_v28  ;;  %v7294_v1 = vld [vmem:[#allocation102_spill] sm:$0xff]  ;;  %v7296_v19 = vld [vmem:[#allocation57_spill] sm:$0xff] }
 0x447   : > { %v1160_v51 = vadd.f32 %v1151_v27, %v1091_v16  ;;  %v1152_v3 = vsel %vm687_vm1, %v7295_v29, %v7294_v1  ;;  %v1367_v17 = vadd.f32 %v6425_v55, %v7287_v46  ;;  %v1423_v34 = vsel %vm762_vm2, %v6533_v49, %v6531_v42 }
 0x448   : > { %v1499_v31 = vadd.f32 %v6351_v32, %v1430_v23  ;;  %v1093_v44 = vadd.f32 %v7296_v19, %v1005_v41  ;;  %v1435_v12 = vadd.f32 %v6531_v42, %v1369_v50  ;;  %v7297_v32 = vld [vmem:[#allocation105_spill] sm:$0xff] }
 0x449   : > { %v6539_v18 = vpop.permute.xlu1 %1545  ;;  %v1244_v28 = vadd.f32 %v1235_v21, %v1160_v51  ;;  %v1433_v55 = vadd.f32 %v6527_v53, %v1367_v17 }
 0x44a   : > { %v6541_v20 = vpop.permute.xlu0 %1543  ;;  %v1162_v8 = vadd.f32 %v1152_v3, %v1093_v44  ;;  %v1504_v54 = vadd.f32 %v6353_v22, %v1435_v12  ;;  %v7300_v44 = vld [vmem:[#allocation44_spill] sm:$0xff] }
 0x44b   : > { %v1307_v50 = vmul.f32 0.11111111, %v1244_v28 }
 0x44d   : > { %v6543_v2 = vpop.permute.xlu1 %1549 }
 0x44e   : > { %v6545_v15 = vpop.permute.xlu0 %1547 }
 0x451   : > { %v6550_v48 = vpop.permute.xlu1 %1617 }
 0x452   : > { %v6552_v6 = vpop.permute.xlu0 %1615 }
 0x453   : > { %v1627_v49 = vsel %vm762_vm2, %v6552_v6, %v6550_v48 }
 0x455   : > { %v6559_v11 = vpop.permute.xlu1 %1621 }
 0x456   : > { %v6561_v5 = vpop.permute.xlu0 %1619 }
 0x457   : > { %v1628_v21 = vsel %vm762_vm2, %v6561_v5, %v6559_v11 }
 0x459   : > { %v6571_v9 = vpop.permute.xlu1 %1625 }
 0x45a   : > { %v6573_v25 = vpop.permute.xlu0 %1623 }
 0x45d   : > { %v6587_v24 = vpop.permute.xlu1 %1757 }
 0x45e   : > { %v6589_v59 = vpop.permute.xlu0 %1755 }
 0x45f   : > { %v1767_v22 = vsel %vm687_vm1, %v6589_v59, %v6587_v24 }
 0x461   : > { %v6602_v56 = vpop.permute.xlu1 %1761 }
 0x462   : > { %v6604_v26 = vpop.permute.xlu0 %1759 }
 0x465   : > { %v6623_v45 = vpop.permute.xlu1 %1765 }
 0x466   : > { %7274 = vst [vmem:[#allocation35_spill] sm:$0xff] %v6623_v45  ;;  %v6625_v37 = vpop.permute.xlu0 %1763 }
 0x467   : > { %7275 = vst [vmem:[#allocation32_spill] sm:$0xff] %v6625_v37  ;;  %v7288_v37 = vld [vmem:[#allocation109_spill] sm:$0xff] }
 0x468   : > { %v1356_v45 = vsel %vm687_vm1, %v7288_v37, %v7287_v46  ;;  %v1422_v37 = vsel %vm762_vm2, %v6529_v58, %v6527_v53  ;;  %v1551_v58 = vsel %vm687_vm1, %v6537_v13, %v6535_v52  ;;  %v1245_v13 = vadd.f32 %v7291_v63, %v1161_v30 }
 0x469   : > { %v6659_v10 = vpop.permute.xlu1 %1833  ;;  %v1366_v36 = vadd.f32 %v6305_v40, %v1356_v45  ;;  %v1500_v45 = vadd.f32 %v6345_v0, %v1431_v4  ;;  %v1434_v46 = vadd.f32 %v1423_v34, %v1368_v43  ;;  %v1560_v16 = vadd.f32 %v1551_v58, %v1499_v31  ;;  %v7298_v4 = vld [vmem:[#allocation106_spill] sm:$0xff] }
 0x46a   : > { %v1832_v60 = vpop.permute.xlu0 %1831  ;;  %v1163_v0 = vadd.f32 %v7294_v1, %v1094_v33  ;;  %v1236_v23 = vsel %vm762_vm2, %v7298_v4, %v7297_v32  ;;  %v1552_v53 = vsel %vm687_vm1, %v6541_v20, %v6539_v18  ;;  %v1502_v63 = vadd.f32 %v6373_v62, %v1433_v55 }
 0x46b   : > { %v1432_v40 = vadd.f32 %v1422_v37, %v1366_v36  ;;  %v1561_v51 = vadd.f32 %v6535_v52, %v1500_v45  ;;  %v1636_v43 = vadd.f32 %v1627_v49, %v1560_v16  ;;  %v1246_v20 = vadd.f32 %v1236_v23, %v1162_v8 }
 0x46c   : > { %v1247_v41 = vadd.f32 %v7297_v32, %v1163_v0  ;;  %v1503_v38 = vadd.f32 %v6355_v47, %v1434_v46  ;;  %v1308_v33 = vmul.f32 0.11111111, %v1245_v13  ;;  %v1553_v36 = vsel %vm687_vm1, %v6545_v15, %v6543_v2  ;;  %v7301_v13 = vld [vmem:[#allocation112_spill] sm:$0xff] }
 0x46d   : > { %v6685_v35 = vpop.permute.xlu1 %1837  ;;  %v1501_v30 = vadd.f32 %v6377_v14, %v1432_v40  ;;  %v1637_v52 = vadd.f32 %v6550_v48, %v1561_v51  ;;  %v1563_v14 = vadd.f32 %v6539_v18, %v1502_v63  ;;  %v1565_v48 = vadd.f32 %v6543_v2, %v1504_v54  ;;  %v7299_v40 = vld [vmem:[#allocation89_spill] sm:$0xff]  ;;  %v7302_v51 = vld [vmem:[#allocation35_spill] sm:$0xff]  ;;  %v7304_v0 = vld [vmem:[#allocation128_spill] sm:$0xff] }
 0x46e   : > { %v1836_v27 = vpop.permute.xlu0 %1835  ;;  %v1715_v29 = vadd.f32 %v6450_v39, %v1636_v43  ;;  %v1629_v18 = vsel %vm762_vm2, %v6573_v25, %v6571_v9  ;;  %v1843_v2 = vsel %vm762_vm2, %v1832_v60, %v6659_v10  ;;  %v1309_v34 = vmul.f32 0.11111111, %v1246_v20  ;;  %v7303_v16 = vld [vmem:[#allocation32_spill] sm:$0xff] }
 0x46f   : > { %v1562_v37 = vadd.f32 %v1552_v53, %v1501_v30  ;;  %v1716_v5 = vadd.f32 %v6447_v7, %v1637_v52  ;;  %v1639_v3 = vadd.f32 %v6559_v11, %v1563_v14  ;;  %v1564_v59 = vadd.f32 %v1553_v36, %v1503_v38 }
 0x470   : > { %v1776_v58 = vadd.f32 %v1767_v22, %v1715_v29  ;;  %v1248_v7 = vadd.f32 %v6635_v61, %v6617_v57  ;;  %v1641_v39 = vadd.f32 %v6571_v9, %v1565_v48  ;;  %v1768_v25 = vsel %vm687_vm1, %v6604_v26, %v6602_v56 }
 0x471   : > { %v6704_v42 = vpop.permute.xlu1 %1841  ;;  %v1638_v1 = vadd.f32 %v1628_v21, %v1562_v37  ;;  %v1777_v11 = vadd.f32 %v6587_v24, %v1716_v5  ;;  %v1310_v28 = vmul.f32 0.11111111, %v1247_v41  ;;  %v1640_v60 = vadd.f32 %v1629_v18, %v1564_v59 }
 0x472   : > { %v1840_v6 = vpop.permute.xlu0 %1839  ;;  %v1852_v31 = vadd.f32 %v1843_v2, %v1776_v58  ;;  %v1718_v55 = vadd.f32 %v7300_v44, %v1639_v3  ;;  %v1844_v9 = vsel %vm762_vm2, %v1836_v27, %v6685_v35  ;;  %v1311_v49 = vmul.f32 0.11111111, %v1248_v7 }
 0x473   : > { %v1717_v45 = vadd.f32 %v7299_v40, %v1638_v1  ;;  %v1853_v57 = vadd.f32 %v6659_v10, %v1777_v11  ;;  %v1720_v46 = vadd.f32 %v7301_v13, %v1641_v39  ;;  %v1769_v8 = vsel %vm687_vm1, %v7303_v16, %v7302_v51  ;;  %v7305_v10 = vld [vmem:[#allocation111_spill] sm:$0xff] }
 0x474   : > { %v1779_v26 = vadd.f32 %v6602_v56, %v1718_v55  ;;  %v1312_v32 = vmul.f32 0.11111111, %v7304_v0  ;;  %v1719_v27 = vadd.f32 %v7305_v10, %v1640_v60  ;;  %v1907_v4 = vmul.f32 0.11111111, %v1852_v31 }
 0x475   : > { %v3136_v15 = vpop.permute.xlu1 %3135  ;;  %v1778_v12 = vadd.f32 %v1768_v25, %v1717_v45  ;;  %v1845_v56 = vsel %vm762_vm2, %v1840_v6, %v6704_v42  ;;  %v1781_v41 = vadd.f32 %v7302_v51, %v1720_v46 }
 0x476   : > { %v3134_v62 = vpop.permute.xlu0 %3133  ;;  %v3144_v19 = vadd.f32 %v3136_v15, %v1309_v34  ;;  %v3145_v24 = vadd.f32 %v3136_v15, %v1310_v28  ;;  %v1855_v30 = vadd.f32 %v6685_v35, %v1779_v26  ;;  %v1780_v43 = vadd.f32 %v1769_v8, %v1719_v27 }
 0x477   : > { %v3142_v47 = vadd.f32 %v3134_v62, %v1307_v50  ;;  %v3143_v17 = vadd.f32 %v3134_v62, %v1308_v33  ;;  %v1854_v23 = vadd.f32 %v1844_v9, %v1778_v12  ;;  %v1908_v50 = vmul.f32 0.11111111, %v1853_v57  ;;  %v7308_v57 = vld [vmem:[#allocation27_spill] sm:$0xff] }
 0x478   : > { %v3176_v63 = vmul.f32 2.0, %v1907_v4  ;;  %v1856_v21 = vadd.f32 %v1845_v56, %v1780_v43  ;;  %v1910_v37 = vmul.f32 0.11111111, %v1855_v30  ;;  %v1857_v38 = vadd.f32 %v6704_v42, %v1781_v41 }
 0x479   : > { %3154 = vrot.lane.b32.xlu1 %v3142_v47, %s4084_s14  ;;  %3156 = vrot.lane.b32.xlu0 %v3143_v17, %s4084_s14  ;;  %v1909_v54 = vmul.f32 0.11111111, %v1854_v23  ;;  %v3177_v20 = vmul.f32 2.0, %v1908_v50  ;;  %v7309_v9 = vmax.f32 %v7308_v57, 0.0 }
 0x47a   : > { %v3138_v61 = vpop.permute.xlu0 %3137  ;;  %v1911_v6 = vmul.f32 0.11111111, %v1856_v21  ;;  %v3179_v33 = vmul.f32 2.0, %v1910_v37  ;;  %v1912_v14 = vmul.f32 0.11111111, %v1857_v38 }
 0x47b   : > { %v3146_v53 = vadd.f32 %v3138_v61, %v1311_v49  ;;  %v3147_v52 = vadd.f32 %v3138_v61, %v1312_v32  ;;  %v3178_v35 = vmul.f32 2.0, %v1909_v54 }
 0x47c   : > { %v3180_v48 = vmul.f32 2.0, %v1911_v6  ;;  %v3181_v36 = vmul.f32 2.0, %v1912_v14 }
 0x47d   : > { %3158 = vrot.lane.b32.xlu1 %v3144_v19, %s4084_s14  ;;  %3160 = vrot.lane.b32.xlu0 %v3145_v24, %s4084_s14  ;;  %v7306_v19 = vld [vmem:[#allocation26_spill] sm:$0xff] }
 0x47e   : > { %v7307_v44 = vmax.f32 %v7306_v19, 0.0 }
 0x481   : > { %3162 = vrot.lane.b32.xlu1 %v3146_v53, %s4084_s14  ;;  %3164 = vrot.lane.b32.xlu0 %v3147_v52, %s4084_s14 }
 0x485   : > { %3188 = vrot.lane.b32.xlu1 %v3176_v63, %s4084_s14  ;;  %3190 = vrot.lane.b32.xlu0 %v3177_v20, %s4084_s14 }
 0x489   : > { %3192 = vrot.lane.b32.xlu1 %v3178_v35, %s4084_s14  ;;  %3194 = vrot.lane.b32.xlu0 %v3179_v33, %s4084_s14 }
 0x48d   : > { %3196 = vrot.lane.b32.xlu1 %v3180_v48, %s4084_s14  ;;  %3198 = vrot.lane.b32.xlu0 %v3181_v36, %s4084_s14 }
 0x4eb   : > { %v3155_v42 = vpop.permute.xlu1 %3154  ;;  %v3157_v22 = vpop.permute.xlu0 %3156 }
 0x4ec   : > { %v3166_v62 = vsel %vm687_vm1, %v3155_v42, %v3157_v22 }
 0x4ed   : > { %3385 = vst [vmem:[%s4551_s18 + $0x2f] sm:$0xfe] %v3166_v62 }
 0x4ef   : > { %v3159_v1 = vpop.permute.xlu1 %3158  ;;  %v3161_v5 = vpop.permute.xlu0 %3160 }
 0x4f0   : > { %v3167_v29 = vsel %vm687_vm1, %v3159_v1, %v3161_v5 }
 0x4f1   : > { %3386 = vst [vmem:[%s4551_s18 + $0x37] sm:$0xff] %v3167_v29 }
 0x4f3   : > { %v3163_v47 = vpop.permute.xlu1 %3162  ;;  %v3165_v3 = vpop.permute.xlu0 %3164 }
 0x4f4   : > { %v3168_v18 = vsel %vm687_vm1, %v3163_v47, %v3165_v3 }
 0x4f5   : > { %3387 = vst [vmem:[%s4551_s18 + $0x3f] sm:$0x1] %v3168_v18 }
 0x4f7   : > { %v3189_v2 = vpop.permute.xlu1 %3188  ;;  %v3191_v15 = vpop.permute.xlu0 %3190 }
 0x4f8   : > { %v3200_v17 = vsel %vm687_vm1, %v3189_v2, %v3191_v15 }
 0x4f9   : > { %3388 = vst [vmem:[%s4551_s18 + $0x3f] sm:$0xfe] %v3200_v17 }
 0x4fb   : > { %v3193_v34 = vpop.permute.xlu1 %3192  ;;  %v3195_v59 = vpop.permute.xlu0 %3194 }
 0x4fc   : > { %v3201_v58 = vsel %vm687_vm1, %v3193_v34, %v3195_v59 }
 0x4fd   : > { %3389 = vst [vmem:[%s4551_s18 + $0x47] sm:$0xff] %v3201_v58 }
 0x4ff   : > { %v3197_v7 = vpop.permute.xlu1 %3196  ;;  %v3199_v39 = vpop.permute.xlu0 %3198 }
 0x500   : > { %v3202_v11 = vsel %vm687_vm1, %v3197_v7, %v3199_v39 }
 0x501   : > { %3390 = vst [vmem:[%s4551_s18 + $0x4f] sm:$0x1] %v3202_v11 }
 0x507   : > { %v3539_v25 = vpop.f32.mrb[4].mxu0 }
 0x508   : > { %v3107_v28 = vpop.f32.mrb[5].mxu0  ;;  %v3117_v12 = vmax.f32 %v3539_v25, 0.0 }
 0x509   : > { %v3116_v13 = vmax.f32 %v3107_v28, 0.0 }
 0x50a   : > { %v3501_v60 = vpop.f32.mrb[0].mxu1 }
 0x50b   : > { %v3022_v40 = vmax.f32 %v3501_v60, 0.0  ;;  %v3002_v45 = vpop.f32.mrb[1].mxu1 }
 0x50c   : > { %v3021_v31 = vmax.f32 %v3002_v45, 0.0 }
 0x50d   : > { %v3121_v55 = vadd.f32 %v3022_v40, %v7307_v44 }
 0x50e   : > { %v3120_v24 = vadd.f32 %v3021_v31, %v7309_v9  ;;  %v3504_v61 = vpop.f32.mrb[2].mxu1 }
 0x50f   : > { %3382 = vst [vmem:[%s4551_s18 + $0x18] sm:$0xff] %v3121_v55  ;;  %v3024_v49 = vmax.f32 %v3504_v61, 0.0  ;;  %v3012_v26 = vpop.f32.mrb[3].mxu1 }
 0x510   : > { %3381 = vst [vmem:[%s4551_s18 + $0x10] sm:$0xff] %v3120_v24  ;;  %v3023_v46 = vmax.f32 %v3012_v26, 0.0 }
 0x511   : > { %v3126_v51 = vadd.f32 %v3117_v12, %v3024_v49 }
 0x512   : > { %v3125_v16 = vadd.f32 %v3116_v13, %v3023_v46 }
 0x513   : > { %3384 = vst [vmem:[%s4551_s18 + $0x28] sm:$0xff] %v3126_v51 }
 0x514   : > { %3383 = vst [vmem:[%s4551_s18 + $0x20] sm:$0xff] %v3125_v16 }
 0x515   : > { %4003 = shalt.err (!%p4000_p8)
}
 0x516   : > { %s4004_s18 = scalar_lea.hbm %s6790_s19, 1280  ;;  %s4008_s1 = scalar_lea.hbm %s7310_s25, 2560 }
 0x517   : > { %p4005_p4 = scmp.ne.s32.totalorder %s6790_s19, %s4004_s18  ;;  %p4009_p3 = scmp.lt.u32.totalorder %s6790_s19, %s7310_s25 }
 0x518   : > { %p4010_p5 = scmp.lt.u32.totalorder %s4008_s1, %s4004_s18  ;;  %p4012_p6 = scmp.lt.u32.totalorder %s4004_s18, %s6790_s19 }
 0x519   : > { %p4006_p10 = pnand %p4005_p4, %p7311_p9 }
 0x51a   : > { %p4011_p7 = por %p4010_p5, %p4009_p3 }
 0x51b   : > { %p4007_p11 = pneg %p4006_p10 }
 0x51c   : > { %p4013_p12 = por %p4012_p6, %p4011_p7 }
 0x51e   : > { %p4014_p1 = pnand %p4013_p12, %p4007_p11 }
 0x520   : > { %4017 = shalt.err (!%p4014_p1)
}
 0x521   : > { %s4089_s26 = smov 128  }
 0x522   : > { %3648 = dma.vmem_to_hbm [thread:$0]  (%p7311_p9), %s6792_s21, 1280, %s6790_s19, %s3211_s15, %s4089_s26, %s4089_s26, %s4080_s17  }
 0x523 PF: > { %s3239_s16 = sand.u32 1, %s4056_s30   ;;  %p7312_p13 = scmp.ne.s32.totalorder %s6983_s29, 0 }
 0x524   : > { %p7313_p0 = scmp.ge.s32.totalorder %s4068_s12, 2  ;;  %s3240_s20 = scalar_lea.sflag [#allocation6], %s3239_s16 }
 0x526   : > { %p3674_p2 = pnand %p7313_p0, %p7312_p13 }
 0x528   : > { %4051 = dma.done.wait (!%p3674_p2), %s3240_s20, 1280  }
 0x529   : > { %4053 = vsyncadd (!%p3674_p2), %s3240_s20, 4294966016  ;;  %p25_p8 = scmp.ge.s32.totalorder %s4334_s27, 4   ;;  %s7314_s30 = smov %s4060_s10 }
 0x52a   : > { %s7315_s10 = smov %s4064_s11  ;;  %s7316_s11 = smov %s4345_s22 }
 0x52b   : > { %s7317_s12 = smov %s4334_s27  ;;  %27 = sbr.rel (!%p25_p8) target bundleno = 11 (0xb), region = 129 }
 0x532   :  { %3245 = vsyncpa [#allocation5], 1 }
 0x533   :  { %3247 = vsyncpa [#allocation5 + $0x1], 1 }
 0x534   :  { %3248 = vsyncpa [#allocation8], 1 }
 0x535   :  { %3249 = vsyncpa [#allocation11], 1 }
 0x536   :  { %3250 = vsyncpa [#allocation14], 1 }
 0x537   :  { %3251 = vsyncpa [#allocation6], 1 }
 0x538   :  { %3253 = vsyncpa [#allocation6 + $0x1], 1 }

</bundles_post_ra>
